<compile_context>
chip_gen: v5e
topology: v5e:2x2
jax: 0.10.0
libtpu: 0.0.40
codegen_flags: <defaults>
</compile_context>

<pallas_src>
import math
import functools

import jax
import jax.numpy as jnp
from jax import lax
from jax.experimental import pallas as pl
from jax.experimental.pallas import tpu as pltpu


def _gru_recurrent_kernel(gi_ref, w_hh_ref, b_hn_ref, y_ref, h_ref, *,
                          time_block, hidden_size, fuse_gates):
    """One grid step = `time_block` GRU steps for one batch block.

    gi_ref : (Tb, 3, Bb, H)   precomputed gelu(ln(x)) @ W_ih^T (+ fused biases)
    w_hh_ref: (H, 3H) if fuse_gates else (3, H, H)   hidden weights (pre-T)
    b_hn_ref: (1, H) f32      hidden bias of the n gate (cannot be pre-fused)
    y_ref  : (Tb, Bb, H)      output block, TIME-major (dense full-tile stores)
    h_ref  : (Bb, H) f32      persistent hidden state (VMEM scratch)
    """
    H = hidden_size

    # (Re-)initialize the hidden state at the start of every batch block's
    # sweep over time (time is the innermost, "arbitrary" grid axis).
    @pl.when(pl.program_id(1) == 0)
    def _():
        h_ref[...] = jnp.zeros_like(h_ref)

    # Hoist loop-invariant loads / broadcasts out of the unrolled time loop
    # (JAX does not CSE broadcast_in_dim).
    b_hn_full = jnp.broadcast_to(b_hn_ref[...], h_ref.shape)   # (Bb, H) f32

    if fuse_gates:
        w_cat = w_hh_ref[...]                     # (H, 3H), lane-aligned slices
        mm_dtype = w_cat.dtype
    else:
        w_r = w_hh_ref[0]                         # (H, H), gate-major (free index)
        w_z = w_hh_ref[1]
        w_n = w_hh_ref[2]
        mm_dtype = w_r.dtype

    # Static Python unroll: every ref index below is a compile-time constant.
    for tau in range(time_block):
        h_prev = h_ref[...]                       # (Bb, H) f32
        hp = h_prev.astype(mm_dtype)

        if fuse_gates:
            # One MXU weight stream / result drain per step instead of three.
            gh = jnp.dot(hp, w_cat, preferred_element_type=jnp.float32)  # (Bb, 3H)
            gh_r = gh[:, 0:H]
            gh_z = gh[:, H:2 * H]
            gh_n = gh[:, 2 * H:3 * H] + b_hn_full
        else:
            gh_r = jnp.dot(hp, w_r, preferred_element_type=jnp.float32)
            gh_z = jnp.dot(hp, w_z, preferred_element_type=jnp.float32)
            gh_n = jnp.dot(hp, w_n, preferred_element_type=jnp.float32) + b_hn_full

        # gi may be stored in bf16; do the adds + nonlinearities in f32.
        r = jax.nn.sigmoid(gi_ref[tau, 0].astype(jnp.float32) + gh_r)
        z = jax.nn.sigmoid(gi_ref[tau, 1].astype(jnp.float32) + gh_z)
        n = jnp.tanh(gi_ref[tau, 2].astype(jnp.float32) + r * gh_n)
        h_new = (1.0 - z) * n + z * h_prev

        h_ref[...] = h_new
        y_ref[tau] = h_new.astype(y_ref.dtype)    # dense (Bb, H) store


def _vmem_capacity_bytes():
    try:
        cap = getattr(pltpu.get_tpu_info(), "vmem_capacity_bytes", None)
        if cap:
            return int(cap)
    except Exception:
        pass
    return 64 << 20   # conservative (v7x per-TC VMEM)


def _pick_time_block(T, max_tb, bytes_fn, budget):
    """Largest divisor of T that is <= max_tb and fits the VMEM budget.

    The time dim is the leading dim of every block (no (8,128) constraint),
    so any divisor is legal; divisor-of-T keeps the grid exact."""
    best = 1
    for tb in range(1, min(max_tb, T) + 1):
        if T % tb == 0 and bytes_fn(tb) <= budget:
            best = tb
    return best


def gru_module_forward(x_btd, params, *, eps=1e-5, matmul_dtype=jnp.bfloat16,
                       gi_dtype=None, max_time_block=64, batch_block=None):
    """x_btd: (B, T, D) float32 (batch_first). Returns (B, T, H) float32."""
    B, T, D = x_btd.shape
    H = params["w_hh"].shape[1]               # w_hh: (3H, H)
    if gi_dtype is None:                      # bf16 gi halves the dominant HBM stream
        gi_dtype = matmul_dtype

    # ---- one-time weight / bias prep (gate-major, pre-transposed) ----
    w_ih3 = jnp.transpose(params["w_ih"].reshape(3, H, D), (0, 2, 1))   # (3, D, H)
    w_hh3 = jnp.transpose(params["w_hh"].reshape(3, H, H), (0, 2, 1))   # (3, H, H)
    b_ih3 = params["b_ih"].reshape(3, H)
    b_hh3 = params["b_hh"].reshape(3, H)
    # r/z: b_ih + b_hh fused into the hoisted input projection.
    # n  : only b_ih_n fused; b_hh_n must stay inside r * (h @ W_hn^T + b_hn).
    b_pre = jnp.stack([b_ih3[0] + b_hh3[0],
                       b_ih3[1] + b_hh3[1],
                       b_ih3[2]], axis=0)                                # (3, H)
    b_hn = b_hh3[2].reshape(1, H).astype(jnp.float32)

    # Gate-fused hidden matmul only when gate slices stay lane-aligned.
    fuse_gates = (H % 128 == 0)
    if fuse_gates:
        w_hh_k = jnp.concatenate([w_hh3[0], w_hh3[1], w_hh3[2]], axis=1)  # (H, 3H)
    else:
        w_hh_k = w_hh3                                                     # (3, H, H)
    w_hh_k = w_hh_k.astype(matmul_dtype)

    # ---- hoisted time-independent prologue: LayerNorm -> GELU -> @ W_ih^T ----
    x32 = x_btd.astype(jnp.float32)
    mu = jnp.mean(x32, axis=-1, keepdims=True)
    var = jnp.mean(jnp.square(x32 - mu), axis=-1, keepdims=True)
    xn = (x32 - mu) * lax.rsqrt(var + eps)
    xn = xn * params["ln_gamma"] + params["ln_beta"]
    # exact (erf-based) GELU, matching F.gelu default
    g = 0.5 * xn * (1.0 + lax.erf(xn * jnp.float32(1.0 / math.sqrt(2.0))))
    gi = jnp.einsum("btd,gdh->tgbh",
                    g.astype(matmul_dtype), w_ih3.astype(matmul_dtype),
                    preferred_element_type=jnp.float32)                  # (T,3,B,H) f32
    gi = (gi + b_pre[None, :, None, :]).astype(gi_dtype)                 # store compact

    # ---- block sizing (Bb is the MXU M dim: never shrink it; shrink Tb) ----
    if batch_block is None:
        # Split batch only when large enough to feed v7x's 2nd TC without
        # hurting MXU occupancy.
        Bb = B // 2 if (B >= 256 and (B // 2) % 8 == 0) else B
    else:
        Bb = batch_block
    assert B % Bb == 0 and (Bb % 8 == 0 or Bb == B), "illegal batch block"

    gi_itemsize = jnp.dtype(gi_dtype).itemsize
    w_itemsize = jnp.dtype(matmul_dtype).itemsize
    w_bytes = 3 * H * H * w_itemsize + H * 4

    def working_set_bytes(tb):
        gi_blk = 2 * tb * 3 * Bb * H * gi_itemsize   # double-buffered input
        y_blk = 2 * tb * Bb * H * 4                  # double-buffered output
        consts = 2 * w_bytes                         # worst case (double-buffered)
        scratch = Bb * H * 4
        return gi_blk + y_blk + consts + scratch

    vmem_cap = _vmem_capacity_bytes()
    budget = min(int(vmem_cap * 0.75), 100 << 20)
    Tb = _pick_time_block(T, max_time_block, working_set_bytes, budget)
    vmem_limit = int(min(max(working_set_bytes(Tb) + (8 << 20), 32 << 20),
                         min(int(vmem_cap * 0.85), 100 << 20)))

    kernel = functools.partial(_gru_recurrent_kernel, time_block=Tb,
                               hidden_size=H, fuse_gates=fuse_gates)
    cost = pl.CostEstimate(
        flops=2 * T * B * 3 * H * H + 15 * T * B * H,
        transcendentals=3 * T * B * H,
        bytes_accessed=(T * 3 * B * H * gi_itemsize + T * B * H * 4
                        + 3 * H * H * w_itemsize + H * 4),
    )

    def build(const_buffered):
        if fuse_gates:
            w_shape, w_idx = (H, 3 * H), (lambda b, t: (0, 0))
        else:
            w_shape, w_idx = (3, H, H), (lambda b, t: (0, 0, 0))
        b_idx = lambda b, t: (0, 0)
        if const_buffered:
            # Constant blocks: no point double-buffering (saves VMEM on v7x).
            w_spec = pl.BlockSpec(w_shape, w_idx, pipeline_mode=pl.Buffered(1))
            b_spec = pl.BlockSpec((1, H), b_idx, pipeline_mode=pl.Buffered(1))
        else:
            w_spec = pl.BlockSpec(w_shape, w_idx)
            b_spec = pl.BlockSpec((1, H), b_idx)
        return pl.pallas_call(
            kernel,
            # time-major output -> dense full-tile stores; transpose outside.
            out_shape=jax.ShapeDtypeStruct((T, B, H), jnp.float32),
            grid_spec=pltpu.PrefetchScalarGridSpec(
                num_scalar_prefetch=0,
                # batch blocks ("parallel": 2nd TC on v7x) x time blocks (serial).
                grid=(B // Bb, T // Tb),
                in_specs=[
                    pl.BlockSpec((Tb, 3, Bb, H), lambda b, t: (t, 0, b, 0)),  # gi
                    w_spec,                                                    # W_hh
                    b_spec,                                                    # b_hn
                ],
                out_specs=pl.BlockSpec((Tb, Bb, H), lambda b, t: (t, b, 0)),
                scratch_shapes=[pltpu.VMEM((Bb, H), jnp.float32)],             # h_t
            ),
            compiler_params=pltpu.CompilerParams(
                dimension_semantics=("parallel", "arbitrary"),
                vmem_limit_bytes=vmem_limit,
            ),
            cost_estimate=cost,
        )

    try:
        y_tbh = build(const_buffered=True)(gi, w_hh_k, b_hn)
    except Exception:
        # pipeline_mode=pl.Buffered(1) not supported by this JAX build.
        y_tbh = build(const_buffered=False)(gi, w_hh_k, b_hn)

    # Dropout: identity at inference.
    # TODO(synk): train-mode dropout (RNG mask) not implemented.
    return jnp.transpose(y_tbh, (1, 0, 2))       # (B, T, H) batch-first


def gru_module_reference(x_btd, params, *, eps=1e-5):
    """Pure-JAX reference (lax.scan) replicating the PyTorch forward."""
    gamma, beta = params["ln_gamma"], params["ln_beta"]
    w_ih, w_hh = params["w_ih"], params["w_hh"]    # (3H, D), (3H, H)
    b_ih, b_hh = params["b_ih"], params["b_hh"]
    H = w_hh.shape[1]

    mu = jnp.mean(x_btd, axis=-1, keepdims=True)
    var = jnp.mean((x_btd - mu) ** 2, axis=-1, keepdims=True)
    xn = (x_btd - mu) / jnp.sqrt(var + eps) * gamma + beta
    g = 0.5 * xn * (1.0 + lax.erf(xn / jnp.sqrt(2.0)))

    def step(h, x_t):
        gi = x_t @ w_ih.T + b_ih
        gh = h @ w_hh.T + b_hh
        i_r, i_z, i_n = gi[:, :H], gi[:, H:2 * H], gi[:, 2 * H:]
        h_r, h_z, h_n = gh[:, :H], gh[:, H:2 * H], gh[:, 2 * H:]
        r = jax.nn.sigmoid(i_r + h_r)
        z = jax.nn.sigmoid(i_z + h_z)
        n = jnp.tanh(i_n + r * h_n)
        h_new = (1.0 - z) * n + z * h
        return h_new, h_new

    B = x_btd.shape[0]
    h0 = jnp.zeros((B, H), jnp.float32)
    _, ys = lax.scan(step, h0, jnp.transpose(g, (1, 0, 2)))
    return jnp.transpose(ys, (1, 0, 2))


def init_params(key, rnn_dim, hidden_size):
    """Deterministic init mirroring PyTorch shapes (GRU: U(-1/sqrt(H), 1/sqrt(H)))."""
    k1, k2, k3, k4 = jax.random.split(key, 4)
    bound = 1.0 / math.sqrt(hidden_size)
    return {
        "ln_gamma": jnp.ones((rnn_dim,), jnp.float32),
        "ln_beta": jnp.zeros((rnn_dim,), jnp.float32),
        "w_ih": jax.random.uniform(k1, (3 * hidden_size, rnn_dim),
                                   jnp.float32, -bound, bound),
        "w_hh": jax.random.uniform(k2, (3 * hidden_size, hidden_size),
                                   jnp.float32, -bound, bound),
        "b_ih": jax.random.uniform(k3, (3 * hidden_size,),
                                   jnp.float32, -bound, bound),
        "b_hh": jax.random.uniform(k4, (3 * hidden_size,),
                                   jnp.float32, -bound, bound),
    }


if __name__ == "__main__":
    B, T, rnn_dim, hidden = 8, 8, 32, 32

    key = jax.random.PRNGKey(0)
    kx, kp = jax.random.split(key)
    x = jax.random.normal(kx, (B, T, rnn_dim), jnp.float32)
    params = init_params(kp, rnn_dim, hidden)

    y_ref = jax.block_until_ready(gru_module_reference(x, params))

    # f32 matmul / f32-gi path: close check against the pure-JAX reference.
    y32 = jax.block_until_ready(
        gru_module_forward(x, params, matmul_dtype=jnp.float32))
    assert y32.shape == (B, T, hidden)
    assert jnp.allclose(y32, y_ref, atol=2e-2, rtol=2e-2), "f32 path mismatch"

    # bf16 matmul / bf16-gi path (MXU-native, the fast configuration).
    ybf = jax.block_until_ready(
        gru_module_forward(x, params, matmul_dtype=jnp.bfloat16))
    assert ybf.shape == (B, T, hidden)
    assert jnp.allclose(ybf, y_ref, atol=5e-2, rtol=5e-2), "bf16 path mismatch"

    print("KERNEL_OK")
</pallas_src>

<mosaic_0001>
module attributes {stable_mosaic.version = 11 : i64} {
  func.func @_gru_recurrent_kernel(%arg0: i32, %arg1: i32, %arg2: memref<8x3x8x32xf32, #tpu.memory_space<vmem>>, %arg3: memref<3x32x32xf32, #tpu.memory_space<vmem>>, %arg4: memref<1x32xf32, #tpu.memory_space<vmem>>, %arg5: memref<8x8x32xf32, #tpu.memory_space<vmem>>, %arg6: memref<8x32xf32, #tpu.memory_space<vmem>>) attributes {dimension_semantics = [#tpu.dimension_semantics<parallel>, #tpu.dimension_semantics<arbitrary>], iteration_bounds = array<i64: 1, 1>, scalar_prefetch = 0 : i64, scratch_operands = 1 : i64, tpu.core_type = #tpu.core_type<tc>, window_params = [{transform_indices = @transform_0, window_bounds = array<i64: 8, 3, 8, 32>}, {pipeline_mode = #tpu.pipeline_mode<synchronous>, transform_indices = @transform_1, window_bounds = array<i64: 3, 32, 32>}, {pipeline_mode = #tpu.pipeline_mode<synchronous>, transform_indices = @transform_2, window_bounds = array<i64: 1, 32>}, {transform_indices = @transform_3, window_bounds = array<i64: 8, 8, 32>}]} {
    %c0_i32 = arith.constant 0 : i32
    %0 = arith.cmpi eq, %arg1, %c0_i32 : i32
    %1 = arith.extui %0 : i1 to i32
    %c0_i32_0 = arith.constant 0 : i32
    %2 = arith.cmpi ne, %1, %c0_i32_0 : i32
    scf.if %2 {
      %cst_203 = arith.constant 0.000000e+00 : f32
      %292 = vector.broadcast %cst_203 : f32 to vector<8x32xf32>
      %c0_204 = arith.constant 0 : index
      %c0_205 = arith.constant 0 : index
      %293 = vector.load %arg6[%c0_204, %c0_205] : memref<8x32xf32, #tpu.memory_space<vmem>>, vector<8x32xf32>
      tpu.vector_store %arg6[%c0_204, %c0_205], %292 {strides = array<i32>} : memref<8x32xf32, #tpu.memory_space<vmem>>, vector<8x32xf32>,
    } else {
    }
    %c0 = arith.constant 0 : index
    %c0_1 = arith.constant 0 : index
    %3 = vector.load %arg4[%c0, %c0_1] : memref<1x32xf32, #tpu.memory_space<vmem>>, vector<1x32xf32>
    %4 = vector.shape_cast %3 : vector<1x32xf32> to vector<1x32xf32>
    %5 = vector.broadcast %4 : vector<1x32xf32> to vector<8x32xf32>
    %c0_2 = arith.constant 0 : index
    %c0_3 = arith.constant 0 : index
    %c0_4 = arith.constant 0 : index
    %6 = vector.load %arg3[%c0_2, %c0_3, %c0_4] : memref<3x32x32xf32, #tpu.memory_space<vmem>>, vector<1x32x32xf32>
    %7 = vector.shape_cast %6 : vector<1x32x32xf32> to vector<32x32xf32>
    %c1 = arith.constant 1 : index
    %c0_5 = arith.constant 0 : index
    %c0_6 = arith.constant 0 : index
    %8 = vector.load %arg3[%c1, %c0_5, %c0_6] : memref<3x32x32xf32, #tpu.memory_space<vmem>>, vector<1x32x32xf32>
    %9 = vector.shape_cast %8 : vector<1x32x32xf32> to vector<32x32xf32>
    %c2 = arith.constant 2 : index
    %c0_7 = arith.constant 0 : index
    %c0_8 = arith.constant 0 : index
    %10 = vector.load %arg3[%c2, %c0_7, %c0_8] : memref<3x32x32xf32, #tpu.memory_space<vmem>>, vector<1x32x32xf32>
    %11 = vector.shape_cast %10 : vector<1x32x32xf32> to vector<32x32xf32>
    %c0_9 = arith.constant 0 : index
    %c0_10 = arith.constant 0 : index
    %12 = vector.load %arg6[%c0_9, %c0_10] : memref<8x32xf32, #tpu.memory_space<vmem>>, vector<8x32xf32>
    %cst = arith.constant dense<0.000000e+00> : vector<8x32xf32>
    %13 = tpu.matmul %12, %7, %cst {dimension_numbers = #tpu.dot_dimension_numbers<[1], [0], [0], [1], [0, 0, 1, 1], [], []>} : vector<8x32xf32>, vector<32x32xf32>, vector<8x32xf32> -> vector<8x32xf32>
    %cst_11 = arith.constant dense<0.000000e+00> : vector<8x32xf32>
    %14 = tpu.matmul %12, %9, %cst_11 {dimension_numbers = #tpu.dot_dimension_numbers<[1], [0], [0], [1], [0, 0, 1, 1], [], []>} : vector<8x32xf32>, vector<32x32xf32>, vector<8x32xf32> -> vector<8x32xf32>
    %cst_12 = arith.constant dense<0.000000e+00> : vector<8x32xf32>
    %15 = tpu.matmul %12, %11, %cst_12 {dimension_numbers = #tpu.dot_dimension_numbers<[1], [0], [0], [1], [0, 0, 1, 1], [], []>} : vector<8x32xf32>, vector<32x32xf32>, vector<8x32xf32> -> vector<8x32xf32>
    %16 = arith.addf %15, %5 : vector<8x32xf32>
    %c0_13 = arith.constant 0 : index
    %c0_14 = arith.constant 0 : index
    %c0_15 = arith.constant 0 : index
    %c0_16 = arith.constant 0 : index
    %17 = vector.load %arg2[%c0_13, %c0_14, %c0_15, %c0_16] : memref<8x3x8x32xf32, #tpu.memory_space<vmem>>, vector<1x1x8x32xf32>
    %18 = vector.shape_cast %17 : vector<1x1x8x32xf32> to vector<8x32xf32>
    %19 = arith.addf %18, %13 : vector<8x32xf32>
    %20 = arith.negf %19 : vector<8x32xf32>
    %21 = math.exp %20 : vector<8x32xf32>
    %cst_17 = arith.constant 1.000000e+00 : f32
    %22 = vector.broadcast %cst_17 : f32 to vector<8x32xf32>
    %23 = arith.addf %22, %21 : vector<8x32xf32>
    %24 = arith.divf %22, %23 : vector<8x32xf32>
    %c0_18 = arith.constant 0 : index
    %c1_19 = arith.constant 1 : index
    %c0_20 = arith.constant 0 : index
    %c0_21 = arith.constant 0 : index
    %25 = vector.load %arg2[%c0_18, %c1_19, %c0_20, %c0_21] : memref<8x3x8x32xf32, #tpu.memory_space<vmem>>, vector<1x1x8x32xf32>
    %26 = vector.shape_cast %25 : vector<1x1x8x32xf32> to vector<8x32xf32>
    %27 = arith.addf %26, %14 : vector<8x32xf32>
    %28 = arith.negf %27 : vector<8x32xf32>
    %29 = math.exp %28 : vector<8x32xf32>
    %cst_22 = arith.constant 1.000000e+00 : f32
    %30 = vector.broadcast %cst_22 : f32 to vector<8x32xf32>
    %31 = arith.addf %30, %29 : vector<8x32xf32>
    %32 = arith.divf %30, %31 : vector<8x32xf32>
    %c0_23 = arith.constant 0 : index
    %c2_24 = arith.constant 2 : index
    %c0_25 = arith.constant 0 : index
    %c0_26 = arith.constant 0 : index
    %33 = vector.load %arg2[%c0_23, %c2_24, %c0_25, %c0_26] : memref<8x3x8x32xf32, #tpu.memory_space<vmem>>, vector<1x1x8x32xf32>
    %34 = vector.shape_cast %33 : vector<1x1x8x32xf32> to vector<8x32xf32>
    %35 = arith.mulf %24, %16 : vector<8x32xf32>
    %36 = arith.addf %34, %35 : vector<8x32xf32>
    %37 = math.tanh %36 : vector<8x32xf32>
    %cst_27 = arith.constant 1.000000e+00 : f32
    %38 = vector.broadcast %cst_27 : f32 to vector<8x32xf32>
    %39 = arith.subf %38, %32 : vector<8x32xf32>
    %40 = arith.mulf %39, %37 : vector<8x32xf32>
    %41 = arith.mulf %32, %12 : vector<8x32xf32>
    %42 = arith.addf %40, %41 : vector<8x32xf32>
    %c0_28 = arith.constant 0 : index
    %c0_29 = arith.constant 0 : index
    %43 = vector.load %arg6[%c0_28, %c0_29] : memref<8x32xf32, #tpu.memory_space<vmem>>, vector<8x32xf32>
    tpu.vector_store %arg6[%c0_28, %c0_29], %42 {strides = array<i32>} : memref<8x32xf32, #tpu.memory_space<vmem>>, vector<8x32xf32>,
    %c0_30 = arith.constant 0 : index
    %c0_31 = arith.constant 0 : index
    %c0_32 = arith.constant 0 : index
    %44 = vector.load %arg5[%c0_30, %c0_31, %c0_32] : memref<8x8x32xf32, #tpu.memory_space<vmem>>, vector<1x8x32xf32>
    %45 = vector.shape_cast %44 : vector<1x8x32xf32> to vector<8x32xf32>
    %46 = vector.shape_cast %42 : vector<8x32xf32> to vector<1x8x32xf32>
    tpu.vector_store %arg5[%c0_30, %c0_31, %c0_32], %46 {strides = array<i32>} : memref<8x8x32xf32, #tpu.memory_space<vmem>>, vector<1x8x32xf32>,
    %c0_33 = arith.constant 0 : index
    %c0_34 = arith.constant 0 : index
    %47 = vector.load %arg6[%c0_33, %c0_34] : memref<8x32xf32, #tpu.memory_space<vmem>>, vector<8x32xf32>
    %cst_35 = arith.constant dense<0.000000e+00> : vector<8x32xf32>
    %48 = tpu.matmul %47, %7, %cst_35 {dimension_numbers = #tpu.dot_dimension_numbers<[1], [0], [0], [1], [0, 0, 1, 1], [], []>} : vector<8x32xf32>, vector<32x32xf32>, vector<8x32xf32> -> vector<8x32xf32>
    %cst_36 = arith.constant dense<0.000000e+00> : vector<8x32xf32>
    %49 = tpu.matmul %47, %9, %cst_36 {dimension_numbers = #tpu.dot_dimension_numbers<[1], [0], [0], [1], [0, 0, 1, 1], [], []>} : vector<8x32xf32>, vector<32x32xf32>, vector<8x32xf32> -> vector<8x32xf32>
    %cst_37 = arith.constant dense<0.000000e+00> : vector<8x32xf32>
    %50 = tpu.matmul %47, %11, %cst_37 {dimension_numbers = #tpu.dot_dimension_numbers<[1], [0], [0], [1], [0, 0, 1, 1], [], []>} : vector<8x32xf32>, vector<32x32xf32>, vector<8x32xf32> -> vector<8x32xf32>
    %51 = arith.addf %50, %5 : vector<8x32xf32>
    %c1_38 = arith.constant 1 : index
    %c0_39 = arith.constant 0 : index
    %c0_40 = arith.constant 0 : index
    %c0_41 = arith.constant 0 : index
    %52 = vector.load %arg2[%c1_38, %c0_39, %c0_40, %c0_41] : memref<8x3x8x32xf32, #tpu.memory_space<vmem>>, vector<1x1x8x32xf32>
    %53 = vector.shape_cast %52 : vector<1x1x8x32xf32> to vector<8x32xf32>
    %54 = arith.addf %53, %48 : vector<8x32xf32>
    %55 = arith.negf %54 : vector<8x32xf32>
    %56 = math.exp %55 : vector<8x32xf32>
    %cst_42 = arith.constant 1.000000e+00 : f32
    %57 = vector.broadcast %cst_42 : f32 to vector<8x32xf32>
    %58 = arith.addf %57, %56 : vector<8x32xf32>
    %59 = arith.divf %57, %58 : vector<8x32xf32>
    %c1_43 = arith.constant 1 : index
    %c1_44 = arith.constant 1 : index
    %c0_45 = arith.constant 0 : index
    %c0_46 = arith.constant 0 : index
    %60 = vector.load %arg2[%c1_43, %c1_44, %c0_45, %c0_46] : memref<8x3x8x32xf32, #tpu.memory_space<vmem>>, vector<1x1x8x32xf32>
    %61 = vector.shape_cast %60 : vector<1x1x8x32xf32> to vector<8x32xf32>
    %62 = arith.addf %61, %49 : vector<8x32xf32>
    %63 = arith.negf %62 : vector<8x32xf32>
    %64 = math.exp %63 : vector<8x32xf32>
    %cst_47 = arith.constant 1.000000e+00 : f32
    %65 = vector.broadcast %cst_47 : f32 to vector<8x32xf32>
    %66 = arith.addf %65, %64 : vector<8x32xf32>
    %67 = arith.divf %65, %66 : vector<8x32xf32>
    %c1_48 = arith.constant 1 : index
    %c2_49 = arith.constant 2 : index
    %c0_50 = arith.constant 0 : index
    %c0_51 = arith.constant 0 : index
    %68 = vector.load %arg2[%c1_48, %c2_49, %c0_50, %c0_51] : memref<8x3x8x32xf32, #tpu.memory_space<vmem>>, vector<1x1x8x32xf32>
    %69 = vector.shape_cast %68 : vector<1x1x8x32xf32> to vector<8x32xf32>
    %70 = arith.mulf %59, %51 : vector<8x32xf32>
    %71 = arith.addf %69, %70 : vector<8x32xf32>
    %72 = math.tanh %71 : vector<8x32xf32>
    %cst_52 = arith.constant 1.000000e+00 : f32
    %73 = vector.broadcast %cst_52 : f32 to vector<8x32xf32>
    %74 = arith.subf %73, %67 : vector<8x32xf32>
    %75 = arith.mulf %74, %72 : vector<8x32xf32>
    %76 = arith.mulf %67, %47 : vector<8x32xf32>
    %77 = arith.addf %75, %76 : vector<8x32xf32>
    %c0_53 = arith.constant 0 : index
    %c0_54 = arith.constant 0 : index
    %78 = vector.load %arg6[%c0_53, %c0_54] : memref<8x32xf32, #tpu.memory_space<vmem>>, vector<8x32xf32>
    tpu.vector_store %arg6[%c0_53, %c0_54], %77 {strides = array<i32>} : memref<8x32xf32, #tpu.memory_space<vmem>>, vector<8x32xf32>,
    %c1_55 = arith.constant 1 : index
    %c0_56 = arith.constant 0 : index
    %c0_57 = arith.constant 0 : index
    %79 = vector.load %arg5[%c1_55, %c0_56, %c0_57] : memref<8x8x32xf32, #tpu.memory_space<vmem>>, vector<1x8x32xf32>
    %80 = vector.shape_cast %79 : vector<1x8x32xf32> to vector<8x32xf32>
    %81 = vector.shape_cast %77 : vector<8x32xf32> to vector<1x8x32xf32>
    tpu.vector_store %arg5[%c1_55, %c0_56, %c0_57], %81 {strides = array<i32>} : memref<8x8x32xf32, #tpu.memory_space<vmem>>, vector<1x8x32xf32>,
    %c0_58 = arith.constant 0 : index
    %c0_59 = arith.constant 0 : index
    %82 = vector.load %arg6[%c0_58, %c0_59] : memref<8x32xf32, #tpu.memory_space<vmem>>, vector<8x32xf32>
    %cst_60 = arith.constant dense<0.000000e+00> : vector<8x32xf32>
    %83 = tpu.matmul %82, %7, %cst_60 {dimension_numbers = #tpu.dot_dimension_numbers<[1], [0], [0], [1], [0, 0, 1, 1], [], []>} : vector<8x32xf32>, vector<32x32xf32>, vector<8x32xf32> -> vector<8x32xf32>
    %cst_61 = arith.constant dense<0.000000e+00> : vector<8x32xf32>
    %84 = tpu.matmul %82, %9, %cst_61 {dimension_numbers = #tpu.dot_dimension_numbers<[1], [0], [0], [1], [0, 0, 1, 1], [], []>} : vector<8x32xf32>, vector<32x32xf32>, vector<8x32xf32> -> vector<8x32xf32>
    %cst_62 = arith.constant dense<0.000000e+00> : vector<8x32xf32>
    %85 = tpu.matmul %82, %11, %cst_62 {dimension_numbers = #tpu.dot_dimension_numbers<[1], [0], [0], [1], [0, 0, 1, 1], [], []>} : vector<8x32xf32>, vector<32x32xf32>, vector<8x32xf32> -> vector<8x32xf32>
    %86 = arith.addf %85, %5 : vector<8x32xf32>
    %c2_63 = arith.constant 2 : index
    %c0_64 = arith.constant 0 : index
    %c0_65 = arith.constant 0 : index
    %c0_66 = arith.constant 0 : index
    %87 = vector.load %arg2[%c2_63, %c0_64, %c0_65, %c0_66] : memref<8x3x8x32xf32, #tpu.memory_space<vmem>>, vector<1x1x8x32xf32>
    %88 = vector.shape_cast %87 : vector<1x1x8x32xf32> to vector<8x32xf32>
    %89 = arith.addf %88, %83 : vector<8x32xf32>
    %90 = arith.negf %89 : vector<8x32xf32>
    %91 = math.exp %90 : vector<8x32xf32>
    %cst_67 = arith.constant 1.000000e+00 : f32
    %92 = vector.broadcast %cst_67 : f32 to vector<8x32xf32>
    %93 = arith.addf %92, %91 : vector<8x32xf32>
    %94 = arith.divf %92, %93 : vector<8x32xf32>
    %c2_68 = arith.constant 2 : index
    %c1_69 = arith.constant 1 : index
    %c0_70 = arith.constant 0 : index
    %c0_71 = arith.constant 0 : index
    %95 = vector.load %arg2[%c2_68, %c1_69, %c0_70, %c0_71] : memref<8x3x8x32xf32, #tpu.memory_space<vmem>>, vector<1x1x8x32xf32>
    %96 = vector.shape_cast %95 : vector<1x1x8x32xf32> to vector<8x32xf32>
    %97 = arith.addf %96, %84 : vector<8x32xf32>
    %98 = arith.negf %97 : vector<8x32xf32>
    %99 = math.exp %98 : vector<8x32xf32>
    %cst_72 = arith.constant 1.000000e+00 : f32
    %100 = vector.broadcast %cst_72 : f32 to vector<8x32xf32>
    %101 = arith.addf %100, %99 : vector<8x32xf32>
    %102 = arith.divf %100, %101 : vector<8x32xf32>
    %c2_73 = arith.constant 2 : index
    %c2_74 = arith.constant 2 : index
    %c0_75 = arith.constant 0 : index
    %c0_76 = arith.constant 0 : index
    %103 = vector.load %arg2[%c2_73, %c2_74, %c0_75, %c0_76] : memref<8x3x8x32xf32, #tpu.memory_space<vmem>>, vector<1x1x8x32xf32>
    %104 = vector.shape_cast %103 : vector<1x1x8x32xf32> to vector<8x32xf32>
    %105 = arith.mulf %94, %86 : vector<8x32xf32>
    %106 = arith.addf %104, %105 : vector<8x32xf32>
    %107 = math.tanh %106 : vector<8x32xf32>
    %cst_77 = arith.constant 1.000000e+00 : f32
    %108 = vector.broadcast %cst_77 : f32 to vector<8x32xf32>
    %109 = arith.subf %108, %102 : vector<8x32xf32>
    %110 = arith.mulf %109, %107 : vector<8x32xf32>
    %111 = arith.mulf %102, %82 : vector<8x32xf32>
    %112 = arith.addf %110, %111 : vector<8x32xf32>
    %c0_78 = arith.constant 0 : index
    %c0_79 = arith.constant 0 : index
    %113 = vector.load %arg6[%c0_78, %c0_79] : memref<8x32xf32, #tpu.memory_space<vmem>>, vector<8x32xf32>
    tpu.vector_store %arg6[%c0_78, %c0_79], %112 {strides = array<i32>} : memref<8x32xf32, #tpu.memory_space<vmem>>, vector<8x32xf32>,
    %c2_80 = arith.constant 2 : index
    %c0_81 = arith.constant 0 : index
    %c0_82 = arith.constant 0 : index
    %114 = vector.load %arg5[%c2_80, %c0_81, %c0_82] : memref<8x8x32xf32, #tpu.memory_space<vmem>>, vector<1x8x32xf32>
    %115 = vector.shape_cast %114 : vector<1x8x32xf32> to vector<8x32xf32>
    %116 = vector.shape_cast %112 : vector<8x32xf32> to vector<1x8x32xf32>
    tpu.vector_store %arg5[%c2_80, %c0_81, %c0_82], %116 {strides = array<i32>} : memref<8x8x32xf32, #tpu.memory_space<vmem>>, vector<1x8x32xf32>,
    %c0_83 = arith.constant 0 : index
    %c0_84 = arith.constant 0 : index
    %117 = vector.load %arg6[%c0_83, %c0_84] : memref<8x32xf32, #tpu.memory_space<vmem>>, vector<8x32xf32>
    %cst_85 = arith.constant dense<0.000000e+00> : vector<8x32xf32>
    %118 = tpu.matmul %117, %7, %cst_85 {dimension_numbers = #tpu.dot_dimension_numbers<[1], [0], [0], [1], [0, 0, 1, 1], [], []>} : vector<8x32xf32>, vector<32x32xf32>, vector<8x32xf32> -> vector<8x32xf32>
    %cst_86 = arith.constant dense<0.000000e+00> : vector<8x32xf32>
    %119 = tpu.matmul %117, %9, %cst_86 {dimension_numbers = #tpu.dot_dimension_numbers<[1], [0], [0], [1], [0, 0, 1, 1], [], []>} : vector<8x32xf32>, vector<32x32xf32>, vector<8x32xf32> -> vector<8x32xf32>
    %cst_87 = arith.constant dense<0.000000e+00> : vector<8x32xf32>
    %120 = tpu.matmul %117, %11, %cst_87 {dimension_numbers = #tpu.dot_dimension_numbers<[1], [0], [0], [1], [0, 0, 1, 1], [], []>} : vector<8x32xf32>, vector<32x32xf32>, vector<8x32xf32> -> vector<8x32xf32>
    %121 = arith.addf %120, %5 : vector<8x32xf32>
    %c3 = arith.constant 3 : index
    %c0_88 = arith.constant 0 : index
    %c0_89 = arith.constant 0 : index
    %c0_90 = arith.constant 0 : index
    %122 = vector.load %arg2[%c3, %c0_88, %c0_89, %c0_90] : memref<8x3x8x32xf32, #tpu.memory_space<vmem>>, vector<1x1x8x32xf32>
    %123 = vector.shape_cast %122 : vector<1x1x8x32xf32> to vector<8x32xf32>
    %124 = arith.addf %123, %118 : vector<8x32xf32>
    %125 = arith.negf %124 : vector<8x32xf32>
    %126 = math.exp %125 : vector<8x32xf32>
    %cst_91 = arith.constant 1.000000e+00 : f32
    %127 = vector.broadcast %cst_91 : f32 to vector<8x32xf32>
    %128 = arith.addf %127, %126 : vector<8x32xf32>
    %129 = arith.divf %127, %128 : vector<8x32xf32>
    %c3_92 = arith.constant 3 : index
    %c1_93 = arith.constant 1 : index
    %c0_94 = arith.constant 0 : index
    %c0_95 = arith.constant 0 : index
    %130 = vector.load %arg2[%c3_92, %c1_93, %c0_94, %c0_95] : memref<8x3x8x32xf32, #tpu.memory_space<vmem>>, vector<1x1x8x32xf32>
    %131 = vector.shape_cast %130 : vector<1x1x8x32xf32> to vector<8x32xf32>
    %132 = arith.addf %131, %119 : vector<8x32xf32>
    %133 = arith.negf %132 : vector<8x32xf32>
    %134 = math.exp %133 : vector<8x32xf32>
    %cst_96 = arith.constant 1.000000e+00 : f32
    %135 = vector.broadcast %cst_96 : f32 to vector<8x32xf32>
    %136 = arith.addf %135, %134 : vector<8x32xf32>
    %137 = arith.divf %135, %136 : vector<8x32xf32>
    %c3_97 = arith.constant 3 : index
    %c2_98 = arith.constant 2 : index
    %c0_99 = arith.constant 0 : index
    %c0_100 = arith.constant 0 : index
    %138 = vector.load %arg2[%c3_97, %c2_98, %c0_99, %c0_100] : memref<8x3x8x32xf32, #tpu.memory_space<vmem>>, vector<1x1x8x32xf32>
    %139 = vector.shape_cast %138 : vector<1x1x8x32xf32> to vector<8x32xf32>
    %140 = arith.mulf %129, %121 : vector<8x32xf32>
    %141 = arith.addf %139, %140 : vector<8x32xf32>
    %142 = math.tanh %141 : vector<8x32xf32>
    %cst_101 = arith.constant 1.000000e+00 : f32
    %143 = vector.broadcast %cst_101 : f32 to vector<8x32xf32>
    %144 = arith.subf %143, %137 : vector<8x32xf32>
    %145 = arith.mulf %144, %142 : vector<8x32xf32>
    %146 = arith.mulf %137, %117 : vector<8x32xf32>
    %147 = arith.addf %145, %146 : vector<8x32xf32>
    %c0_102 = arith.constant 0 : index
    %c0_103 = arith.constant 0 : index
    %148 = vector.load %arg6[%c0_102, %c0_103] : memref<8x32xf32, #tpu.memory_space<vmem>>, vector<8x32xf32>
    tpu.vector_store %arg6[%c0_102, %c0_103], %147 {strides = array<i32>} : memref<8x32xf32, #tpu.memory_space<vmem>>, vector<8x32xf32>,
    %c3_104 = arith.constant 3 : index
    %c0_105 = arith.constant 0 : index
    %c0_106 = arith.constant 0 : index
    %149 = vector.load %arg5[%c3_104, %c0_105, %c0_106] : memref<8x8x32xf32, #tpu.memory_space<vmem>>, vector<1x8x32xf32>
    %150 = vector.shape_cast %149 : vector<1x8x32xf32> to vector<8x32xf32>
    %151 = vector.shape_cast %147 : vector<8x32xf32> to vector<1x8x32xf32>
    tpu.vector_store %arg5[%c3_104, %c0_105, %c0_106], %151 {strides = array<i32>} : memref<8x8x32xf32, #tpu.memory_space<vmem>>, vector<1x8x32xf32>,
    %c0_107 = arith.constant 0 : index
    %c0_108 = arith.constant 0 : index
    %152 = vector.load %arg6[%c0_107, %c0_108] : memref<8x32xf32, #tpu.memory_space<vmem>>, vector<8x32xf32>
    %cst_109 = arith.constant dense<0.000000e+00> : vector<8x32xf32>
    %153 = tpu.matmul %152, %7, %cst_109 {dimension_numbers = #tpu.dot_dimension_numbers<[1], [0], [0], [1], [0, 0, 1, 1], [], []>} : vector<8x32xf32>, vector<32x32xf32>, vector<8x32xf32> -> vector<8x32xf32>
    %cst_110 = arith.constant dense<0.000000e+00> : vector<8x32xf32>
    %154 = tpu.matmul %152, %9, %cst_110 {dimension_numbers = #tpu.dot_dimension_numbers<[1], [0], [0], [1], [0, 0, 1, 1], [], []>} : vector<8x32xf32>, vector<32x32xf32>, vector<8x32xf32> -> vector<8x32xf32>
    %cst_111 = arith.constant dense<0.000000e+00> : vector<8x32xf32>
    %155 = tpu.matmul %152, %11, %cst_111 {dimension_numbers = #tpu.dot_dimension_numbers<[1], [0], [0], [1], [0, 0, 1, 1], [], []>} : vector<8x32xf32>, vector<32x32xf32>, vector<8x32xf32> -> vector<8x32xf32>
    %156 = arith.addf %155, %5 : vector<8x32xf32>
    %c4 = arith.constant 4 : index
    %c0_112 = arith.constant 0 : index
    %c0_113 = arith.constant 0 : index
    %c0_114 = arith.constant 0 : index
    %157 = vector.load %arg2[%c4, %c0_112, %c0_113, %c0_114] : memref<8x3x8x32xf32, #tpu.memory_space<vmem>>, vector<1x1x8x32xf32>
    %158 = vector.shape_cast %157 : vector<1x1x8x32xf32> to vector<8x32xf32>
    %159 = arith.addf %158, %153 : vector<8x32xf32>
    %160 = arith.negf %159 : vector<8x32xf32>
    %161 = math.exp %160 : vector<8x32xf32>
    %cst_115 = arith.constant 1.000000e+00 : f32
    %162 = vector.broadcast %cst_115 : f32 to vector<8x32xf32>
    %163 = arith.addf %162, %161 : vector<8x32xf32>
    %164 = arith.divf %162, %163 : vector<8x32xf32>
    %c4_116 = arith.constant 4 : index
    %c1_117 = arith.constant 1 : index
    %c0_118 = arith.constant 0 : index
    %c0_119 = arith.constant 0 : index
    %165 = vector.load %arg2[%c4_116, %c1_117, %c0_118, %c0_119] : memref<8x3x8x32xf32, #tpu.memory_space<vmem>>, vector<1x1x8x32xf32>
    %166 = vector.shape_cast %165 : vector<1x1x8x32xf32> to vector<8x32xf32>
    %167 = arith.addf %166, %154 : vector<8x32xf32>
    %168 = arith.negf %167 : vector<8x32xf32>
    %169 = math.exp %168 : vector<8x32xf32>
    %cst_120 = arith.constant 1.000000e+00 : f32
    %170 = vector.broadcast %cst_120 : f32 to vector<8x32xf32>
    %171 = arith.addf %170, %169 : vector<8x32xf32>
    %172 = arith.divf %170, %171 : vector<8x32xf32>
    %c4_121 = arith.constant 4 : index
    %c2_122 = arith.constant 2 : index
    %c0_123 = arith.constant 0 : index
    %c0_124 = arith.constant 0 : index
    %173 = vector.load %arg2[%c4_121, %c2_122, %c0_123, %c0_124] : memref<8x3x8x32xf32, #tpu.memory_space<vmem>>, vector<1x1x8x32xf32>
    %174 = vector.shape_cast %173 : vector<1x1x8x32xf32> to vector<8x32xf32>
    %175 = arith.mulf %164, %156 : vector<8x32xf32>
    %176 = arith.addf %174, %175 : vector<8x32xf32>
    %177 = math.tanh %176 : vector<8x32xf32>
    %cst_125 = arith.constant 1.000000e+00 : f32
    %178 = vector.broadcast %cst_125 : f32 to vector<8x32xf32>
    %179 = arith.subf %178, %172 : vector<8x32xf32>
    %180 = arith.mulf %179, %177 : vector<8x32xf32>
    %181 = arith.mulf %172, %152 : vector<8x32xf32>
    %182 = arith.addf %180, %181 : vector<8x32xf32>
    %c0_126 = arith.constant 0 : index
    %c0_127 = arith.constant 0 : index
    %183 = vector.load %arg6[%c0_126, %c0_127] : memref<8x32xf32, #tpu.memory_space<vmem>>, vector<8x32xf32>
    tpu.vector_store %arg6[%c0_126, %c0_127], %182 {strides = array<i32>} : memref<8x32xf32, #tpu.memory_space<vmem>>, vector<8x32xf32>,
    %c4_128 = arith.constant 4 : index
    %c0_129 = arith.constant 0 : index
    %c0_130 = arith.constant 0 : index
    %184 = vector.load %arg5[%c4_128, %c0_129, %c0_130] : memref<8x8x32xf32, #tpu.memory_space<vmem>>, vector<1x8x32xf32>
    %185 = vector.shape_cast %184 : vector<1x8x32xf32> to vector<8x32xf32>
    %186 = vector.shape_cast %182 : vector<8x32xf32> to vector<1x8x32xf32>
    tpu.vector_store %arg5[%c4_128, %c0_129, %c0_130], %186 {strides = array<i32>} : memref<8x8x32xf32, #tpu.memory_space<vmem>>, vector<1x8x32xf32>,
    %c0_131 = arith.constant 0 : index
    %c0_132 = arith.constant 0 : index
    %187 = vector.load %arg6[%c0_131, %c0_132] : memref<8x32xf32, #tpu.memory_space<vmem>>, vector<8x32xf32>
    %cst_133 = arith.constant dense<0.000000e+00> : vector<8x32xf32>
    %188 = tpu.matmul %187, %7, %cst_133 {dimension_numbers = #tpu.dot_dimension_numbers<[1], [0], [0], [1], [0, 0, 1, 1], [], []>} : vector<8x32xf32>, vector<32x32xf32>, vector<8x32xf32> -> vector<8x32xf32>
    %cst_134 = arith.constant dense<0.000000e+00> : vector<8x32xf32>
    %189 = tpu.matmul %187, %9, %cst_134 {dimension_numbers = #tpu.dot_dimension_numbers<[1], [0], [0], [1], [0, 0, 1, 1], [], []>} : vector<8x32xf32>, vector<32x32xf32>, vector<8x32xf32> -> vector<8x32xf32>
    %cst_135 = arith.constant dense<0.000000e+00> : vector<8x32xf32>
    %190 = tpu.matmul %187, %11, %cst_135 {dimension_numbers = #tpu.dot_dimension_numbers<[1], [0], [0], [1], [0, 0, 1, 1], [], []>} : vector<8x32xf32>, vector<32x32xf32>, vector<8x32xf32> -> vector<8x32xf32>
    %191 = arith.addf %190, %5 : vector<8x32xf32>
    %c5 = arith.constant 5 : index
    %c0_136 = arith.constant 0 : index
    %c0_137 = arith.constant 0 : index
    %c0_138 = arith.constant 0 : index
    %192 = vector.load %arg2[%c5, %c0_136, %c0_137, %c0_138] : memref<8x3x8x32xf32, #tpu.memory_space<vmem>>, vector<1x1x8x32xf32>
    %193 = vector.shape_cast %192 : vector<1x1x8x32xf32> to vector<8x32xf32>
    %194 = arith.addf %193, %188 : vector<8x32xf32>
    %195 = arith.negf %194 : vector<8x32xf32>
    %196 = math.exp %195 : vector<8x32xf32>
    %cst_139 = arith.constant 1.000000e+00 : f32
    %197 = vector.broadcast %cst_139 : f32 to vector<8x32xf32>
    %198 = arith.addf %197, %196 : vector<8x32xf32>
    %199 = arith.divf %197, %198 : vector<8x32xf32>
    %c5_140 = arith.constant 5 : index
    %c1_141 = arith.constant 1 : index
    %c0_142 = arith.constant 0 : index
    %c0_143 = arith.constant 0 : index
    %200 = vector.load %arg2[%c5_140, %c1_141, %c0_142, %c0_143] : memref<8x3x8x32xf32, #tpu.memory_space<vmem>>, vector<1x1x8x32xf32>
    %201 = vector.shape_cast %200 : vector<1x1x8x32xf32> to vector<8x32xf32>
    %202 = arith.addf %201, %189 : vector<8x32xf32>
    %203 = arith.negf %202 : vector<8x32xf32>
    %204 = math.exp %203 : vector<8x32xf32>
    %cst_144 = arith.constant 1.000000e+00 : f32
    %205 = vector.broadcast %cst_144 : f32 to vector<8x32xf32>
    %206 = arith.addf %205, %204 : vector<8x32xf32>
    %207 = arith.divf %205, %206 : vector<8x32xf32>
    %c5_145 = arith.constant 5 : index
    %c2_146 = arith.constant 2 : index
    %c0_147 = arith.constant 0 : index
    %c0_148 = arith.constant 0 : index
    %208 = vector.load %arg2[%c5_145, %c2_146, %c0_147, %c0_148] : memref<8x3x8x32xf32, #tpu.memory_space<vmem>>, vector<1x1x8x32xf32>
    %209 = vector.shape_cast %208 : vector<1x1x8x32xf32> to vector<8x32xf32>
    %210 = arith.mulf %199, %191 : vector<8x32xf32>
    %211 = arith.addf %209, %210 : vector<8x32xf32>
    %212 = math.tanh %211 : vector<8x32xf32>
    %cst_149 = arith.constant 1.000000e+00 : f32
    %213 = vector.broadcast %cst_149 : f32 to vector<8x32xf32>
    %214 = arith.subf %213, %207 : vector<8x32xf32>
    %215 = arith.mulf %214, %212 : vector<8x32xf32>
    %216 = arith.mulf %207, %187 : vector<8x32xf32>
    %217 = arith.addf %215, %216 : vector<8x32xf32>
    %c0_150 = arith.constant 0 : index
    %c0_151 = arith.constant 0 : index
    %218 = vector.load %arg6[%c0_150, %c0_151] : memref<8x32xf32, #tpu.memory_space<vmem>>, vector<8x32xf32>
    tpu.vector_store %arg6[%c0_150, %c0_151], %217 {strides = array<i32>} : memref<8x32xf32, #tpu.memory_space<vmem>>, vector<8x32xf32>,
    %c5_152 = arith.constant 5 : index
    %c0_153 = arith.constant 0 : index
    %c0_154 = arith.constant 0 : index
    %219 = vector.load %arg5[%c5_152, %c0_153, %c0_154] : memref<8x8x32xf32, #tpu.memory_space<vmem>>, vector<1x8x32xf32>
    %220 = vector.shape_cast %219 : vector<1x8x32xf32> to vector<8x32xf32>
    %221 = vector.shape_cast %217 : vector<8x32xf32> to vector<1x8x32xf32>
    tpu.vector_store %arg5[%c5_152, %c0_153, %c0_154], %221 {strides = array<i32>} : memref<8x8x32xf32, #tpu.memory_space<vmem>>, vector<1x8x32xf32>,
    %c0_155 = arith.constant 0 : index
    %c0_156 = arith.constant 0 : index
    %222 = vector.load %arg6[%c0_155, %c0_156] : memref<8x32xf32, #tpu.memory_space<vmem>>, vector<8x32xf32>
    %cst_157 = arith.constant dense<0.000000e+00> : vector<8x32xf32>
    %223 = tpu.matmul %222, %7, %cst_157 {dimension_numbers = #tpu.dot_dimension_numbers<[1], [0], [0], [1], [0, 0, 1, 1], [], []>} : vector<8x32xf32>, vector<32x32xf32>, vector<8x32xf32> -> vector<8x32xf32>
    %cst_158 = arith.constant dense<0.000000e+00> : vector<8x32xf32>
    %224 = tpu.matmul %222, %9, %cst_158 {dimension_numbers = #tpu.dot_dimension_numbers<[1], [0], [0], [1], [0, 0, 1, 1], [], []>} : vector<8x32xf32>, vector<32x32xf32>, vector<8x32xf32> -> vector<8x32xf32>
    %cst_159 = arith.constant dense<0.000000e+00> : vector<8x32xf32>
    %225 = tpu.matmul %222, %11, %cst_159 {dimension_numbers = #tpu.dot_dimension_numbers<[1], [0], [0], [1], [0, 0, 1, 1], [], []>} : vector<8x32xf32>, vector<32x32xf32>, vector<8x32xf32> -> vector<8x32xf32>
    %226 = arith.addf %225, %5 : vector<8x32xf32>
    %c6 = arith.constant 6 : index
    %c0_160 = arith.constant 0 : index
    %c0_161 = arith.constant 0 : index
    %c0_162 = arith.constant 0 : index
    %227 = vector.load %arg2[%c6, %c0_160, %c0_161, %c0_162] : memref<8x3x8x32xf32, #tpu.memory_space<vmem>>, vector<1x1x8x32xf32>
    %228 = vector.shape_cast %227 : vector<1x1x8x32xf32> to vector<8x32xf32>
    %229 = arith.addf %228, %223 : vector<8x32xf32>
    %230 = arith.negf %229 : vector<8x32xf32>
    %231 = math.exp %230 : vector<8x32xf32>
    %cst_163 = arith.constant 1.000000e+00 : f32
    %232 = vector.broadcast %cst_163 : f32 to vector<8x32xf32>
    %233 = arith.addf %232, %231 : vector<8x32xf32>
    %234 = arith.divf %232, %233 : vector<8x32xf32>
    %c6_164 = arith.constant 6 : index
    %c1_165 = arith.constant 1 : index
    %c0_166 = arith.constant 0 : index
    %c0_167 = arith.constant 0 : index
    %235 = vector.load %arg2[%c6_164, %c1_165, %c0_166, %c0_167] : memref<8x3x8x32xf32, #tpu.memory_space<vmem>>, vector<1x1x8x32xf32>
    %236 = vector.shape_cast %235 : vector<1x1x8x32xf32> to vector<8x32xf32>
    %237 = arith.addf %236, %224 : vector<8x32xf32>
    %238 = arith.negf %237 : vector<8x32xf32>
    %239 = math.exp %238 : vector<8x32xf32>
    %cst_168 = arith.constant 1.000000e+00 : f32
    %240 = vector.broadcast %cst_168 : f32 to vector<8x32xf32>
    %241 = arith.addf %240, %239 : vector<8x32xf32>
    %242 = arith.divf %240, %241 : vector<8x32xf32>
    %c6_169 = arith.constant 6 : index
    %c2_170 = arith.constant 2 : index
    %c0_171 = arith.constant 0 : index
    %c0_172 = arith.constant 0 : index
    %243 = vector.load %arg2[%c6_169, %c2_170, %c0_171, %c0_172] : memref<8x3x8x32xf32, #tpu.memory_space<vmem>>, vector<1x1x8x32xf32>
    %244 = vector.shape_cast %243 : vector<1x1x8x32xf32> to vector<8x32xf32>
    %245 = arith.mulf %234, %226 : vector<8x32xf32>
    %246 = arith.addf %244, %245 : vector<8x32xf32>
    %247 = math.tanh %246 : vector<8x32xf32>
    %cst_173 = arith.constant 1.000000e+00 : f32
    %248 = vector.broadcast %cst_173 : f32 to vector<8x32xf32>
    %249 = arith.subf %248, %242 : vector<8x32xf32>
    %250 = arith.mulf %249, %247 : vector<8x32xf32>
    %251 = arith.mulf %242, %222 : vector<8x32xf32>
    %252 = arith.addf %250, %251 : vector<8x32xf32>
    %c0_174 = arith.constant 0 : index
    %c0_175 = arith.constant 0 : index
    %253 = vector.load %arg6[%c0_174, %c0_175] : memref<8x32xf32, #tpu.memory_space<vmem>>, vector<8x32xf32>
    tpu.vector_store %arg6[%c0_174, %c0_175], %252 {strides = array<i32>} : memref<8x32xf32, #tpu.memory_space<vmem>>, vector<8x32xf32>,
    %c6_176 = arith.constant 6 : index
    %c0_177 = arith.constant 0 : index
    %c0_178 = arith.constant 0 : index
    %254 = vector.load %arg5[%c6_176, %c0_177, %c0_178] : memref<8x8x32xf32, #tpu.memory_space<vmem>>, vector<1x8x32xf32>
    %255 = vector.shape_cast %254 : vector<1x8x32xf32> to vector<8x32xf32>
    %256 = vector.shape_cast %252 : vector<8x32xf32> to vector<1x8x32xf32>
    tpu.vector_store %arg5[%c6_176, %c0_177, %c0_178], %256 {strides = array<i32>} : memref<8x8x32xf32, #tpu.memory_space<vmem>>, vector<1x8x32xf32>,
    %c0_179 = arith.constant 0 : index
    %c0_180 = arith.constant 0 : index
    %257 = vector.load %arg6[%c0_179, %c0_180] : memref<8x32xf32, #tpu.memory_space<vmem>>, vector<8x32xf32>
    %cst_181 = arith.constant dense<0.000000e+00> : vector<8x32xf32>
    %258 = tpu.matmul %257, %7, %cst_181 {dimension_numbers = #tpu.dot_dimension_numbers<[1], [0], [0], [1], [0, 0, 1, 1], [], []>} : vector<8x32xf32>, vector<32x32xf32>, vector<8x32xf32> -> vector<8x32xf32>
    %cst_182 = arith.constant dense<0.000000e+00> : vector<8x32xf32>
    %259 = tpu.matmul %257, %9, %cst_182 {dimension_numbers = #tpu.dot_dimension_numbers<[1], [0], [0], [1], [0, 0, 1, 1], [], []>} : vector<8x32xf32>, vector<32x32xf32>, vector<8x32xf32> -> vector<8x32xf32>
    %cst_183 = arith.constant dense<0.000000e+00> : vector<8x32xf32>
    %260 = tpu.matmul %257, %11, %cst_183 {dimension_numbers = #tpu.dot_dimension_numbers<[1], [0], [0], [1], [0, 0, 1, 1], [], []>} : vector<8x32xf32>, vector<32x32xf32>, vector<8x32xf32> -> vector<8x32xf32>
    %261 = arith.addf %260, %5 : vector<8x32xf32>
    %c7 = arith.constant 7 : index
    %c0_184 = arith.constant 0 : index
    %c0_185 = arith.constant 0 : index
    %c0_186 = arith.constant 0 : index
    %262 = vector.load %arg2[%c7, %c0_184, %c0_185, %c0_186] : memref<8x3x8x32xf32, #tpu.memory_space<vmem>>, vector<1x1x8x32xf32>
    %263 = vector.shape_cast %262 : vector<1x1x8x32xf32> to vector<8x32xf32>
    %264 = arith.addf %263, %258 : vector<8x32xf32>
    %265 = arith.negf %264 : vector<8x32xf32>
    %266 = math.exp %265 : vector<8x32xf32>
    %cst_187 = arith.constant 1.000000e+00 : f32
    %267 = vector.broadcast %cst_187 : f32 to vector<8x32xf32>
    %268 = arith.addf %267, %266 : vector<8x32xf32>
    %269 = arith.divf %267, %268 : vector<8x32xf32>
    %c7_188 = arith.constant 7 : index
    %c1_189 = arith.constant 1 : index
    %c0_190 = arith.constant 0 : index
    %c0_191 = arith.constant 0 : index
    %270 = vector.load %arg2[%c7_188, %c1_189, %c0_190, %c0_191] : memref<8x3x8x32xf32, #tpu.memory_space<vmem>>, vector<1x1x8x32xf32>
    %271 = vector.shape_cast %270 : vector<1x1x8x32xf32> to vector<8x32xf32>
    %272 = arith.addf %271, %259 : vector<8x32xf32>
    %273 = arith.negf %272 : vector<8x32xf32>
    %274 = math.exp %273 : vector<8x32xf32>
    %cst_192 = arith.constant 1.000000e+00 : f32
    %275 = vector.broadcast %cst_192 : f32 to vector<8x32xf32>
    %276 = arith.addf %275, %274 : vector<8x32xf32>
    %277 = arith.divf %275, %276 : vector<8x32xf32>
    %c7_193 = arith.constant 7 : index
    %c2_194 = arith.constant 2 : index
    %c0_195 = arith.constant 0 : index
    %c0_196 = arith.constant 0 : index
    %278 = vector.load %arg2[%c7_193, %c2_194, %c0_195, %c0_196] : memref<8x3x8x32xf32, #tpu.memory_space<vmem>>, vector<1x1x8x32xf32>
    %279 = vector.shape_cast %278 : vector<1x1x8x32xf32> to vector<8x32xf32>
    %280 = arith.mulf %269, %261 : vector<8x32xf32>
    %281 = arith.addf %279, %280 : vector<8x32xf32>
    %282 = math.tanh %281 : vector<8x32xf32>
    %cst_197 = arith.constant 1.000000e+00 : f32
    %283 = vector.broadcast %cst_197 : f32 to vector<8x32xf32>
    %284 = arith.subf %283, %277 : vector<8x32xf32>
    %285 = arith.mulf %284, %282 : vector<8x32xf32>
    %286 = arith.mulf %277, %257 : vector<8x32xf32>
    %287 = arith.addf %285, %286 : vector<8x32xf32>
    %c0_198 = arith.constant 0 : index
    %c0_199 = arith.constant 0 : index
    %288 = vector.load %arg6[%c0_198, %c0_199] : memref<8x32xf32, #tpu.memory_space<vmem>>, vector<8x32xf32>
    tpu.vector_store %arg6[%c0_198, %c0_199], %287 {strides = array<i32>} : memref<8x32xf32, #tpu.memory_space<vmem>>, vector<8x32xf32>,
    %c7_200 = arith.constant 7 : index
    %c0_201 = arith.constant 0 : index
    %c0_202 = arith.constant 0 : index
    %289 = vector.load %arg5[%c7_200, %c0_201, %c0_202] : memref<8x8x32xf32, #tpu.memory_space<vmem>>, vector<1x8x32xf32>
    %290 = vector.shape_cast %289 : vector<1x8x32xf32> to vector<8x32xf32>
    %291 = vector.shape_cast %287 : vector<8x32xf32> to vector<1x8x32xf32>
    tpu.vector_store %arg5[%c7_200, %c0_201, %c0_202], %291 {strides = array<i32>} : memref<8x8x32xf32, #tpu.memory_space<vmem>>, vector<1x8x32xf32>,
    return
  }
  func.func @transform_0(%arg0: i32, %arg1: i32) -> (i32, i32, i32, i32) {
    %c0_i32 = arith.constant 0 : i32
    %c0_i32_0 = arith.constant 0 : i32
    %c0_i32_1 = arith.constant 0 : i32
    return %arg1, %c0_i32, %arg0, %c0_i32_0 : i32, i32, i32, i32
  }
  func.func @transform_1(%arg0: i32, %arg1: i32) -> (i32, i32, i32) {
    %c0_i32 = arith.constant 0 : i32
    %c0_i32_0 = arith.constant 0 : i32
    %c0_i32_1 = arith.constant 0 : i32
    %c0_i32_2 = arith.constant 0 : i32
    return %c0_i32, %c0_i32_0, %c0_i32_1 : i32, i32, i32
  }
  func.func @transform_2(%arg0: i32, %arg1: i32) -> (i32, i32) {
    %c0_i32 = arith.constant 0 : i32
    %c0_i32_0 = arith.constant 0 : i32
    %c0_i32_1 = arith.constant 0 : i32
    return %c0_i32, %c0_i32_0 : i32, i32
  }
  func.func @transform_3(%arg0: i32, %arg1: i32) -> (i32, i32, i32) {
    %c0_i32 = arith.constant 0 : i32
    %c0_i32_0 = arith.constant 0 : i32
    return %arg1, %arg0, %c0_i32 : i32, i32, i32
  }
}

module attributes {stable_mosaic.version = 11 : i64} {
  func.func @_gru_recurrent_kernel(%arg0: i32, %arg1: i32, %arg2: memref<8x3x8x32xf32, #tpu.memory_space<vmem>>, %arg3: memref<3x32x32xf32, #tpu.memory_space<vmem>>, %arg4: memref<1x32xf32, #tpu.memory_space<vmem>>, %arg5: memref<8x8x32xf32, #tpu.memory_space<vmem>>, %arg6: memref<8x32xf32, #tpu.memory_space<vmem>>) attributes {dimension_semantics = [#tpu.dimension_semantics<parallel>, #tpu.dimension_semantics<arbitrary>], iteration_bounds = array<i64: 1, 1>, scalar_prefetch = 0 : i64, scratch_operands = 1 : i64, tpu.core_type = #tpu.core_type<tc>, window_params = [{transform_indices = @transform_0, window_bounds = array<i64: 8, 3, 8, 32>}, {pipeline_mode = #tpu.pipeline_mode<synchronous>, transform_indices = @transform_1, window_bounds = array<i64: 3, 32, 32>}, {pipeline_mode = #tpu.pipeline_mode<synchronous>, transform_indices = @transform_2, window_bounds = array<i64: 1, 32>}, {transform_indices = @transform_3, window_bounds = array<i64: 8, 8, 32>}]} {
    %c0_i32 = arith.constant 0 : i32
    %0 = arith.cmpi eq, %arg1, %c0_i32 : i32
    %1 = arith.extui %0 : i1 to i32
    %c0_i32_0 = arith.constant 0 : i32
    %2 = arith.cmpi ne, %1, %c0_i32_0 : i32
    scf.if %2 {
      %cst_203 = arith.constant 0.000000e+00 : f32
      %292 = vector.broadcast %cst_203 : f32 to vector<8x32xf32>
      %c0_204 = arith.constant 0 : index
      %c0_205 = arith.constant 0 : index
      %293 = vector.load %arg6[%c0_204, %c0_205] : memref<8x32xf32, #tpu.memory_space<vmem>>, vector<8x32xf32>
      tpu.vector_store %arg6[%c0_204, %c0_205], %292 {strides = array<i32>} : memref<8x32xf32, #tpu.memory_space<vmem>>, vector<8x32xf32>,
    } else {
    }
    %c0 = arith.constant 0 : index
    %c0_1 = arith.constant 0 : index
    %3 = vector.load %arg4[%c0, %c0_1] : memref<1x32xf32, #tpu.memory_space<vmem>>, vector<1x32xf32>
    %4 = vector.shape_cast %3 : vector<1x32xf32> to vector<1x32xf32>
    %5 = vector.broadcast %4 : vector<1x32xf32> to vector<8x32xf32>
    %c0_2 = arith.constant 0 : index
    %c0_3 = arith.constant 0 : index
    %c0_4 = arith.constant 0 : index
    %6 = vector.load %arg3[%c0_2, %c0_3, %c0_4] : memref<3x32x32xf32, #tpu.memory_space<vmem>>, vector<1x32x32xf32>
    %7 = vector.shape_cast %6 : vector<1x32x32xf32> to vector<32x32xf32>
    %c1 = arith.constant 1 : index
    %c0_5 = arith.constant 0 : index
    %c0_6 = arith.constant 0 : index
    %8 = vector.load %arg3[%c1, %c0_5, %c0_6] : memref<3x32x32xf32, #tpu.memory_space<vmem>>, vector<1x32x32xf32>
    %9 = vector.shape_cast %8 : vector<1x32x32xf32> to vector<32x32xf32>
    %c2 = arith.constant 2 : index
    %c0_7 = arith.constant 0 : index
    %c0_8 = arith.constant 0 : index
    %10 = vector.load %arg3[%c2, %c0_7, %c0_8] : memref<3x32x32xf32, #tpu.memory_space<vmem>>, vector<1x32x32xf32>
    %11 = vector.shape_cast %10 : vector<1x32x32xf32> to vector<32x32xf32>
    %c0_9 = arith.constant 0 : index
    %c0_10 = arith.constant 0 : index
    %12 = vector.load %arg6[%c0_9, %c0_10] : memref<8x32xf32, #tpu.memory_space<vmem>>, vector<8x32xf32>
    %cst = arith.constant dense<0.000000e+00> : vector<8x32xf32>
    %13 = tpu.matmul %12, %7, %cst {dimension_numbers = #tpu.dot_dimension_numbers<[1], [0], [0], [1], [0, 0, 1, 1], [], []>} : vector<8x32xf32>, vector<32x32xf32>, vector<8x32xf32> -> vector<8x32xf32>
    %cst_11 = arith.constant dense<0.000000e+00> : vector<8x32xf32>
    %14 = tpu.matmul %12, %9, %cst_11 {dimension_numbers = #tpu.dot_dimension_numbers<[1], [0], [0], [1], [0, 0, 1, 1], [], []>} : vector<8x32xf32>, vector<32x32xf32>, vector<8x32xf32> -> vector<8x32xf32>
    %cst_12 = arith.constant dense<0.000000e+00> : vector<8x32xf32>
    %15 = tpu.matmul %12, %11, %cst_12 {dimension_numbers = #tpu.dot_dimension_numbers<[1], [0], [0], [1], [0, 0, 1, 1], [], []>} : vector<8x32xf32>, vector<32x32xf32>, vector<8x32xf32> -> vector<8x32xf32>
    %16 = arith.addf %15, %5 : vector<8x32xf32>
    %c0_13 = arith.constant 0 : index
    %c0_14 = arith.constant 0 : index
    %c0_15 = arith.constant 0 : index
    %c0_16 = arith.constant 0 : index
    %17 = vector.load %arg2[%c0_13, %c0_14, %c0_15, %c0_16] : memref<8x3x8x32xf32, #tpu.memory_space<vmem>>, vector<1x1x8x32xf32>
    %18 = vector.shape_cast %17 : vector<1x1x8x32xf32> to vector<8x32xf32>
    %19 = arith.addf %18, %13 : vector<8x32xf32>
    %20 = arith.negf %19 : vector<8x32xf32>
    %21 = math.exp %20 : vector<8x32xf32>
    %cst_17 = arith.constant 1.000000e+00 : f32
    %22 = vector.broadcast %cst_17 : f32 to vector<8x32xf32>
    %23 = arith.addf %22, %21 : vector<8x32xf32>
    %24 = arith.divf %22, %23 : vector<8x32xf32>
    %c0_18 = arith.constant 0 : index
    %c1_19 = arith.constant 1 : index
    %c0_20 = arith.constant 0 : index
    %c0_21 = arith.constant 0 : index
    %25 = vector.load %arg2[%c0_18, %c1_19, %c0_20, %c0_21] : memref<8x3x8x32xf32, #tpu.memory_space<vmem>>, vector<1x1x8x32xf32>
    %26 = vector.shape_cast %25 : vector<1x1x8x32xf32> to vector<8x32xf32>
    %27 = arith.addf %26, %14 : vector<8x32xf32>
    %28 = arith.negf %27 : vector<8x32xf32>
    %29 = math.exp %28 : vector<8x32xf32>
    %cst_22 = arith.constant 1.000000e+00 : f32
    %30 = vector.broadcast %cst_22 : f32 to vector<8x32xf32>
    %31 = arith.addf %30, %29 : vector<8x32xf32>
    %32 = arith.divf %30, %31 : vector<8x32xf32>
    %c0_23 = arith.constant 0 : index
    %c2_24 = arith.constant 2 : index
    %c0_25 = arith.constant 0 : index
    %c0_26 = arith.constant 0 : index
    %33 = vector.load %arg2[%c0_23, %c2_24, %c0_25, %c0_26] : memref<8x3x8x32xf32, #tpu.memory_space<vmem>>, vector<1x1x8x32xf32>
    %34 = vector.shape_cast %33 : vector<1x1x8x32xf32> to vector<8x32xf32>
    %35 = arith.mulf %24, %16 : vector<8x32xf32>
    %36 = arith.addf %34, %35 : vector<8x32xf32>
    %37 = math.tanh %36 : vector<8x32xf32>
    %cst_27 = arith.constant 1.000000e+00 : f32
    %38 = vector.broadcast %cst_27 : f32 to vector<8x32xf32>
    %39 = arith.subf %38, %32 : vector<8x32xf32>
    %40 = arith.mulf %39, %37 : vector<8x32xf32>
    %41 = arith.mulf %32, %12 : vector<8x32xf32>
    %42 = arith.addf %40, %41 : vector<8x32xf32>
    %c0_28 = arith.constant 0 : index
    %c0_29 = arith.constant 0 : index
    %43 = vector.load %arg6[%c0_28, %c0_29] : memref<8x32xf32, #tpu.memory_space<vmem>>, vector<8x32xf32>
    tpu.vector_store %arg6[%c0_28, %c0_29], %42 {strides = array<i32>} : memref<8x32xf32, #tpu.memory_space<vmem>>, vector<8x32xf32>,
    %c0_30 = arith.constant 0 : index
    %c0_31 = arith.constant 0 : index
    %c0_32 = arith.constant 0 : index
    %44 = vector.load %arg5[%c0_30, %c0_31, %c0_32] : memref<8x8x32xf32, #tpu.memory_space<vmem>>, vector<1x8x32xf32>
    %45 = vector.shape_cast %44 : vector<1x8x32xf32> to vector<8x32xf32>
    %46 = vector.shape_cast %42 : vector<8x32xf32> to vector<1x8x32xf32>
    tpu.vector_store %arg5[%c0_30, %c0_31, %c0_32], %46 {strides = array<i32>} : memref<8x8x32xf32, #tpu.memory_space<vmem>>, vector<1x8x32xf32>,
    %c0_33 = arith.constant 0 : index
    %c0_34 = arith.constant 0 : index
    %47 = vector.load %arg6[%c0_33, %c0_34] : memref<8x32xf32, #tpu.memory_space<vmem>>, vector<8x32xf32>
    %cst_35 = arith.constant dense<0.000000e+00> : vector<8x32xf32>
    %48 = tpu.matmul %47, %7, %cst_35 {dimension_numbers = #tpu.dot_dimension_numbers<[1], [0], [0], [1], [0, 0, 1, 1], [], []>} : vector<8x32xf32>, vector<32x32xf32>, vector<8x32xf32> -> vector<8x32xf32>
    %cst_36 = arith.constant dense<0.000000e+00> : vector<8x32xf32>
    %49 = tpu.matmul %47, %9, %cst_36 {dimension_numbers = #tpu.dot_dimension_numbers<[1], [0], [0], [1], [0, 0, 1, 1], [], []>} : vector<8x32xf32>, vector<32x32xf32>, vector<8x32xf32> -> vector<8x32xf32>
    %cst_37 = arith.constant dense<0.000000e+00> : vector<8x32xf32>
    %50 = tpu.matmul %47, %11, %cst_37 {dimension_numbers = #tpu.dot_dimension_numbers<[1], [0], [0], [1], [0, 0, 1, 1], [], []>} : vector<8x32xf32>, vector<32x32xf32>, vector<8x32xf32> -> vector<8x32xf32>
    %51 = arith.addf %50, %5 : vector<8x32xf32>
    %c1_38 = arith.constant 1 : index
    %c0_39 = arith.constant 0 : index
    %c0_40 = arith.constant 0 : index
    %c0_41 = arith.constant 0 : index
    %52 = vector.load %arg2[%c1_38, %c0_39, %c0_40, %c0_41] : memref<8x3x8x32xf32, #tpu.memory_space<vmem>>, vector<1x1x8x32xf32>
    %53 = vector.shape_cast %52 : vector<1x1x8x32xf32> to vector<8x32xf32>
    %54 = arith.addf %53, %48 : vector<8x32xf32>
    %55 = arith.negf %54 : vector<8x32xf32>
    %56 = math.exp %55 : vector<8x32xf32>
    %cst_42 = arith.constant 1.000000e+00 : f32
    %57 = vector.broadcast %cst_42 : f32 to vector<8x32xf32>
    %58 = arith.addf %57, %56 : vector<8x32xf32>
    %59 = arith.divf %57, %58 : vector<8x32xf32>
    %c1_43 = arith.constant 1 : index
    %c1_44 = arith.constant 1 : index
    %c0_45 = arith.constant 0 : index
    %c0_46 = arith.constant 0 : index
    %60 = vector.load %arg2[%c1_43, %c1_44, %c0_45, %c0_46] : memref<8x3x8x32xf32, #tpu.memory_space<vmem>>, vector<1x1x8x32xf32>
    %61 = vector.shape_cast %60 : vector<1x1x8x32xf32> to vector<8x32xf32>
    %62 = arith.addf %61, %49 : vector<8x32xf32>
    %63 = arith.negf %62 : vector<8x32xf32>
    %64 = math.exp %63 : vector<8x32xf32>
    %cst_47 = arith.constant 1.000000e+00 : f32
    %65 = vector.broadcast %cst_47 : f32 to vector<8x32xf32>
    %66 = arith.addf %65, %64 : vector<8x32xf32>
    %67 = arith.divf %65, %66 : vector<8x32xf32>
    %c1_48 = arith.constant 1 : index
    %c2_49 = arith.constant 2 : index
    %c0_50 = arith.constant 0 : index
    %c0_51 = arith.constant 0 : index
    %68 = vector.load %arg2[%c1_48, %c2_49, %c0_50, %c0_51] : memref<8x3x8x32xf32, #tpu.memory_space<vmem>>, vector<1x1x8x32xf32>
    %69 = vector.shape_cast %68 : vector<1x1x8x32xf32> to vector<8x32xf32>
    %70 = arith.mulf %59, %51 : vector<8x32xf32>
    %71 = arith.addf %69, %70 : vector<8x32xf32>
    %72 = math.tanh %71 : vector<8x32xf32>
    %cst_52 = arith.constant 1.000000e+00 : f32
    %73 = vector.broadcast %cst_52 : f32 to vector<8x32xf32>
    %74 = arith.subf %73, %67 : vector<8x32xf32>
    %75 = arith.mulf %74, %72 : vector<8x32xf32>
    %76 = arith.mulf %67, %47 : vector<8x32xf32>
    %77 = arith.addf %75, %76 : vector<8x32xf32>
    %c0_53 = arith.constant 0 : index
    %c0_54 = arith.constant 0 : index
    %78 = vector.load %arg6[%c0_53, %c0_54] : memref<8x32xf32, #tpu.memory_space<vmem>>, vector<8x32xf32>
    tpu.vector_store %arg6[%c0_53, %c0_54], %77 {strides = array<i32>} : memref<8x32xf32, #tpu.memory_space<vmem>>, vector<8x32xf32>,
    %c1_55 = arith.constant 1 : index
    %c0_56 = arith.constant 0 : index
    %c0_57 = arith.constant 0 : index
    %79 = vector.load %arg5[%c1_55, %c0_56, %c0_57] : memref<8x8x32xf32, #tpu.memory_space<vmem>>, vector<1x8x32xf32>
    %80 = vector.shape_cast %79 : vector<1x8x32xf32> to vector<8x32xf32>
    %81 = vector.shape_cast %77 : vector<8x32xf32> to vector<1x8x32xf32>
    tpu.vector_store %arg5[%c1_55, %c0_56, %c0_57], %81 {strides = array<i32>} : memref<8x8x32xf32, #tpu.memory_space<vmem>>, vector<1x8x32xf32>,
    %c0_58 = arith.constant 0 : index
    %c0_59 = arith.constant 0 : index
    %82 = vector.load %arg6[%c0_58, %c0_59] : memref<8x32xf32, #tpu.memory_space<vmem>>, vector<8x32xf32>
    %cst_60 = arith.constant dense<0.000000e+00> : vector<8x32xf32>
    %83 = tpu.matmul %82, %7, %cst_60 {dimension_numbers = #tpu.dot_dimension_numbers<[1], [0], [0], [1], [0, 0, 1, 1], [], []>} : vector<8x32xf32>, vector<32x32xf32>, vector<8x32xf32> -> vector<8x32xf32>
    %cst_61 = arith.constant dense<0.000000e+00> : vector<8x32xf32>
    %84 = tpu.matmul %82, %9, %cst_61 {dimension_numbers = #tpu.dot_dimension_numbers<[1], [0], [0], [1], [0, 0, 1, 1], [], []>} : vector<8x32xf32>, vector<32x32xf32>, vector<8x32xf32> -> vector<8x32xf32>
    %cst_62 = arith.constant dense<0.000000e+00> : vector<8x32xf32>
    %85 = tpu.matmul %82, %11, %cst_62 {dimension_numbers = #tpu.dot_dimension_numbers<[1], [0], [0], [1], [0, 0, 1, 1], [], []>} : vector<8x32xf32>, vector<32x32xf32>, vector<8x32xf32> -> vector<8x32xf32>
    %86 = arith.addf %85, %5 : vector<8x32xf32>
    %c2_63 = arith.constant 2 : index
    %c0_64 = arith.constant 0 : index
    %c0_65 = arith.constant 0 : index
    %c0_66 = arith.constant 0 : index
    %87 = vector.load %arg2[%c2_63, %c0_64, %c0_65, %c0_66] : memref<8x3x8x32xf32, #tpu.memory_space<vmem>>, vector<1x1x8x32xf32>
    %88 = vector.shape_cast %87 : vector<1x1x8x32xf32> to vector<8x32xf32>
    %89 = arith.addf %88, %83 : vector<8x32xf32>
    %90 = arith.negf %89 : vector<8x32xf32>
    %91 = math.exp %90 : vector<8x32xf32>
    %cst_67 = arith.constant 1.000000e+00 : f32
    %92 = vector.broadcast %cst_67 : f32 to vector<8x32xf32>
    %93 = arith.addf %92, %91 : vector<8x32xf32>
    %94 = arith.divf %92, %93 : vector<8x32xf32>
    %c2_68 = arith.constant 2 : index
    %c1_69 = arith.constant 1 : index
    %c0_70 = arith.constant 0 : index
    %c0_71 = arith.constant 0 : index
    %95 = vector.load %arg2[%c2_68, %c1_69, %c0_70, %c0_71] : memref<8x3x8x32xf32, #tpu.memory_space<vmem>>, vector<1x1x8x32xf32>
    %96 = vector.shape_cast %95 : vector<1x1x8x32xf32> to vector<8x32xf32>
    %97 = arith.addf %96, %84 : vector<8x32xf32>
    %98 = arith.negf %97 : vector<8x32xf32>
    %99 = math.exp %98 : vector<8x32xf32>
    %cst_72 = arith.constant 1.000000e+00 : f32
    %100 = vector.broadcast %cst_72 : f32 to vector<8x32xf32>
    %101 = arith.addf %100, %99 : vector<8x32xf32>
    %102 = arith.divf %100, %101 : vector<8x32xf32>
    %c2_73 = arith.constant 2 : index
    %c2_74 = arith.constant 2 : index
    %c0_75 = arith.constant 0 : index
    %c0_76 = arith.constant 0 : index
    %103 = vector.load %arg2[%c2_73, %c2_74, %c0_75, %c0_76] : memref<8x3x8x32xf32, #tpu.memory_space<vmem>>, vector<1x1x8x32xf32>
    %104 = vector.shape_cast %103 : vector<1x1x8x32xf32> to vector<8x32xf32>
    %105 = arith.mulf %94, %86 : vector<8x32xf32>
    %106 = arith.addf %104, %105 : vector<8x32xf32>
    %107 = math.tanh %106 : vector<8x32xf32>
    %cst_77 = arith.constant 1.000000e+00 : f32
    %108 = vector.broadcast %cst_77 : f32 to vector<8x32xf32>
    %109 = arith.subf %108, %102 : vector<8x32xf32>
    %110 = arith.mulf %109, %107 : vector<8x32xf32>
    %111 = arith.mulf %102, %82 : vector<8x32xf32>
    %112 = arith.addf %110, %111 : vector<8x32xf32>
    %c0_78 = arith.constant 0 : index
    %c0_79 = arith.constant 0 : index
    %113 = vector.load %arg6[%c0_78, %c0_79] : memref<8x32xf32, #tpu.memory_space<vmem>>, vector<8x32xf32>
    tpu.vector_store %arg6[%c0_78, %c0_79], %112 {strides = array<i32>} : memref<8x32xf32, #tpu.memory_space<vmem>>, vector<8x32xf32>,
    %c2_80 = arith.constant 2 : index
    %c0_81 = arith.constant 0 : index
    %c0_82 = arith.constant 0 : index
    %114 = vector.load %arg5[%c2_80, %c0_81, %c0_82] : memref<8x8x32xf32, #tpu.memory_space<vmem>>, vector<1x8x32xf32>
    %115 = vector.shape_cast %114 : vector<1x8x32xf32> to vector<8x32xf32>
    %116 = vector.shape_cast %112 : vector<8x32xf32> to vector<1x8x32xf32>
    tpu.vector_store %arg5[%c2_80, %c0_81, %c0_82], %116 {strides = array<i32>} : memref<8x8x32xf32, #tpu.memory_space<vmem>>, vector<1x8x32xf32>,
    %c0_83 = arith.constant 0 : index
    %c0_84 = arith.constant 0 : index
    %117 = vector.load %arg6[%c0_83, %c0_84] : memref<8x32xf32, #tpu.memory_space<vmem>>, vector<8x32xf32>
    %cst_85 = arith.constant dense<0.000000e+00> : vector<8x32xf32>
    %118 = tpu.matmul %117, %7, %cst_85 {dimension_numbers = #tpu.dot_dimension_numbers<[1], [0], [0], [1], [0, 0, 1, 1], [], []>} : vector<8x32xf32>, vector<32x32xf32>, vector<8x32xf32> -> vector<8x32xf32>
    %cst_86 = arith.constant dense<0.000000e+00> : vector<8x32xf32>
    %119 = tpu.matmul %117, %9, %cst_86 {dimension_numbers = #tpu.dot_dimension_numbers<[1], [0], [0], [1], [0, 0, 1, 1], [], []>} : vector<8x32xf32>, vector<32x32xf32>, vector<8x32xf32> -> vector<8x32xf32>
    %cst_87 = arith.constant dense<0.000000e+00> : vector<8x32xf32>
    %120 = tpu.matmul %117, %11, %cst_87 {dimension_numbers = #tpu.dot_dimension_numbers<[1], [0], [0], [1], [0, 0, 1, 1], [], []>} : vector<8x32xf32>, vector<32x32xf32>, vector<8x32xf32> -> vector<8x32xf32>
    %121 = arith.addf %120, %5 : vector<8x32xf32>
    %c3 = arith.constant 3 : index
    %c0_88 = arith.constant 0 : index
    %c0_89 = arith.constant 0 : index
    %c0_90 = arith.constant 0 : index
    %122 = vector.load %arg2[%c3, %c0_88, %c0_89, %c0_90] : memref<8x3x8x32xf32, #tpu.memory_space<vmem>>, vector<1x1x8x32xf32>
    %123 = vector.shape_cast %122 : vector<1x1x8x32xf32> to vector<8x32xf32>
    %124 = arith.addf %123, %118 : vector<8x32xf32>
    %125 = arith.negf %124 : vector<8x32xf32>
    %126 = math.exp %125 : vector<8x32xf32>
    %cst_91 = arith.constant 1.000000e+00 : f32
    %127 = vector.broadcast %cst_91 : f32 to vector<8x32xf32>
    %128 = arith.addf %127, %126 : vector<8x32xf32>
    %129 = arith.divf %127, %128 : vector<8x32xf32>
    %c3_92 = arith.constant 3 : index
    %c1_93 = arith.constant 1 : index
    %c0_94 = arith.constant 0 : index
    %c0_95 = arith.constant 0 : index
    %130 = vector.load %arg2[%c3_92, %c1_93, %c0_94, %c0_95] : memref<8x3x8x32xf32, #tpu.memory_space<vmem>>, vector<1x1x8x32xf32>
    %131 = vector.shape_cast %130 : vector<1x1x8x32xf32> to vector<8x32xf32>
    %132 = arith.addf %131, %119 : vector<8x32xf32>
    %133 = arith.negf %132 : vector<8x32xf32>
    %134 = math.exp %133 : vector<8x32xf32>
    %cst_96 = arith.constant 1.000000e+00 : f32
    %135 = vector.broadcast %cst_96 : f32 to vector<8x32xf32>
    %136 = arith.addf %135, %134 : vector<8x32xf32>
    %137 = arith.divf %135, %136 : vector<8x32xf32>
    %c3_97 = arith.constant 3 : index
    %c2_98 = arith.constant 2 : index
    %c0_99 = arith.constant 0 : index
    %c0_100 = arith.constant 0 : index
    %138 = vector.load %arg2[%c3_97, %c2_98, %c0_99, %c0_100] : memref<8x3x8x32xf32, #tpu.memory_space<vmem>>, vector<1x1x8x32xf32>
    %139 = vector.shape_cast %138 : vector<1x1x8x32xf32> to vector<8x32xf32>
    %140 = arith.mulf %129, %121 : vector<8x32xf32>
    %141 = arith.addf %139, %140 : vector<8x32xf32>
    %142 = math.tanh %141 : vector<8x32xf32>
    %cst_101 = arith.constant 1.000000e+00 : f32
    %143 = vector.broadcast %cst_101 : f32 to vector<8x32xf32>
    %144 = arith.subf %143, %137 : vector<8x32xf32>
    %145 = arith.mulf %144, %142 : vector<8x32xf32>
    %146 = arith.mulf %137, %117 : vector<8x32xf32>
    %147 = arith.addf %145, %146 : vector<8x32xf32>
    %c0_102 = arith.constant 0 : index
    %c0_103 = arith.constant 0 : index
    %148 = vector.load %arg6[%c0_102, %c0_103] : memref<8x32xf32, #tpu.memory_space<vmem>>, vector<8x32xf32>
    tpu.vector_store %arg6[%c0_102, %c0_103], %147 {strides = array<i32>} : memref<8x32xf32, #tpu.memory_space<vmem>>, vector<8x32xf32>,
    %c3_104 = arith.constant 3 : index
    %c0_105 = arith.constant 0 : index
    %c0_106 = arith.constant 0 : index
    %149 = vector.load %arg5[%c3_104, %c0_105, %c0_106] : memref<8x8x32xf32, #tpu.memory_space<vmem>>, vector<1x8x32xf32>
    %150 = vector.shape_cast %149 : vector<1x8x32xf32> to vector<8x32xf32>
    %151 = vector.shape_cast %147 : vector<8x32xf32> to vector<1x8x32xf32>
    tpu.vector_store %arg5[%c3_104, %c0_105, %c0_106], %151 {strides = array<i32>} : memref<8x8x32xf32, #tpu.memory_space<vmem>>, vector<1x8x32xf32>,
    %c0_107 = arith.constant 0 : index
    %c0_108 = arith.constant 0 : index
    %152 = vector.load %arg6[%c0_107, %c0_108] : memref<8x32xf32, #tpu.memory_space<vmem>>, vector<8x32xf32>
    %cst_109 = arith.constant dense<0.000000e+00> : vector<8x32xf32>
    %153 = tpu.matmul %152, %7, %cst_109 {dimension_numbers = #tpu.dot_dimension_numbers<[1], [0], [0], [1], [0, 0, 1, 1], [], []>} : vector<8x32xf32>, vector<32x32xf32>, vector<8x32xf32> -> vector<8x32xf32>
    %cst_110 = arith.constant dense<0.000000e+00> : vector<8x32xf32>
    %154 = tpu.matmul %152, %9, %cst_110 {dimension_numbers = #tpu.dot_dimension_numbers<[1], [0], [0], [1], [0, 0, 1, 1], [], []>} : vector<8x32xf32>, vector<32x32xf32>, vector<8x32xf32> -> vector<8x32xf32>
    %cst_111 = arith.constant dense<0.000000e+00> : vector<8x32xf32>
    %155 = tpu.matmul %152, %11, %cst_111 {dimension_numbers = #tpu.dot_dimension_numbers<[1], [0], [0], [1], [0, 0, 1, 1], [], []>} : vector<8x32xf32>, vector<32x32xf32>, vector<8x32xf32> -> vector<8x32xf32>
    %156 = arith.addf %155, %5 : vector<8x32xf32>
    %c4 = arith.constant 4 : index
    %c0_112 = arith.constant 0 : index
    %c0_113 = arith.constant 0 : index
    %c0_114 = arith.constant 0 : index
    %157 = vector.load %arg2[%c4, %c0_112, %c0_113, %c0_114] : memref<8x3x8x32xf32, #tpu.memory_space<vmem>>, vector<1x1x8x32xf32>
    %158 = vector.shape_cast %157 : vector<1x1x8x32xf32> to vector<8x32xf32>
    %159 = arith.addf %158, %153 : vector<8x32xf32>
    %160 = arith.negf %159 : vector<8x32xf32>
    %161 = math.exp %160 : vector<8x32xf32>
    %cst_115 = arith.constant 1.000000e+00 : f32
    %162 = vector.broadcast %cst_115 : f32 to vector<8x32xf32>
    %163 = arith.addf %162, %161 : vector<8x32xf32>
    %164 = arith.divf %162, %163 : vector<8x32xf32>
    %c4_116 = arith.constant 4 : index
    %c1_117 = arith.constant 1 : index
    %c0_118 = arith.constant 0 : index
    %c0_119 = arith.constant 0 : index
    %165 = vector.load %arg2[%c4_116, %c1_117, %c0_118, %c0_119] : memref<8x3x8x32xf32, #tpu.memory_space<vmem>>, vector<1x1x8x32xf32>
    %166 = vector.shape_cast %165 : vector<1x1x8x32xf32> to vector<8x32xf32>
    %167 = arith.addf %166, %154 : vector<8x32xf32>
    %168 = arith.negf %167 : vector<8x32xf32>
    %169 = math.exp %168 : vector<8x32xf32>
    %cst_120 = arith.constant 1.000000e+00 : f32
    %170 = vector.broadcast %cst_120 : f32 to vector<8x32xf32>
    %171 = arith.addf %170, %169 : vector<8x32xf32>
    %172 = arith.divf %170, %171 : vector<8x32xf32>
    %c4_121 = arith.constant 4 : index
    %c2_122 = arith.constant 2 : index
    %c0_123 = arith.constant 0 : index
    %c0_124 = arith.constant 0 : index
    %173 = vector.load %arg2[%c4_121, %c2_122, %c0_123, %c0_124] : memref<8x3x8x32xf32, #tpu.memory_space<vmem>>, vector<1x1x8x32xf32>
    %174 = vector.shape_cast %173 : vector<1x1x8x32xf32> to vector<8x32xf32>
    %175 = arith.mulf %164, %156 : vector<8x32xf32>
    %176 = arith.addf %174, %175 : vector<8x32xf32>
    %177 = math.tanh %176 : vector<8x32xf32>
    %cst_125 = arith.constant 1.000000e+00 : f32
    %178 = vector.broadcast %cst_125 : f32 to vector<8x32xf32>
    %179 = arith.subf %178, %172 : vector<8x32xf32>
    %180 = arith.mulf %179, %177 : vector<8x32xf32>
    %181 = arith.mulf %172, %152 : vector<8x32xf32>
    %182 = arith.addf %180, %181 : vector<8x32xf32>
    %c0_126 = arith.constant 0 : index
    %c0_127 = arith.constant 0 : index
    %183 = vector.load %arg6[%c0_126, %c0_127] : memref<8x32xf32, #tpu.memory_space<vmem>>, vector<8x32xf32>
    tpu.vector_store %arg6[%c0_126, %c0_127], %182 {strides = array<i32>} : memref<8x32xf32, #tpu.memory_space<vmem>>, vector<8x32xf32>,
    %c4_128 = arith.constant 4 : index
    %c0_129 = arith.constant 0 : index
    %c0_130 = arith.constant 0 : index
    %184 = vector.load %arg5[%c4_128, %c0_129, %c0_130] : memref<8x8x32xf32, #tpu.memory_space<vmem>>, vector<1x8x32xf32>
    %185 = vector.shape_cast %184 : vector<1x8x32xf32> to vector<8x32xf32>
    %186 = vector.shape_cast %182 : vector<8x32xf32> to vector<1x8x32xf32>
    tpu.vector_store %arg5[%c4_128, %c0_129, %c0_130], %186 {strides = array<i32>} : memref<8x8x32xf32, #tpu.memory_space<vmem>>, vector<1x8x32xf32>,
    %c0_131 = arith.constant 0 : index
    %c0_132 = arith.constant 0 : index
    %187 = vector.load %arg6[%c0_131, %c0_132] : memref<8x32xf32, #tpu.memory_space<vmem>>, vector<8x32xf32>
    %cst_133 = arith.constant dense<0.000000e+00> : vector<8x32xf32>
    %188 = tpu.matmul %187, %7, %cst_133 {dimension_numbers = #tpu.dot_dimension_numbers<[1], [0], [0], [1], [0, 0, 1, 1], [], []>} : vector<8x32xf32>, vector<32x32xf32>, vector<8x32xf32> -> vector<8x32xf32>
    %cst_134 = arith.constant dense<0.000000e+00> : vector<8x32xf32>
    %189 = tpu.matmul %187, %9, %cst_134 {dimension_numbers = #tpu.dot_dimension_numbers<[1], [0], [0], [1], [0, 0, 1, 1], [], []>} : vector<8x32xf32>, vector<32x32xf32>, vector<8x32xf32> -> vector<8x32xf32>
    %cst_135 = arith.constant dense<0.000000e+00> : vector<8x32xf32>
    %190 = tpu.matmul %187, %11, %cst_135 {dimension_numbers = #tpu.dot_dimension_numbers<[1], [0], [0], [1], [0, 0, 1, 1], [], []>} : vector<8x32xf32>, vector<32x32xf32>, vector<8x32xf32> -> vector<8x32xf32>
    %191 = arith.addf %190, %5 : vector<8x32xf32>
    %c5 = arith.constant 5 : index
    %c0_136 = arith.constant 0 : index
    %c0_137 = arith.constant 0 : index
    %c0_138 = arith.constant 0 : index
    %192 = vector.load %arg2[%c5, %c0_136, %c0_137, %c0_138] : memref<8x3x8x32xf32, #tpu.memory_space<vmem>>, vector<1x1x8x32xf32>
    %193 = vector.shape_cast %192 : vector<1x1x8x32xf32> to vector<8x32xf32>
    %194 = arith.addf %193, %188 : vector<8x32xf32>
    %195 = arith.negf %194 : vector<8x32xf32>
    %196 = math.exp %195 : vector<8x32xf32>
    %cst_139 = arith.constant 1.000000e+00 : f32
    %197 = vector.broadcast %cst_139 : f32 to vector<8x32xf32>
    %198 = arith.addf %197, %196 : vector<8x32xf32>
    %199 = arith.divf %197, %198 : vector<8x32xf32>
    %c5_140 = arith.constant 5 : index
    %c1_141 = arith.constant 1 : index
    %c0_142 = arith.constant 0 : index
    %c0_143 = arith.constant 0 : index
    %200 = vector.load %arg2[%c5_140, %c1_141, %c0_142, %c0_143] : memref<8x3x8x32xf32, #tpu.memory_space<vmem>>, vector<1x1x8x32xf32>
    %201 = vector.shape_cast %200 : vector<1x1x8x32xf32> to vector<8x32xf32>
    %202 = arith.addf %201, %189 : vector<8x32xf32>
    %203 = arith.negf %202 : vector<8x32xf32>
    %204 = math.exp %203 : vector<8x32xf32>
    %cst_144 = arith.constant 1.000000e+00 : f32
    %205 = vector.broadcast %cst_144 : f32 to vector<8x32xf32>
    %206 = arith.addf %205, %204 : vector<8x32xf32>
    %207 = arith.divf %205, %206 : vector<8x32xf32>
    %c5_145 = arith.constant 5 : index
    %c2_146 = arith.constant 2 : index
    %c0_147 = arith.constant 0 : index
    %c0_148 = arith.constant 0 : index
    %208 = vector.load %arg2[%c5_145, %c2_146, %c0_147, %c0_148] : memref<8x3x8x32xf32, #tpu.memory_space<vmem>>, vector<1x1x8x32xf32>
    %209 = vector.shape_cast %208 : vector<1x1x8x32xf32> to vector<8x32xf32>
    %210 = arith.mulf %199, %191 : vector<8x32xf32>
    %211 = arith.addf %209, %210 : vector<8x32xf32>
    %212 = math.tanh %211 : vector<8x32xf32>
    %cst_149 = arith.constant 1.000000e+00 : f32
    %213 = vector.broadcast %cst_149 : f32 to vector<8x32xf32>
    %214 = arith.subf %213, %207 : vector<8x32xf32>
    %215 = arith.mulf %214, %212 : vector<8x32xf32>
    %216 = arith.mulf %207, %187 : vector<8x32xf32>
    %217 = arith.addf %215, %216 : vector<8x32xf32>
    %c0_150 = arith.constant 0 : index
    %c0_151 = arith.constant 0 : index
    %218 = vector.load %arg6[%c0_150, %c0_151] : memref<8x32xf32, #tpu.memory_space<vmem>>, vector<8x32xf32>
    tpu.vector_store %arg6[%c0_150, %c0_151], %217 {strides = array<i32>} : memref<8x32xf32, #tpu.memory_space<vmem>>, vector<8x32xf32>,
    %c5_152 = arith.constant 5 : index
    %c0_153 = arith.constant 0 : index
    %c0_154 = arith.constant 0 : index
    %219 = vector.load %arg5[%c5_152, %c0_153, %c0_154] : memref<8x8x32xf32, #tpu.memory_space<vmem>>, vector<1x8x32xf32>
    %220 = vector.shape_cast %219 : vector<1x8x32xf32> to vector<8x32xf32>
    %221 = vector.shape_cast %217 : vector<8x32xf32> to vector<1x8x32xf32>
    tpu.vector_store %arg5[%c5_152, %c0_153, %c0_154], %221 {strides = array<i32>} : memref<8x8x32xf32, #tpu.memory_space<vmem>>, vector<1x8x32xf32>,
    %c0_155 = arith.constant 0 : index
    %c0_156 = arith.constant 0 : index
    %222 = vector.load %arg6[%c0_155, %c0_156] : memref<8x32xf32, #tpu.memory_space<vmem>>, vector<8x32xf32>
    %cst_157 = arith.constant dense<0.000000e+00> : vector<8x32xf32>
    %223 = tpu.matmul %222, %7, %cst_157 {dimension_numbers = #tpu.dot_dimension_numbers<[1], [0], [0], [1], [0, 0, 1, 1], [], []>} : vector<8x32xf32>, vector<32x32xf32>, vector<8x32xf32> -> vector<8x32xf32>
    %cst_158 = arith.constant dense<0.000000e+00> : vector<8x32xf32>
    %224 = tpu.matmul %222, %9, %cst_158 {dimension_numbers = #tpu.dot_dimension_numbers<[1], [0], [0], [1], [0, 0, 1, 1], [], []>} : vector<8x32xf32>, vector<32x32xf32>, vector<8x32xf32> -> vector<8x32xf32>
    %cst_159 = arith.constant dense<0.000000e+00> : vector<8x32xf32>
    %225 = tpu.matmul %222, %11, %cst_159 {dimension_numbers = #tpu.dot_dimension_numbers<[1], [0], [0], [1], [0, 0, 1, 1], [], []>} : vector<8x32xf32>, vector<32x32xf32>, vector<8x32xf32> -> vector<8x32xf32>
    %226 = arith.addf %225, %5 : vector<8x32xf32>
    %c6 = arith.constant 6 : index
    %c0_160 = arith.constant 0 : index
    %c0_161 = arith.constant 0 : index
    %c0_162 = arith.constant 0 : index
    %227 = vector.load %arg2[%c6, %c0_160, %c0_161, %c0_162] : memref<8x3x8x32xf32, #tpu.memory_space<vmem>>, vector<1x1x8x32xf32>
    %228 = vector.shape_cast %227 : vector<1x1x8x32xf32> to vector<8x32xf32>
    %229 = arith.addf %228, %223 : vector<8x32xf32>
    %230 = arith.negf %229 : vector<8x32xf32>
    %231 = math.exp %230 : vector<8x32xf32>
    %cst_163 = arith.constant 1.000000e+00 : f32
    %232 = vector.broadcast %cst_163 : f32 to vector<8x32xf32>
    %233 = arith.addf %232, %231 : vector<8x32xf32>
    %234 = arith.divf %232, %233 : vector<8x32xf32>
    %c6_164 = arith.constant 6 : index
    %c1_165 = arith.constant 1 : index
    %c0_166 = arith.constant 0 : index
    %c0_167 = arith.constant 0 : index
    %235 = vector.load %arg2[%c6_164, %c1_165, %c0_166, %c0_167] : memref<8x3x8x32xf32, #tpu.memory_space<vmem>>, vector<1x1x8x32xf32>
    %236 = vector.shape_cast %235 : vector<1x1x8x32xf32> to vector<8x32xf32>
    %237 = arith.addf %236, %224 : vector<8x32xf32>
    %238 = arith.negf %237 : vector<8x32xf32>
    %239 = math.exp %238 : vector<8x32xf32>
    %cst_168 = arith.constant 1.000000e+00 : f32
    %240 = vector.broadcast %cst_168 : f32 to vector<8x32xf32>
    %241 = arith.addf %240, %239 : vector<8x32xf32>
    %242 = arith.divf %240, %241 : vector<8x32xf32>
    %c6_169 = arith.constant 6 : index
    %c2_170 = arith.constant 2 : index
    %c0_171 = arith.constant 0 : index
    %c0_172 = arith.constant 0 : index
    %243 = vector.load %arg2[%c6_169, %c2_170, %c0_171, %c0_172] : memref<8x3x8x32xf32, #tpu.memory_space<vmem>>, vector<1x1x8x32xf32>
    %244 = vector.shape_cast %243 : vector<1x1x8x32xf32> to vector<8x32xf32>
    %245 = arith.mulf %234, %226 : vector<8x32xf32>
    %246 = arith.addf %244, %245 : vector<8x32xf32>
    %247 = math.tanh %246 : vector<8x32xf32>
    %cst_173 = arith.constant 1.000000e+00 : f32
    %248 = vector.broadcast %cst_173 : f32 to vector<8x32xf32>
    %249 = arith.subf %248, %242 : vector<8x32xf32>
    %250 = arith.mulf %249, %247 : vector<8x32xf32>
    %251 = arith.mulf %242, %222 : vector<8x32xf32>
    %252 = arith.addf %250, %251 : vector<8x32xf32>
    %c0_174 = arith.constant 0 : index
    %c0_175 = arith.constant 0 : index
    %253 = vector.load %arg6[%c0_174, %c0_175] : memref<8x32xf32, #tpu.memory_space<vmem>>, vector<8x32xf32>
    tpu.vector_store %arg6[%c0_174, %c0_175], %252 {strides = array<i32>} : memref<8x32xf32, #tpu.memory_space<vmem>>, vector<8x32xf32>,
    %c6_176 = arith.constant 6 : index
    %c0_177 = arith.constant 0 : index
    %c0_178 = arith.constant 0 : index
    %254 = vector.load %arg5[%c6_176, %c0_177, %c0_178] : memref<8x8x32xf32, #tpu.memory_space<vmem>>, vector<1x8x32xf32>
    %255 = vector.shape_cast %254 : vector<1x8x32xf32> to vector<8x32xf32>
    %256 = vector.shape_cast %252 : vector<8x32xf32> to vector<1x8x32xf32>
    tpu.vector_store %arg5[%c6_176, %c0_177, %c0_178], %256 {strides = array<i32>} : memref<8x8x32xf32, #tpu.memory_space<vmem>>, vector<1x8x32xf32>,
    %c0_179 = arith.constant 0 : index
    %c0_180 = arith.constant 0 : index
    %257 = vector.load %arg6[%c0_179, %c0_180] : memref<8x32xf32, #tpu.memory_space<vmem>>, vector<8x32xf32>
    %cst_181 = arith.constant dense<0.000000e+00> : vector<8x32xf32>
    %258 = tpu.matmul %257, %7, %cst_181 {dimension_numbers = #tpu.dot_dimension_numbers<[1], [0], [0], [1], [0, 0, 1, 1], [], []>} : vector<8x32xf32>, vector<32x32xf32>, vector<8x32xf32> -> vector<8x32xf32>
    %cst_182 = arith.constant dense<0.000000e+00> : vector<8x32xf32>
    %259 = tpu.matmul %257, %9, %cst_182 {dimension_numbers = #tpu.dot_dimension_numbers<[1], [0], [0], [1], [0, 0, 1, 1], [], []>} : vector<8x32xf32>, vector<32x32xf32>, vector<8x32xf32> -> vector<8x32xf32>
    %cst_183 = arith.constant dense<0.000000e+00> : vector<8x32xf32>
    %260 = tpu.matmul %257, %11, %cst_183 {dimension_numbers = #tpu.dot_dimension_numbers<[1], [0], [0], [1], [0, 0, 1, 1], [], []>} : vector<8x32xf32>, vector<32x32xf32>, vector<8x32xf32> -> vector<8x32xf32>
    %261 = arith.addf %260, %5 : vector<8x32xf32>
    %c7 = arith.constant 7 : index
    %c0_184 = arith.constant 0 : index
    %c0_185 = arith.constant 0 : index
    %c0_186 = arith.constant 0 : index
    %262 = vector.load %arg2[%c7, %c0_184, %c0_185, %c0_186] : memref<8x3x8x32xf32, #tpu.memory_space<vmem>>, vector<1x1x8x32xf32>
    %263 = vector.shape_cast %262 : vector<1x1x8x32xf32> to vector<8x32xf32>
    %264 = arith.addf %263, %258 : vector<8x32xf32>
    %265 = arith.negf %264 : vector<8x32xf32>
    %266 = math.exp %265 : vector<8x32xf32>
    %cst_187 = arith.constant 1.000000e+00 : f32
    %267 = vector.broadcast %cst_187 : f32 to vector<8x32xf32>
    %268 = arith.addf %267, %266 : vector<8x32xf32>
    %269 = arith.divf %267, %268 : vector<8x32xf32>
    %c7_188 = arith.constant 7 : index
    %c1_189 = arith.constant 1 : index
    %c0_190 = arith.constant 0 : index
    %c0_191 = arith.constant 0 : index
    %270 = vector.load %arg2[%c7_188, %c1_189, %c0_190, %c0_191] : memref<8x3x8x32xf32, #tpu.memory_space<vmem>>, vector<1x1x8x32xf32>
    %271 = vector.shape_cast %270 : vector<1x1x8x32xf32> to vector<8x32xf32>
    %272 = arith.addf %271, %259 : vector<8x32xf32>
    %273 = arith.negf %272 : vector<8x32xf32>
    %274 = math.exp %273 : vector<8x32xf32>
    %cst_192 = arith.constant 1.000000e+00 : f32
    %275 = vector.broadcast %cst_192 : f32 to vector<8x32xf32>
    %276 = arith.addf %275, %274 : vector<8x32xf32>
    %277 = arith.divf %275, %276 : vector<8x32xf32>
    %c7_193 = arith.constant 7 : index
    %c2_194 = arith.constant 2 : index
    %c0_195 = arith.constant 0 : index
    %c0_196 = arith.constant 0 : index
    %278 = vector.load %arg2[%c7_193, %c2_194, %c0_195, %c0_196] : memref<8x3x8x32xf32, #tpu.memory_space<vmem>>, vector<1x1x8x32xf32>
    %279 = vector.shape_cast %278 : vector<1x1x8x32xf32> to vector<8x32xf32>
    %280 = arith.mulf %269, %261 : vector<8x32xf32>
    %281 = arith.addf %279, %280 : vector<8x32xf32>
    %282 = math.tanh %281 : vector<8x32xf32>
    %cst_197 = arith.constant 1.000000e+00 : f32
    %283 = vector.broadcast %cst_197 : f32 to vector<8x32xf32>
    %284 = arith.subf %283, %277 : vector<8x32xf32>
    %285 = arith.mulf %284, %282 : vector<8x32xf32>
    %286 = arith.mulf %277, %257 : vector<8x32xf32>
    %287 = arith.addf %285, %286 : vector<8x32xf32>
    %c0_198 = arith.constant 0 : index
    %c0_199 = arith.constant 0 : index
    %288 = vector.load %arg6[%c0_198, %c0_199] : memref<8x32xf32, #tpu.memory_space<vmem>>, vector<8x32xf32>
    tpu.vector_store %arg6[%c0_198, %c0_199], %287 {strides = array<i32>} : memref<8x32xf32, #tpu.memory_space<vmem>>, vector<8x32xf32>,
    %c7_200 = arith.constant 7 : index
    %c0_201 = arith.constant 0 : index
    %c0_202 = arith.constant 0 : index
    %289 = vector.load %arg5[%c7_200, %c0_201, %c0_202] : memref<8x8x32xf32, #tpu.memory_space<vmem>>, vector<1x8x32xf32>
    %290 = vector.shape_cast %289 : vector<1x8x32xf32> to vector<8x32xf32>
    %291 = vector.shape_cast %287 : vector<8x32xf32> to vector<1x8x32xf32>
    tpu.vector_store %arg5[%c7_200, %c0_201, %c0_202], %291 {strides = array<i32>} : memref<8x8x32xf32, #tpu.memory_space<vmem>>, vector<1x8x32xf32>,
    return
  }
  func.func @transform_0(%arg0: i32, %arg1: i32) -> (i32, i32, i32, i32) {
    %c0_i32 = arith.constant 0 : i32
    %c0_i32_0 = arith.constant 0 : i32
    %c0_i32_1 = arith.constant 0 : i32
    return %arg1, %c0_i32, %arg0, %c0_i32_0 : i32, i32, i32, i32
  }
  func.func @transform_1(%arg0: i32, %arg1: i32) -> (i32, i32, i32) {
    %c0_i32 = arith.constant 0 : i32
    %c0_i32_0 = arith.constant 0 : i32
    %c0_i32_1 = arith.constant 0 : i32
    %c0_i32_2 = arith.constant 0 : i32
    return %c0_i32, %c0_i32_0, %c0_i32_1 : i32, i32, i32
  }
  func.func @transform_2(%arg0: i32, %arg1: i32) -> (i32, i32) {
    %c0_i32 = arith.constant 0 : i32
    %c0_i32_0 = arith.constant 0 : i32
    %c0_i32_1 = arith.constant 0 : i32
    return %c0_i32, %c0_i32_0 : i32, i32
  }
  func.func @transform_3(%arg0: i32, %arg1: i32) -> (i32, i32, i32) {
    %c0_i32 = arith.constant 0 : i32
    %c0_i32_0 = arith.constant 0 : i32
    return %arg1, %arg0, %c0_i32 : i32, i32, i32
  }
}

</mosaic_0001>

<bundles_post_ra>
// kernel: tpu_custom_call.1
= control target key start
LH: loop header
LB: loop body
LE: loop exit
PB: predicated region body
PF: predicated region fallthrough
CT: control target
= control target key end

     0   :  { %8 = vsyncpa [#allocation4], 0  ;;  %s1503_s0 = inlined_call_operand.hbm [shape: f32[8,3,8,32], index: 0, kind: input, shape index: {}]   ;;  %s1504_s1 = inlined_call_operand.hbm [shape: f32[3,32,32], index: 1, kind: input, shape index: {}]   ;;  %s1505_s2 = inlined_call_operand.vmem [shape: f32[1,32], index: 2, kind: input, shape index: {}]   ;;  %s1506_s3 = inlined_call_operand.hbm [shape: f32[8,8,32], index: 3, kind: output, shape index: {}]  }
   0x1   :  { %9 = vsyncpa [#allocation7], 0 }
   0x2   :  { %10 = vsyncpa [#allocation5], 0  ;;  %s15_s14 = sshll.u32 %s1503_s0, 4  ;;  %s1255_s15 = smov [#allocation3]   ;;  %s16_s14 = int_to_ptr.hbm [resolvable:$true] %s15_s14 }
   0x3   :  { %s17_s16 = sshll.u32 %s1255_s15, 4  ;;  %s28_s19 = sshll.u32 %s1504_s1, 4  ;;  %s18_s16 = int_to_ptr.vmem [resolvable:$true] %s17_s16  ;;  %s29_s19 = int_to_ptr.hbm [resolvable:$true] %s28_s19 }
   0x4   :  { %s1256_s20 = smov 128   ;;  %s1257_s21 = smov 8  }
   0x5   :  { %23 = dma.hbm_to_vmem [thread:$0]  %s16_s14, 3072, %s18_s16, [#allocation4], %s1256_s20, %s1256_s20, %s1257_s21  }
   0x6   :  { %s1258_s22 = smov [#allocation6]  }
   0x7   :  { %s30_s23 = sshll.u32 %s1258_s22, 4  ;;  %s31_s23 = int_to_ptr.vmem [resolvable:$true] %s30_s23 }
   0x8   :  { %36 = dma.hbm_to_vmem [thread:$0]  %s29_s19, 1536, %s31_s23, [#allocation7], %s1256_s20, %s1256_s20, %s1257_s21  }
   0x9   :  { %1249 = dma.done.wait [#allocation4], 3072  }
   0xa   :  { %1250 = vsyncadd [#allocation4], 4294964224 }
   0xb   :  { %1251 = dma.done.wait [#allocation7], 1536  }
   0xc   :  { %1252 = vsyncadd [#allocation7], 4294965760  ;;  %vm51_vm0 = vcmask 261120   ;;  %v1259_v0 = vmov 0.0   ;;  %v1294_v1 = vld [vmem:[#allocation6 + $0x18] sm:$0xff]  ;;  %v1298_v3 = vld [vmem:[#allocation6 + $0x10] sm:$0xff] }
   0xd   :  { %52 = vst.msk [vmem:[#allocation2] sm:$0xff] %vm51_vm0, %v1259_v0  ;;  %v1296_v2 = vld [vmem:[#allocation6 + $0x38] sm:$0xff]  ;;  %88 = vmatpush.msra.mxu0 %v1294_v1  ;;  %v1302_v4 = vld [vmem:[#allocation6 + $0x30] sm:$0xff]  ;;  %v1304_v5 = vld [vmem:[#allocation6 + $0x8] sm:$0xff]  ;;  %206 = vmatpush.msra.mxu3 %v1294_v1  ;;  %s1036_s27 = sshll.u32 %s1506_s3, 4  ;;  %s1037_s27 = int_to_ptr.hbm [resolvable:$true] %s1036_s27 }
   0xe   :  { %108 = vmatpush.msra.mxu1 %v1296_v2  ;;  %v1306_v6 = vld [vmem:[#allocation6 + $0x28] sm:$0xff]  ;;  %v1311_v7 = vld [vmem:[#allocation6 + $0x58] sm:$0xff]  ;;  %v1313_v8 = vld [vmem:[#allocation6 + $0x50] sm:$0xff] }
   0xf   :  { %89 = vmatpush.msra.mxu0 %v1298_v3  ;;  %v1315_v9 = vld [vmem:[#allocation6] sm:$0xff]  ;;  %128 = vmatpush.msra.mxu2 %v1311_v7  ;;  %v1326_v12 = vld [vmem:[#allocation6 + $0x48] sm:$0xff]  ;;  %v1373_v30 = vld [vmem:[%s1505_s2] ss:$0 sm:$0xff]  ;;  %s1260_s2 = smov [#allocation8]  }
  0x10   :  { %109 = vmatpush.msra.mxu1 %v1302_v4  ;;  %v1317_v10 = vld [vmem:[#allocation6 + $0x20] sm:$0xff]  ;;  %207 = vmatpush.msra.mxu3 %v1298_v3  ;;  %v158_v15 = vld [vmem:[#allocation3 + $0x8] sm:$0xff]  ;;  %v180_v44 = vld [vmem:[#allocation3 + $0x10] sm:$0xff]  ;;  %s1034_s24 = sshll.u32 %s1260_s2, 4  ;;  %s1035_s24 = int_to_ptr.vmem [resolvable:$true] %s1034_s24 }
  0x11   :  { %90 = vmatpush.msra.mxu0 %v1304_v5  ;;  %129 = vmatpush.msra.mxu2 %v1313_v8  ;;  %v1335_v13 = vld [vmem:[#allocation6 + $0x40] sm:$0xff]  ;;  %v255_v62 = vld [vmem:[#allocation3 + $0x18] sm:$0xff] }
  0x12   :  { %110 = vmatpush.msra.mxu1 %v1306_v6  ;;  %208 = vmatpush.msra.mxu3 %v1304_v5  ;;  %v136_v14 = vld [vmem:[#allocation3] sm:$0xff] }
  0x13   :  { %91 = vmatpush.msra.mxu0 %v1315_v9  ;;  %130 = vmatpush.msra.mxu2 %v1326_v12  ;;  %v277_v58 = vld [vmem:[#allocation3 + $0x20] sm:$0xff] }
  0x14   :  { %v1323_v11 = vld [vmem:[#allocation2] sm:$0xff]  ;;  %111 = vmatpush.msra.mxu1 %v1317_v10  ;;  %209 = vmatpush.msra.mxu3 %v1315_v9 }
  0x15   :  { %1050 = vmatmul.msk.f32.vlgmr.msra.gmra.mxu0 %vm51_vm0, %v1323_v11  ;;  %1051 = vmatmul.msk.f32.vlgmr.msra.gmra.mxu1 %vm51_vm0, %v1323_v11 }
  0x16   :  { %226 = vmatpush.msrb.mxu0 %v1296_v2  ;;  %246 = vmatpush.msrb.mxu1 %v1311_v7 }
  0x17   :  { %131 = vmatpush.msra.mxu2 %v1335_v13  ;;  %346 = vmatpush.msrb.mxu3 %v1296_v2 }
  0x18   :  { %227 = vmatpush.msrb.mxu0 %v1302_v4  ;;  %1052 = vmatmul.msk.f32.vlgmr.msra.gmra.mxu2 %vm51_vm0, %v1323_v11 }
  0x19   :  { %247 = vmatpush.msrb.mxu1 %v1313_v8  ;;  %326 = vmatpush.msrb.mxu2 %v1294_v1 }
  0x1a   :  { %228 = vmatpush.msrb.mxu0 %v1306_v6  ;;  %347 = vmatpush.msrb.mxu3 %v1302_v4 }
  0x1b   :  { %248 = vmatpush.msrb.mxu1 %v1326_v12  ;;  %327 = vmatpush.msrb.mxu2 %v1298_v3 }
  0x1c   :  { %229 = vmatpush.msrb.mxu0 %v1317_v10  ;;  %348 = vmatpush.msrb.mxu3 %v1306_v6 }
  0x1d   :  { %249 = vmatpush.msrb.mxu1 %v1335_v13  ;;  %328 = vmatpush.msrb.mxu2 %v1304_v5 }
  0x1e   :  { %366 = vmatpush.msra.mxu0 %v1311_v7  ;;  %349 = vmatpush.msrb.mxu3 %v1317_v10 }
  0x1f   :  { %446 = vmatpush.msra.mxu1 %v1294_v1  ;;  %329 = vmatpush.msrb.mxu2 %v1315_v9 }
  0x20   :  { %367 = vmatpush.msra.mxu0 %v1313_v8 }
  0x21   :  { %466 = vmatpush.msra.mxu2 %v1296_v2  ;;  %447 = vmatpush.msra.mxu1 %v1298_v3 }
  0x22   :  { %368 = vmatpush.msra.mxu0 %v1326_v12 }
  0x23   :  { %467 = vmatpush.msra.mxu2 %v1302_v4  ;;  %448 = vmatpush.msra.mxu1 %v1304_v5 }
  0x24   :  { %369 = vmatpush.msra.mxu0 %v1335_v13 }
  0x25   :  { %468 = vmatpush.msra.mxu2 %v1306_v6  ;;  %449 = vmatpush.msra.mxu1 %v1315_v9 }
  0x27   :  { %469 = vmatpush.msra.mxu2 %v1317_v10 }
  0x92   :  { %v93_v16 = vpop.f32.mrf.mxu0  ;;  %v113_v17 = vpop.f32.mrf.mxu1 }
  0x93   :  { %v137_v18 = vadd.f32 %v136_v14, %v93_v16  ;;  %v159_v19 = vadd.f32 %v158_v15, %v113_v17 }
  0x95   :  { %v1053_v20 = vmul.f32 -1.442695, %v137_v18  ;;  %v1054_v21 = vmul.f32 -1.442695, %v159_v19 }
  0x97   :  { %1097 = vpow2.f32 %v1053_v20 }
  0x98   :  { %1099 = vpow2.f32 %v1054_v21 }
  0x9b   :  { %v133_v33 = vpop.f32.mrf.mxu2 }
  0x9c   :  { %v134_v38 = vadd.f32 %v1373_v30, %v133_v33 }
  0x9d   :  { %v1098_v22 = vpop.eup %1097 }
  0x9e   :  { %v1100_v23 = vpop.eup %1099  ;;  %v141_v24 = vadd.f32 1.0, %v1098_v22 }
  0x9f   :  { %v163_v25 = vadd.f32 1.0, %v1100_v23 }
  0xa0   :  { %1101 = vrcp.f32 %v141_v24  ;;  %v153_v34 = vand.u32 2147483648, %v141_v24  ;;  %v151_v36 = vand.u32 2147483647, %v141_v24  ;;  %vm147_vm2 = vweird.f32 %v141_v24 }
  0xa1   :  { %1103 = vrcp.f32 %v163_v25  ;;  %vm169_vm5 = vweird.f32 %v163_v25  ;;  %v175_v45 = vand.u32 2147483648, %v163_v25  ;;  %v173_v47 = vand.u32 2147483647, %v163_v25 }
  0xa2   :  { %v154_v40 = vor.u32 1.1754944e-38, %v153_v34  ;;  %vm152_vm4 = vcmp.eq.f32.partialorder %v151_v36, 8.507059e+37  ;;  %v299_v36 = vld [vmem:[#allocation3 + $0x28] sm:$0xff] }
  0xa3   :  { %v176_v50 = vor.u32 1.1754944e-38, %v175_v45  ;;  %vm174_vm8 = vcmp.eq.f32.partialorder %v173_v47, 8.507059e+37 }
  0xa6   :  { %v1102_v26 = vpop.eup %1101 }
  0xa7   :  { %v1104_v27 = vpop.eup %1103  ;;  %v143_v28 = vmul.f32 %v1102_v26, %v141_v24  ;;  %vm148_vm1 = vweird.f32 %v1102_v26 }
  0xa8   :  { %v165_v29 = vmul.f32 %v1104_v27, %v163_v25  ;;  %vm149_vm3 = vmor %vm147_vm2, %vm148_vm1  ;;  %vm170_vm6 = vweird.f32 %v1104_v27 }
  0xa9   :  { %v144_v31 = vsub.f32 1.0, %v143_v28  ;;  %vm171_vm7 = vmor %vm169_vm5, %vm170_vm6 }
  0xaa   :  { %v166_v32 = vsub.f32 1.0, %v165_v29 }
  0xab   :  { %v145_v35 = vmul.f32 %v1102_v26, %v144_v31 }
  0xac   :  { %v167_v37 = vmul.f32 %v1104_v27, %v166_v32 }
  0xad   :  { %v146_v39 = vadd.f32 %v1102_v26, %v145_v35 }
  0xae   :  { %v168_v42 = vadd.f32 %v1104_v27, %v167_v37 }
  0xaf   :  { %v150_v41 = vsel %vm149_vm3, %v1102_v26, %v146_v39 }
  0xb0   :  { %v155_v43 = vsel %vm152_vm4, %v154_v40, %v150_v41  ;;  %v172_v49 = vsel %vm171_vm7, %v1104_v27, %v168_v42 }
  0xb1   :  { %v181_v46 = vmul.f32 %v155_v43, %v134_v38  ;;  %v177_v51 = vsel %vm174_vm8, %v176_v50, %v172_v49  ;;  %v375_v50 = vld [vmem:[#allocation3 + $0x30] sm:$0xff] }
  0xb2   :  { %v184_v52 = vsub.f32 1.0, %v177_v51  ;;  %v186_v55 = vmul.f32 %v177_v51, %v1323_v11  ;;  %v397_v51 = vld [vmem:[#allocation3 + $0x38] sm:$0xff] }
  0xb3   :  { %v182_v48 = vadd.f32 %v181_v46, %v180_v44 }
  0xb5   :  { %1105 = vtanh.f32 %v182_v48 }
  0xbb   :  { %v1106_v53 = vpop.eup %1105 }
  0xbc   :  { %v185_v54 = vmul.f32 %v1106_v53, %v184_v52 }
  0xbe   :  { %v187_v56 = vadd.f32 %v186_v55, %v185_v54 }
  0xc0   :  { %188 = vst.msk [vmem:[#allocation2] sm:$0xff] %vm51_vm0, %v187_v56 }
  0xc1   :  { %189 = vst.msk [vmem:[#allocation8] sm:$0xff] %vm51_vm0, %v187_v56 }
  0xc7   :  { %v1379_v57 = vld [vmem:[#allocation2] sm:$0xff] }
  0xc8   :  { %1055 = vmatmul.msk.f32.vlgmr.msra.gmra.mxu3 %vm51_vm0, %v1379_v57  ;;  %1056 = vmatmul.msk.f32.vlgmr.msrb.gmra.mxu0 %vm51_vm0, %v1379_v57 }
  0xc9   :  { %1057 = vmatmul.msk.f32.vlgmr.msrb.gmra.mxu1 %vm51_vm0, %v1379_v57  ;;  %486 = vmatpush.msra.mxu3 %v1311_v7 }
  0xca   :  { %566 = vmatpush.msrb.mxu0 %v1294_v1  ;;  %586 = vmatpush.msrb.mxu1 %v1296_v2 }
  0xcb   :  { %487 = vmatpush.msra.mxu3 %v1313_v8 }
  0xcc   :  { %567 = vmatpush.msrb.mxu0 %v1298_v3  ;;  %587 = vmatpush.msrb.mxu1 %v1302_v4 }
  0xcd   :  { %488 = vmatpush.msra.mxu3 %v1326_v12 }
  0xce   :  { %568 = vmatpush.msrb.mxu0 %v1304_v5  ;;  %588 = vmatpush.msrb.mxu1 %v1306_v6 }
  0xcf   :  { %489 = vmatpush.msra.mxu3 %v1335_v13 }
  0xd0   :  { %569 = vmatpush.msrb.mxu0 %v1315_v9  ;;  %589 = vmatpush.msrb.mxu1 %v1317_v10 }
 0x145   :  { %v231_v59 = vpop.f32.mrf.mxu0 }
 0x146   :  { %v278_v60 = vadd.f32 %v277_v58, %v231_v59  ;;  %v251_v28 = vpop.f32.mrf.mxu1 }
 0x147   :  { %v252_v32 = vadd.f32 %v1373_v30, %v251_v28 }
 0x148   :  { %v1059_v61 = vmul.f32 -1.442695, %v278_v60 }
 0x14a   :  { %1107 = vpow2.f32 %v1059_v61 }
 0x14b   :  { %v211_v63 = vpop.f32.mrf.mxu3 }
 0x14c   :  { %v256_v0 = vadd.f32 %v255_v62, %v211_v63 }
 0x14e   :  { %v1058_v11 = vmul.f32 -1.442695, %v256_v0 }
 0x150   :  { %v1108_v14 = vpop.eup %1107  ;;  %1109 = vpow2.f32 %v1058_v11 }
 0x151   :  { %v282_v15 = vadd.f32 1.0, %v1108_v14 }
 0x153   :  { %1111 = vrcp.f32 %v282_v15  ;;  %v294_v37 = vand.u32 2147483648, %v282_v15  ;;  %vm288_vm14 = vweird.f32 %v282_v15  ;;  %v292_v39 = vand.u32 2147483647, %v282_v15 }
 0x155   :  { %v295_v42 = vor.u32 1.1754944e-38, %v294_v37  ;;  %vm293_vm1 = vcmp.eq.f32.partialorder %v292_v39, 8.507059e+37 }
 0x156   :  { %v1110_v16 = vpop.eup %1109 }
 0x157   :  { %v260_v17 = vadd.f32 1.0, %v1110_v16 }
 0x159   :  { %1113 = vrcp.f32 %v260_v17  ;;  %v1112_v18 = vpop.eup %1111  ;;  %v272_v24 = vand.u32 2147483648, %v260_v17  ;;  %v270_v26 = vand.u32 2147483647, %v260_v17  ;;  %vm266_vm10 = vweird.f32 %v260_v17 }
 0x15a   :  { %v284_v19 = vmul.f32 %v1112_v18, %v282_v15  ;;  %vm289_vm13 = vweird.f32 %v1112_v18 }
 0x15b   :  { %v273_v31 = vor.u32 1.1754944e-38, %v272_v24  ;;  %vm271_vm12 = vcmp.eq.f32.partialorder %v270_v26, 8.507059e+37  ;;  %vm290_vm15 = vmor %vm288_vm14, %vm289_vm13  ;;  %v419_v26 = vld [vmem:[#allocation3 + $0x40] sm:$0xff] }
 0x15c   :  { %v285_v22 = vsub.f32 1.0, %v284_v19 }
 0x15e   :  { %v286_v27 = vmul.f32 %v1112_v18, %v285_v22 }
 0x15f   :  { %v1114_v20 = vpop.eup %1113 }
 0x160   :  { %v262_v21 = vmul.f32 %v1114_v20, %v260_v17  ;;  %vm267_vm9 = vweird.f32 %v1114_v20  ;;  %v287_v34 = vadd.f32 %v1112_v18, %v286_v27 }
 0x161   :  { %vm268_vm11 = vmor %vm266_vm10, %vm267_vm9 }
 0x162   :  { %v263_v23 = vsub.f32 1.0, %v262_v21  ;;  %v291_v41 = vsel %vm290_vm15, %v1112_v18, %v287_v34 }
 0x163   :  { %v296_v43 = vsel %vm293_vm1, %v295_v42, %v291_v41  ;;  %v495_v42 = vld [vmem:[#allocation3 + $0x48] sm:$0xff] }
 0x164   :  { %v264_v25 = vmul.f32 %v1114_v20, %v263_v23  ;;  %v303_v44 = vsub.f32 1.0, %v296_v43  ;;  %v305_v46 = vmul.f32 %v296_v43, %v1379_v57 }
 0x166   :  { %v265_v29 = vadd.f32 %v1114_v20, %v264_v25 }
 0x168   :  { %v269_v33 = vsel %vm268_vm11, %v1114_v20, %v265_v29 }
 0x169   :  { %v274_v35 = vsel %vm271_vm12, %v273_v31, %v269_v33 }
 0x16a   :  { %v300_v38 = vmul.f32 %v274_v35, %v252_v32 }
 0x16c   :  { %v301_v40 = vadd.f32 %v300_v38, %v299_v36 }
 0x16e   :  { %1115 = vtanh.f32 %v301_v40 }
 0x174   :  { %v1116_v45 = vpop.eup %1115 }
 0x175   :  { %v304_v47 = vmul.f32 %v1116_v45, %v303_v44 }
 0x177   :  { %v306_v48 = vadd.f32 %v305_v46, %v304_v47  ;;  %v517_v46 = vld [vmem:[#allocation3 + $0x50] sm:$0xff] }
 0x179   :  { %307 = vst.msk [vmem:[#allocation2] sm:$0xff] %vm51_vm0, %v306_v48 }
 0x17a   :  { %309 = vst.msk [vmem:[#allocation8 + $0x8] sm:$0xff] %vm51_vm0, %v306_v48 }
 0x180   :  { %v1403_v49 = vld [vmem:[#allocation2] sm:$0xff] }
 0x181   :  { %1060 = vmatmul.msk.f32.vlgmr.msrb.gmra.mxu2 %vm51_vm0, %v1403_v49  ;;  %1061 = vmatmul.msk.f32.vlgmr.msrb.gmra.mxu3 %vm51_vm0, %v1403_v49 }
 0x182   :  { %1062 = vmatmul.msk.f32.vlgmr.msra.gmra.mxu0 %vm51_vm0, %v1403_v49  ;;  %606 = vmatpush.msrb.mxu2 %v1311_v7 }
 0x183   :  { %686 = vmatpush.msrb.mxu3 %v1294_v1  ;;  %706 = vmatpush.msra.mxu0 %v1296_v2 }
 0x184   :  { %607 = vmatpush.msrb.mxu2 %v1313_v8 }
 0x185   :  { %687 = vmatpush.msrb.mxu3 %v1298_v3  ;;  %707 = vmatpush.msra.mxu0 %v1302_v4 }
 0x186   :  { %608 = vmatpush.msrb.mxu2 %v1326_v12 }
 0x187   :  { %688 = vmatpush.msrb.mxu3 %v1304_v5  ;;  %708 = vmatpush.msra.mxu0 %v1306_v6 }
 0x188   :  { %609 = vmatpush.msrb.mxu2 %v1335_v13 }
 0x189   :  { %689 = vmatpush.msrb.mxu3 %v1315_v9  ;;  %709 = vmatpush.msra.mxu0 %v1317_v10 }
 0x1ff   :  { %v371_v19 = vpop.f32.mrf.mxu0 }
 0x200   :  { %v372_v23 = vadd.f32 %v1373_v30, %v371_v19 }
 0x204   :  { %v331_v52 = vpop.f32.mrf.mxu2  ;;  %v351_v53 = vpop.f32.mrf.mxu3 }
 0x205   :  { %v376_v54 = vadd.f32 %v375_v50, %v331_v52  ;;  %v398_v55 = vadd.f32 %v397_v51, %v351_v53 }
 0x207   :  { %v1063_v56 = vmul.f32 -1.442695, %v376_v54  ;;  %v1064_v57 = vmul.f32 -1.442695, %v398_v55 }
 0x209   :  { %1117 = vpow2.f32 %v1063_v56 }
 0x20a   :  { %1119 = vpow2.f32 %v1064_v57 }
 0x20f   :  { %v1118_v58 = vpop.eup %1117 }
 0x210   :  { %v1120_v59 = vpop.eup %1119  ;;  %v380_v60 = vadd.f32 1.0, %v1118_v58 }
 0x211   :  { %v402_v61 = vadd.f32 1.0, %v1120_v59 }
 0x212   :  { %1121 = vrcp.f32 %v380_v60  ;;  %v392_v15 = vand.u32 2147483648, %v380_v60  ;;  %v390_v18 = vand.u32 2147483647, %v380_v60  ;;  %vm386_vm3 = vweird.f32 %v380_v60 }
 0x213   :  { %1123 = vrcp.f32 %v402_v61  ;;  %v414_v29 = vand.u32 2147483648, %v402_v61  ;;  %vm408_vm7 = vweird.f32 %v402_v61  ;;  %v412_v31 = vand.u32 2147483647, %v402_v61 }
 0x214   :  { %v393_v22 = vor.u32 1.1754944e-38, %v392_v15  ;;  %vm391_vm5 = vcmp.eq.f32.partialorder %v390_v18, 8.507059e+37 }
 0x215   :  { %v415_v34 = vor.u32 1.1754944e-38, %v414_v29  ;;  %vm413_vm9 = vcmp.eq.f32.partialorder %v412_v31, 8.507059e+37 }
 0x218   :  { %v1122_v62 = vpop.eup %1121 }
 0x219   :  { %v1124_v63 = vpop.eup %1123  ;;  %v382_v0 = vmul.f32 %v1122_v62, %v380_v60  ;;  %vm387_vm2 = vweird.f32 %v1122_v62 }
 0x21a   :  { %v404_v11 = vmul.f32 %v1124_v63, %v402_v61  ;;  %vm388_vm4 = vmor %vm386_vm3, %vm387_vm2  ;;  %vm409_vm6 = vweird.f32 %v1124_v63 }
 0x21b   :  { %v383_v14 = vsub.f32 1.0, %v382_v0  ;;  %vm410_vm8 = vmor %vm408_vm7, %vm409_vm6 }
 0x21c   :  { %v405_v16 = vsub.f32 1.0, %v404_v11 }
 0x21d   :  { %v384_v17 = vmul.f32 %v1122_v62, %v383_v14 }
 0x21e   :  { %v406_v20 = vmul.f32 %v1124_v63, %v405_v16 }
 0x21f   :  { %v385_v21 = vadd.f32 %v1122_v62, %v384_v17  ;;  %v539_v17 = vld [vmem:[#allocation3 + $0x58] sm:$0xff] }
 0x220   :  { %v407_v27 = vadd.f32 %v1124_v63, %v406_v20 }
 0x221   :  { %v389_v24 = vsel %vm388_vm4, %v1122_v62, %v385_v21 }
 0x222   :  { %v394_v25 = vsel %vm391_vm5, %v393_v22, %v389_v24  ;;  %v411_v33 = vsel %vm410_vm8, %v1124_v63, %v407_v27 }
 0x223   :  { %v420_v28 = vmul.f32 %v394_v25, %v372_v23  ;;  %v416_v35 = vsel %vm413_vm9, %v415_v34, %v411_v33 }
 0x224   :  { %v423_v36 = vsub.f32 1.0, %v416_v35  ;;  %v425_v39 = vmul.f32 %v416_v35, %v1403_v49 }
 0x225   :  { %v421_v32 = vadd.f32 %v420_v28, %v419_v26 }
 0x227   :  { %1125 = vtanh.f32 %v421_v32 }
 0x22d   :  { %v1126_v37 = vpop.eup %1125 }
 0x22e   :  { %v424_v38 = vmul.f32 %v1126_v37, %v423_v36 }
 0x230   :  { %v426_v40 = vadd.f32 %v425_v39, %v424_v38 }
 0x232   :  { %427 = vst.msk [vmem:[#allocation2] sm:$0xff] %vm51_vm0, %v426_v40 }
 0x233   :  { %429 = vst.msk [vmem:[#allocation8 + $0x10] sm:$0xff] %vm51_vm0, %v426_v40 }
 0x239   :  { %v1427_v41 = vld [vmem:[#allocation2] sm:$0xff] }
 0x23a   :  { %1065 = vmatmul.msk.f32.vlgmr.msra.gmra.mxu1 %vm51_vm0, %v1427_v41  ;;  %1066 = vmatmul.msk.f32.vlgmr.msra.gmra.mxu2 %vm51_vm0, %v1427_v41 }
 0x23b   :  { %1067 = vmatmul.msk.f32.vlgmr.msra.gmra.mxu3 %vm51_vm0, %v1427_v41  ;;  %726 = vmatpush.msra.mxu1 %v1311_v7 }
 0x23c   :  { %806 = vmatpush.msra.mxu2 %v1294_v1  ;;  %826 = vmatpush.msra.mxu3 %v1296_v2 }
 0x23d   :  { %727 = vmatpush.msra.mxu1 %v1313_v8 }
 0x23e   :  { %807 = vmatpush.msra.mxu2 %v1298_v3  ;;  %827 = vmatpush.msra.mxu3 %v1302_v4 }
 0x23f   :  { %728 = vmatpush.msra.mxu1 %v1326_v12 }
 0x240   :  { %808 = vmatpush.msra.mxu2 %v1304_v5  ;;  %828 = vmatpush.msra.mxu3 %v1306_v6 }
 0x241   :  { %729 = vmatpush.msra.mxu1 %v1335_v13 }
 0x242   :  { %809 = vmatpush.msra.mxu2 %v1315_v9  ;;  %829 = vmatpush.msra.mxu3 %v1317_v10 }
 0x2b7   :  { %v451_v43 = vpop.f32.mrf.mxu1 }
 0x2b8   :  { %v496_v44 = vadd.f32 %v495_v42, %v451_v43 }
 0x2ba   :  { %v1068_v45 = vmul.f32 -1.442695, %v496_v44 }
 0x2bc   :  { %1127 = vpow2.f32 %v1068_v45 }
 0x2bd   :  { %v471_v47 = vpop.f32.mrf.mxu2 }
 0x2be   :  { %v518_v48 = vadd.f32 %v517_v46, %v471_v47  ;;  %v491_v61 = vpop.f32.mrf.mxu3 }
 0x2bf   :  { %v492_v14 = vadd.f32 %v1373_v30, %v491_v61 }
 0x2c0   :  { %v1069_v49 = vmul.f32 -1.442695, %v518_v48 }
 0x2c2   :  { %v1128_v50 = vpop.eup %1127  ;;  %1129 = vpow2.f32 %v1069_v49 }
 0x2c3   :  { %v500_v51 = vadd.f32 1.0, %v1128_v50 }
 0x2c5   :  { %1131 = vrcp.f32 %v500_v51  ;;  %v512_v57 = vand.u32 2147483648, %v500_v51  ;;  %v510_v59 = vand.u32 2147483647, %v500_v51  ;;  %vm506_vm11 = vweird.f32 %v500_v51 }
 0x2c7   :  { %v513_v0 = vor.u32 1.1754944e-38, %v512_v57  ;;  %vm511_vm13 = vcmp.eq.f32.partialorder %v510_v59, 8.507059e+37 }
 0x2c8   :  { %v1130_v52 = vpop.eup %1129 }
 0x2c9   :  { %v522_v53 = vadd.f32 1.0, %v1130_v52 }
 0x2cb   :  { %v1132_v54 = vpop.eup %1131  ;;  %1133 = vrcp.f32 %v522_v53  ;;  %v534_v19 = vand.u32 2147483648, %v522_v53  ;;  %v532_v21 = vand.u32 2147483647, %v522_v53  ;;  %vm528_vm15 = vweird.f32 %v522_v53 }
 0x2cc   :  { %v502_v55 = vmul.f32 %v1132_v54, %v500_v51  ;;  %vm507_vm10 = vweird.f32 %v1132_v54 }
 0x2cd   :  { %vm508_vm12 = vmor %vm506_vm11, %vm507_vm10  ;;  %v535_v24 = vor.u32 1.1754944e-38, %v534_v19  ;;  %vm533_vm2 = vcmp.eq.f32.partialorder %v532_v21, 8.507059e+37  ;;  %v735_v21 = vld [vmem:[#allocation3 + $0x78] sm:$0xff] }
 0x2ce   :  { %v503_v56 = vsub.f32 1.0, %v502_v55  ;;  %v659_v55 = vld [vmem:[#allocation3 + $0x70] sm:$0xff] }
 0x2d0   :  { %v504_v58 = vmul.f32 %v1132_v54, %v503_v56 }
 0x2d1   :  { %v1134_v60 = vpop.eup %1133 }
 0x2d2   :  { %v524_v62 = vmul.f32 %v1134_v60, %v522_v53  ;;  %v505_v63 = vadd.f32 %v1132_v54, %v504_v58  ;;  %vm529_vm14 = vweird.f32 %v1134_v60 }
 0x2d3   :  { %vm530_vm1 = vmor %vm528_vm15, %vm529_vm14 }
 0x2d4   :  { %v525_v11 = vsub.f32 1.0, %v524_v62  ;;  %v509_v15 = vsel %vm508_vm12, %v1132_v54, %v505_v63 }
 0x2d5   :  { %v514_v16 = vsel %vm511_vm13, %v513_v0, %v509_v15 }
 0x2d6   :  { %v526_v18 = vmul.f32 %v1134_v60, %v525_v11  ;;  %v540_v20 = vmul.f32 %v514_v16, %v492_v14 }
 0x2d8   :  { %v527_v22 = vadd.f32 %v1134_v60, %v526_v18  ;;  %v541_v23 = vadd.f32 %v540_v20, %v539_v17  ;;  %v757_v17 = vld [vmem:[#allocation3 + $0x80] sm:$0xff] }
 0x2da   :  { %v531_v25 = vsel %vm530_vm1, %v1134_v60, %v527_v22  ;;  %1135 = vtanh.f32 %v541_v23 }
 0x2db   :  { %v536_v26 = vsel %vm533_vm2, %v535_v24, %v531_v25 }
 0x2dc   :  { %v543_v27 = vsub.f32 1.0, %v536_v26  ;;  %v545_v31 = vmul.f32 %v536_v26, %v1427_v41 }
 0x2e0   :  { %v1136_v28 = vpop.eup %1135 }
 0x2e1   :  { %v544_v29 = vmul.f32 %v1136_v28, %v543_v27 }
 0x2e3   :  { %v546_v32 = vadd.f32 %v545_v31, %v544_v29 }
 0x2e5   :  { %547 = vst.msk [vmem:[#allocation2] sm:$0xff] %vm51_vm0, %v546_v32 }
 0x2e6   :  { %549 = vst.msk [vmem:[#allocation8 + $0x18] sm:$0xff] %vm51_vm0, %v546_v32 }
 0x2ec   :  { %v1451_v33 = vld [vmem:[#allocation2] sm:$0xff] }
 0x2ed   :  { %1070 = vmatmul.msk.f32.vlgmr.msrb.gmra.mxu0 %vm51_vm0, %v1451_v33  ;;  %1071 = vmatmul.msk.f32.vlgmr.msrb.gmra.mxu1 %vm51_vm0, %v1451_v33 }
 0x2ee   :  { %1072 = vmatmul.msk.f32.vlgmr.msrb.gmra.mxu2 %vm51_vm0, %v1451_v33  ;;  %846 = vmatpush.msrb.mxu0 %v1311_v7 }
 0x2ef   :  { %926 = vmatpush.msrb.mxu1 %v1294_v1  ;;  %946 = vmatpush.msrb.mxu2 %v1296_v2  ;;  %v615_v1 = vld [vmem:[#allocation3 + $0x60] sm:$0xff]  ;;  %v637_v2 = vld [vmem:[#allocation3 + $0x68] sm:$0xff] }
 0x2f0   :  { %847 = vmatpush.msrb.mxu0 %v1313_v8 }
 0x2f1   :  { %927 = vmatpush.msrb.mxu1 %v1298_v3  ;;  %947 = vmatpush.msrb.mxu2 %v1302_v4 }
 0x2f2   :  { %848 = vmatpush.msrb.mxu0 %v1326_v12 }
 0x2f3   :  { %928 = vmatpush.msrb.mxu1 %v1304_v5  ;;  %948 = vmatpush.msrb.mxu2 %v1306_v6 }
 0x2f4   :  { %849 = vmatpush.msrb.mxu0 %v1335_v13 }
 0x2f5   :  { %929 = vmatpush.msrb.mxu1 %v1315_v9  ;;  %949 = vmatpush.msrb.mxu2 %v1317_v10 }
 0x36a   :  { %v571_v34 = vpop.f32.mrf.mxu0  ;;  %v591_v35 = vpop.f32.mrf.mxu1 }
 0x36b   :  { %v616_v36 = vadd.f32 %v615_v1, %v571_v34  ;;  %v638_v3 = vadd.f32 %v637_v2, %v591_v35 }
 0x36d   :  { %v1073_v37 = vmul.f32 -1.442695, %v616_v36  ;;  %v1074_v4 = vmul.f32 -1.442695, %v638_v3 }
 0x36f   :  { %1137 = vpow2.f32 %v1073_v37 }
 0x370   :  { %1139 = vpow2.f32 %v1074_v4 }
 0x371   :  { %v611_v48 = vpop.f32.mrf.mxu2 }
 0x372   :  { %v612_v51 = vadd.f32 %v1373_v30, %v611_v48 }
 0x375   :  { %v1138_v38 = vpop.eup %1137 }
 0x376   :  { %v1140_v5 = vpop.eup %1139  ;;  %v620_v39 = vadd.f32 1.0, %v1138_v38 }
 0x377   :  { %v642_v6 = vadd.f32 1.0, %v1140_v5  ;;  %v779_v5 = vld [vmem:[#allocation3 + $0x88] sm:$0xff] }
 0x378   :  { %1141 = vrcp.f32 %v620_v39  ;;  %v632_v44 = vand.u32 2147483648, %v620_v39  ;;  %v630_v46 = vand.u32 2147483647, %v620_v39  ;;  %vm626_vm4 = vweird.f32 %v620_v39 }
 0x379   :  { %1143 = vrcp.f32 %v642_v6  ;;  %v654_v56 = vand.u32 2147483648, %v642_v6  ;;  %vm648_vm8 = vweird.f32 %v642_v6  ;;  %v652_v58 = vand.u32 2147483647, %v642_v6 }
 0x37a   :  { %v633_v50 = vor.u32 1.1754944e-38, %v632_v44  ;;  %vm631_vm6 = vcmp.eq.f32.partialorder %v630_v46, 8.507059e+37 }
 0x37b   :  { %v655_v61 = vor.u32 1.1754944e-38, %v654_v56  ;;  %vm653_vm10 = vcmp.eq.f32.partialorder %v652_v58, 8.507059e+37 }
 0x37e   :  { %v1142_v40 = vpop.eup %1141 }
 0x37f   :  { %v1144_v9 = vpop.eup %1143  ;;  %v622_v41 = vmul.f32 %v1142_v40, %v620_v39  ;;  %vm627_vm3 = vweird.f32 %v1142_v40 }
 0x380   :  { %v644_v10 = vmul.f32 %v1144_v9, %v642_v6  ;;  %vm628_vm5 = vmor %vm626_vm4, %vm627_vm3  ;;  %vm649_vm7 = vweird.f32 %v1144_v9 }
 0x381   :  { %v623_v42 = vsub.f32 1.0, %v622_v41  ;;  %vm650_vm9 = vmor %vm648_vm8, %vm649_vm7 }
 0x382   :  { %v645_v43 = vsub.f32 1.0, %v644_v10 }
 0x383   :  { %v624_v45 = vmul.f32 %v1142_v40, %v623_v42 }
 0x384   :  { %v646_v47 = vmul.f32 %v1144_v9, %v645_v43 }
 0x385   :  { %v625_v49 = vadd.f32 %v1142_v40, %v624_v45 }
 0x386   :  { %v647_v53 = vadd.f32 %v1144_v9, %v646_v47 }
 0x387   :  { %v629_v52 = vsel %vm628_vm5, %v1142_v40, %v625_v49  ;;  %v855_v49 = vld [vmem:[#allocation3 + $0x90] sm:$0xff] }
 0x388   :  { %v634_v54 = vsel %vm631_vm6, %v633_v50, %v629_v52  ;;  %v651_v60 = vsel %vm650_vm9, %v1144_v9, %v647_v53  ;;  %v877_v50 = vld [vmem:[#allocation3 + $0x98] sm:$0xff] }
 0x389   :  { %v660_v57 = vmul.f32 %v634_v54, %v612_v51  ;;  %v656_v62 = vsel %vm653_vm10, %v655_v61, %v651_v60 }
 0x38a   :  { %v663_v63 = vsub.f32 1.0, %v656_v62  ;;  %v665_v14 = vmul.f32 %v656_v62, %v1451_v33 }
 0x38b   :  { %v661_v59 = vadd.f32 %v660_v57, %v659_v55 }
 0x38d   :  { %1145 = vtanh.f32 %v661_v59 }
 0x393   :  { %v1146_v0 = vpop.eup %1145 }
 0x394   :  { %v664_v11 = vmul.f32 %v1146_v0, %v663_v63 }
 0x396   :  { %v666_v15 = vadd.f32 %v665_v14, %v664_v11 }
 0x398   :  { %667 = vst.msk [vmem:[#allocation2] sm:$0xff] %vm51_vm0, %v666_v15 }
 0x399   :  { %669 = vst.msk [vmem:[#allocation8 + $0x20] sm:$0xff] %vm51_vm0, %v666_v15 }
 0x39f   :  { %v670_v16 = vld [vmem:[#allocation2] sm:$0xff] }
 0x3a0   :  { %1075 = vmatmul.msk.f32.vlgmr.msrb.gmra.mxu3 %vm51_vm0, %v670_v16  ;;  %1076 = vmatmul.msk.f32.vlgmr.msra.gmra.mxu0 %vm51_vm0, %v670_v16 }
 0x3a1   :  { %1077 = vmatmul.msk.f32.vlgmr.msra.gmra.mxu1 %vm51_vm0, %v670_v16  ;;  %966 = vmatpush.msrb.mxu3 %v1311_v7 }
 0x3a3   :  { %967 = vmatpush.msrb.mxu3 %v1313_v8 }
 0x3a5   :  { %968 = vmatpush.msrb.mxu3 %v1326_v12 }
 0x3a7   :  { %969 = vmatpush.msrb.mxu3 %v1335_v13 }
 0x41d   :  { %v711_v18 = vpop.f32.mrf.mxu0 }
 0x41e   :  { %v758_v19 = vadd.f32 %v757_v17, %v711_v18  ;;  %v731_v34 = vpop.f32.mrf.mxu1 }
 0x41f   :  { %v732_v3 = vadd.f32 %v1373_v30, %v731_v34 }
 0x420   :  { %v1079_v20 = vmul.f32 -1.442695, %v758_v19 }
 0x422   :  { %1147 = vpow2.f32 %v1079_v20 }
 0x423   :  { %v691_v22 = vpop.f32.mrf.mxu3 }
 0x424   :  { %v736_v23 = vadd.f32 %v735_v21, %v691_v22 }
 0x426   :  { %v1078_v24 = vmul.f32 -1.442695, %v736_v23 }
 0x428   :  { %v1148_v25 = vpop.eup %1147  ;;  %1149 = vpow2.f32 %v1078_v24 }
 0x429   :  { %v762_v26 = vadd.f32 1.0, %v1148_v25  ;;  %v899_v25 = vld [vmem:[#allocation3 + $0xa0] sm:$0xff] }
 0x42b   :  { %1151 = vrcp.f32 %v762_v26  ;;  %v774_v39 = vand.u32 2147483648, %v762_v26  ;;  %vm768_vm1 = vweird.f32 %v762_v26  ;;  %v772_v40 = vand.u32 2147483647, %v762_v26 }
 0x42d   :  { %v775_v10 = vor.u32 1.1754944e-38, %v774_v39  ;;  %vm773_vm3 = vcmp.eq.f32.partialorder %v772_v40, 8.507059e+37 }
 0x42e   :  { %v1150_v7 = vpop.eup %1149 }
 0x42f   :  { %v740_v27 = vadd.f32 1.0, %v1150_v7 }
 0x431   :  { %1153 = vrcp.f32 %v740_v27  ;;  %v1152_v8 = vpop.eup %1151  ;;  %v752_v32 = vand.u32 2147483648, %v740_v27  ;;  %v750_v1 = vand.u32 2147483647, %v740_v27  ;;  %vm746_vm12 = vweird.f32 %v740_v27 }
 0x432   :  { %v764_v12 = vmul.f32 %v1152_v8, %v762_v26  ;;  %vm769_vm15 = vweird.f32 %v1152_v8 }
 0x433   :  { %v753_v36 = vor.u32 1.1754944e-38, %v752_v32  ;;  %vm751_vm14 = vcmp.eq.f32.partialorder %v750_v1, 8.507059e+37  ;;  %vm770_vm2 = vmor %vm768_vm1, %vm769_vm15 }
 0x434   :  { %v765_v29 = vsub.f32 1.0, %v764_v12 }
 0x436   :  { %v766_v2 = vmul.f32 %v1152_v8, %v765_v29 }
 0x437   :  { %v1154_v28 = vpop.eup %1153 }
 0x438   :  { %v742_v13 = vmul.f32 %v1154_v28, %v740_v27  ;;  %vm747_vm11 = vweird.f32 %v1154_v28  ;;  %v767_v4 = vadd.f32 %v1152_v8, %v766_v2 }
 0x439   :  { %vm748_vm13 = vmor %vm746_vm12, %vm747_vm11 }
 0x43a   :  { %v743_v31 = vsub.f32 1.0, %v742_v13  ;;  %v771_v41 = vsel %vm770_vm2, %v1152_v8, %v767_v4  ;;  %v997_v4 = vld [vmem:[#allocation3 + $0xb0] sm:$0xff] }
 0x43b   :  { %v776_v42 = vsel %vm773_vm3, %v775_v10, %v771_v41 }
 0x43c   :  { %v744_v33 = vmul.f32 %v1154_v28, %v743_v31  ;;  %v783_v43 = vsub.f32 1.0, %v776_v42  ;;  %v785_v45 = vmul.f32 %v776_v42, %v670_v16 }
 0x43e   :  { %v745_v35 = vadd.f32 %v1154_v28, %v744_v33 }
 0x440   :  { %v749_v37 = vsel %vm748_vm13, %v1154_v28, %v745_v35  ;;  %v975_v35 = vld [vmem:[#allocation3 + $0xa8] sm:$0xff] }
 0x441   :  { %v754_v38 = vsel %vm751_vm14, %v753_v36, %v749_v37 }
 0x442   :  { %v780_v6 = vmul.f32 %v754_v38, %v732_v3 }
 0x444   :  { %v781_v9 = vadd.f32 %v780_v6, %v779_v5 }
 0x446   :  { %1155 = vtanh.f32 %v781_v9 }
 0x44c   :  { %v1156_v44 = vpop.eup %1155 }
 0x44d   :  { %v784_v46 = vmul.f32 %v1156_v44, %v783_v43 }
 0x44f   :  { %v786_v47 = vadd.f32 %v785_v45, %v784_v46 }
 0x451   :  { %787 = vst.msk [vmem:[#allocation2] sm:$0xff] %vm51_vm0, %v786_v47 }
 0x452   :  { %789 = vst.msk [vmem:[#allocation8 + $0x28] sm:$0xff] %vm51_vm0, %v786_v47 }
 0x458   :  { %v790_v48 = vld [vmem:[#allocation2] sm:$0xff] }
 0x459   :  { %1080 = vmatmul.msk.f32.vlgmr.msra.gmra.mxu2 %vm51_vm0, %v790_v48  ;;  %1081 = vmatmul.msk.f32.vlgmr.msra.gmra.mxu3 %vm51_vm0, %v790_v48 }
 0x45a   :  { %1082 = vmatmul.msk.f32.vlgmr.msrb.gmra.mxu0 %vm51_vm0, %v790_v48 }
 0x4d7   :  { %v851_v18 = vpop.f32.mrf.mxu0 }
 0x4d8   :  { %v852_v22 = vadd.f32 %v1373_v30, %v851_v18 }
 0x4dc   :  { %v811_v51 = vpop.f32.mrf.mxu2  ;;  %v831_v52 = vpop.f32.mrf.mxu3 }
 0x4dd   :  { %v856_v53 = vadd.f32 %v855_v49, %v811_v51  ;;  %v878_v54 = vadd.f32 %v877_v50, %v831_v52 }
 0x4df   :  { %v1083_v55 = vmul.f32 -1.442695, %v856_v53  ;;  %v1084_v56 = vmul.f32 -1.442695, %v878_v54 }
 0x4e1   :  { %1157 = vpow2.f32 %v1083_v55 }
 0x4e2   :  { %1159 = vpow2.f32 %v1084_v56  ;;  %v1019_v56 = vld [vmem:[#allocation3 + $0xb8] sm:$0xff] }
 0x4e7   :  { %v1158_v57 = vpop.eup %1157 }
 0x4e8   :  { %v1160_v58 = vpop.eup %1159  ;;  %v860_v59 = vadd.f32 1.0, %v1158_v57 }
 0x4e9   :  { %v882_v60 = vadd.f32 1.0, %v1160_v58 }
 0x4ea   :  { %1161 = vrcp.f32 %v860_v59  ;;  %v872_v14 = vand.u32 2147483648, %v860_v59  ;;  %v870_v17 = vand.u32 2147483647, %v860_v59  ;;  %vm866_vm5 = vweird.f32 %v860_v59 }
 0x4eb   :  { %1163 = vrcp.f32 %v882_v60  ;;  %v894_v27 = vand.u32 2147483648, %v882_v60  ;;  %vm888_vm9 = vweird.f32 %v882_v60  ;;  %v892_v8 = vand.u32 2147483647, %v882_v60 }
 0x4ec   :  { %v873_v21 = vor.u32 1.1754944e-38, %v872_v14  ;;  %vm871_vm7 = vcmp.eq.f32.partialorder %v870_v17, 8.507059e+37 }
 0x4ed   :  { %v895_v13 = vor.u32 1.1754944e-38, %v894_v27  ;;  %vm893_vm11 = vcmp.eq.f32.partialorder %v892_v8, 8.507059e+37 }
 0x4f0   :  { %v1162_v61 = vpop.eup %1161 }
 0x4f1   :  { %v1164_v62 = vpop.eup %1163  ;;  %v862_v63 = vmul.f32 %v1162_v61, %v860_v59  ;;  %vm867_vm4 = vweird.f32 %v1162_v61 }
 0x4f2   :  { %v884_v0 = vmul.f32 %v1164_v62, %v882_v60  ;;  %vm868_vm6 = vmor %vm866_vm5, %vm867_vm4  ;;  %vm889_vm8 = vweird.f32 %v1164_v62 }
 0x4f3   :  { %v863_v11 = vsub.f32 1.0, %v862_v63  ;;  %vm890_vm10 = vmor %vm888_vm9, %vm889_vm8 }
 0x4f4   :  { %v885_v15 = vsub.f32 1.0, %v884_v0 }
 0x4f5   :  { %v864_v16 = vmul.f32 %v1162_v61, %v863_v11 }
 0x4f6   :  { %v886_v19 = vmul.f32 %v1164_v62, %v885_v15 }
 0x4f7   :  { %v865_v20 = vadd.f32 %v1162_v61, %v864_v16 }
 0x4f8   :  { %v887_v26 = vadd.f32 %v1164_v62, %v886_v19 }
 0x4f9   :  { %v869_v23 = vsel %vm868_vm6, %v1162_v61, %v865_v20 }
 0x4fa   :  { %v874_v24 = vsel %vm871_vm7, %v873_v21, %v869_v23  ;;  %v891_v28 = vsel %vm890_vm10, %v1164_v62, %v887_v26 }
 0x4fb   :  { %v900_v7 = vmul.f32 %v874_v24, %v852_v22  ;;  %v896_v29 = vsel %vm893_vm11, %v895_v13, %v891_v28 }
 0x4fc   :  { %v903_v31 = vsub.f32 1.0, %v896_v29  ;;  %v905_v1 = vmul.f32 %v896_v29, %v790_v48 }
 0x4fd   :  { %v901_v12 = vadd.f32 %v900_v7, %v899_v25 }
 0x4ff   :  { %1165 = vtanh.f32 %v901_v12 }
 0x505   :  { %v1166_v32 = vpop.eup %1165 }
 0x506   :  { %v904_v33 = vmul.f32 %v1166_v32, %v903_v31 }
 0x508   :  { %v906_v2 = vadd.f32 %v905_v1, %v904_v33 }
 0x50a   :  { %907 = vst.msk [vmem:[#allocation2] sm:$0xff] %vm51_vm0, %v906_v2 }
 0x50b   :  { %909 = vst.msk [vmem:[#allocation8 + $0x30] sm:$0xff] %vm51_vm0, %v906_v2 }
 0x511   :  { %v910_v34 = vld [vmem:[#allocation2] sm:$0xff] }
 0x512   :  { %1085 = vmatmul.msk.f32.vlgmr.msrb.gmra.mxu1 %vm51_vm0, %v910_v34  ;;  %1086 = vmatmul.msk.f32.vlgmr.msrb.gmra.mxu2 %vm51_vm0, %v910_v34 }
 0x513   :  { %1087 = vmatmul.msk.f32.vlgmr.msrb.gmra.mxu3 %vm51_vm0, %v910_v34 }
 0x58f   :  { %v931_v36 = vpop.f32.mrf.mxu1 }
 0x590   :  { %v976_v3 = vadd.f32 %v975_v35, %v931_v36 }
 0x592   :  { %v1088_v37 = vmul.f32 -1.442695, %v976_v3 }
 0x594   :  { %1167 = vpow2.f32 %v1088_v37 }
 0x595   :  { %v951_v38 = vpop.f32.mrf.mxu2 }
 0x596   :  { %v998_v5 = vadd.f32 %v997_v4, %v951_v38  ;;  %v971_v48 = vpop.f32.mrf.mxu3 }
 0x597   :  { %v972_v53 = vadd.f32 %v1373_v30, %v971_v48 }
 0x598   :  { %v1089_v39 = vmul.f32 -1.442695, %v998_v5 }
 0x59a   :  { %v1168_v6 = vpop.eup %1167  ;;  %1169 = vpow2.f32 %v1089_v39 }
 0x59b   :  { %v980_v40 = vadd.f32 1.0, %v1168_v6 }
 0x59d   :  { %1171 = vrcp.f32 %v980_v40  ;;  %v992_v44 = vand.u32 2147483648, %v980_v40  ;;  %v990_v46 = vand.u32 2147483647, %v980_v40  ;;  %vm986_vm13 = vweird.f32 %v980_v40 }
 0x59f   :  { %v993_v51 = vor.u32 1.1754944e-38, %v992_v44  ;;  %vm991_vm15 = vcmp.eq.f32.partialorder %v990_v46, 8.507059e+37 }
 0x5a0   :  { %v1170_v9 = vpop.eup %1169 }
 0x5a1   :  { %v1002_v41 = vadd.f32 1.0, %v1170_v9 }
 0x5a3   :  { %v1172_v10 = vpop.eup %1171  ;;  %1173 = vrcp.f32 %v1002_v41  ;;  %v1014_v58 = vand.u32 2147483648, %v1002_v41  ;;  %v1012_v60 = vand.u32 2147483647, %v1002_v41  ;;  %vm1008_vm2 = vweird.f32 %v1002_v41 }
 0x5a4   :  { %v982_v42 = vmul.f32 %v1172_v10, %v980_v40  ;;  %vm987_vm12 = vweird.f32 %v1172_v10 }
 0x5a5   :  { %vm988_vm14 = vmor %vm986_vm13, %vm987_vm12  ;;  %v1015_v63 = vor.u32 1.1754944e-38, %v1014_v58  ;;  %vm1013_vm4 = vcmp.eq.f32.partialorder %v1012_v60, 8.507059e+37 }
 0x5a6   :  { %v983_v43 = vsub.f32 1.0, %v982_v42 }
 0x5a8   :  { %v984_v45 = vmul.f32 %v1172_v10, %v983_v43 }
 0x5a9   :  { %v1174_v47 = vpop.eup %1173 }
 0x5aa   :  { %v1004_v49 = vmul.f32 %v1174_v47, %v1002_v41  ;;  %v985_v50 = vadd.f32 %v1172_v10, %v984_v45  ;;  %vm1009_vm1 = vweird.f32 %v1174_v47 }
 0x5ab   :  { %vm1010_vm3 = vmor %vm1008_vm2, %vm1009_vm1 }
 0x5ac   :  { %v1005_v52 = vsub.f32 1.0, %v1004_v49  ;;  %v989_v54 = vsel %vm988_vm14, %v1172_v10, %v985_v50 }
 0x5ad   :  { %v994_v55 = vsel %vm991_vm15, %v993_v51, %v989_v54 }
 0x5ae   :  { %v1006_v57 = vmul.f32 %v1174_v47, %v1005_v52  ;;  %v1020_v59 = vmul.f32 %v994_v55, %v972_v53 }
 0x5b0   :  { %v1007_v61 = vadd.f32 %v1174_v47, %v1006_v57  ;;  %v1021_v62 = vadd.f32 %v1020_v59, %v1019_v56 }
 0x5b2   :  { %v1011_v0 = vsel %vm1010_vm3, %v1174_v47, %v1007_v61  ;;  %1175 = vtanh.f32 %v1021_v62 }
 0x5b3   :  { %v1016_v11 = vsel %vm1013_vm4, %v1015_v63, %v1011_v0 }
 0x5b4   :  { %v1023_v14 = vsub.f32 1.0, %v1016_v11  ;;  %v1025_v16 = vmul.f32 %v1016_v11, %v910_v34 }
 0x5b8   :  { %v1176_v30 = vpop.eup %1175 }
 0x5b9   :  { %v1024_v15 = vmul.f32 %v1176_v30, %v1023_v14 }
 0x5bb   :  { %v1026_v17 = vadd.f32 %v1025_v16, %v1024_v15 }
 0x5bd   :  { %1027 = vst.msk [vmem:[#allocation2] sm:$0xff] %vm51_vm0, %v1026_v17 }
 0x5be   :  { %1029 = vst.msk [vmem:[#allocation8 + $0x38] sm:$0xff] %vm51_vm0, %v1026_v17 }
 0x5bf   :  { %1042 = dma.vmem_to_hbm [thread:$0]  %s1035_s24, 1024, %s1037_s27, [#allocation5], %s1256_s20, %s1256_s20, %s1257_s21  }
 0x5c0   :  { %1253 = dma.done.wait [#allocation5], 1024  }
 0x5c1   :  { %1254 = vsyncadd [#allocation5], 4294966272 }
 0x5c2   :  { %1047 = vsyncpa [#allocation4], 1 }
 0x5c3   :  { %1048 = vsyncpa [#allocation7], 1 }
 0x5c4   :  { %1049 = vsyncpa [#allocation5], 1 }

// kernel: tpu_custom_call.1
= control target key start
LH: loop header
LB: loop body
LE: loop exit
PB: predicated region body
PF: predicated region fallthrough
CT: control target
= control target key end

     0   :  { %8 = vsyncpa [#allocation4], 0  ;;  %s1503_s0 = inlined_call_operand.hbm [shape: f32[8,3,8,32], index: 0, kind: input, shape index: {}]   ;;  %s1504_s1 = inlined_call_operand.hbm [shape: f32[3,32,32], index: 1, kind: input, shape index: {}]   ;;  %s1505_s2 = inlined_call_operand.vmem [shape: f32[1,32], index: 2, kind: input, shape index: {}]   ;;  %s1506_s3 = inlined_call_operand.hbm [shape: f32[8,8,32], index: 3, kind: output, shape index: {}]  }
   0x1   :  { %9 = vsyncpa [#allocation7], 0 }
   0x2   :  { %10 = vsyncpa [#allocation5], 0  ;;  %s15_s14 = sshll.u32 %s1503_s0, 4  ;;  %s1255_s15 = smov [#allocation3]   ;;  %s16_s14 = int_to_ptr.hbm [resolvable:$true] %s15_s14 }
   0x3   :  { %s17_s16 = sshll.u32 %s1255_s15, 4  ;;  %s28_s19 = sshll.u32 %s1504_s1, 4  ;;  %s18_s16 = int_to_ptr.vmem [resolvable:$true] %s17_s16  ;;  %s29_s19 = int_to_ptr.hbm [resolvable:$true] %s28_s19 }
   0x4   :  { %s1256_s20 = smov 128   ;;  %s1257_s21 = smov 8  }
   0x5   :  { %23 = dma.hbm_to_vmem [thread:$0]  %s16_s14, 3072, %s18_s16, [#allocation4], %s1256_s20, %s1256_s20, %s1257_s21  }
   0x6   :  { %s1258_s22 = smov [#allocation6]  }
   0x7   :  { %s30_s23 = sshll.u32 %s1258_s22, 4  ;;  %s31_s23 = int_to_ptr.vmem [resolvable:$true] %s30_s23 }
   0x8   :  { %36 = dma.hbm_to_vmem [thread:$0]  %s29_s19, 1536, %s31_s23, [#allocation7], %s1256_s20, %s1256_s20, %s1257_s21  }
   0x9   :  { %1249 = dma.done.wait [#allocation4], 3072  }
   0xa   :  { %1250 = vsyncadd [#allocation4], 4294964224 }
   0xb   :  { %1251 = dma.done.wait [#allocation7], 1536  }
   0xc   :  { %1252 = vsyncadd [#allocation7], 4294965760  ;;  %vm51_vm0 = vcmask 261120   ;;  %v1259_v0 = vmov 0.0   ;;  %v1294_v1 = vld [vmem:[#allocation6 + $0x18] sm:$0xff]  ;;  %v1298_v3 = vld [vmem:[#allocation6 + $0x10] sm:$0xff] }
   0xd   :  { %52 = vst.msk [vmem:[#allocation2] sm:$0xff] %vm51_vm0, %v1259_v0  ;;  %v1296_v2 = vld [vmem:[#allocation6 + $0x38] sm:$0xff]  ;;  %88 = vmatpush.msra.mxu0 %v1294_v1  ;;  %v1302_v4 = vld [vmem:[#allocation6 + $0x30] sm:$0xff]  ;;  %v1304_v5 = vld [vmem:[#allocation6 + $0x8] sm:$0xff]  ;;  %206 = vmatpush.msra.mxu3 %v1294_v1  ;;  %s1036_s27 = sshll.u32 %s1506_s3, 4  ;;  %s1037_s27 = int_to_ptr.hbm [resolvable:$true] %s1036_s27 }
   0xe   :  { %108 = vmatpush.msra.mxu1 %v1296_v2  ;;  %v1306_v6 = vld [vmem:[#allocation6 + $0x28] sm:$0xff]  ;;  %v1311_v7 = vld [vmem:[#allocation6 + $0x58] sm:$0xff]  ;;  %v1313_v8 = vld [vmem:[#allocation6 + $0x50] sm:$0xff] }
   0xf   :  { %89 = vmatpush.msra.mxu0 %v1298_v3  ;;  %v1315_v9 = vld [vmem:[#allocation6] sm:$0xff]  ;;  %128 = vmatpush.msra.mxu2 %v1311_v7  ;;  %v1326_v12 = vld [vmem:[#allocation6 + $0x48] sm:$0xff]  ;;  %v1373_v30 = vld [vmem:[%s1505_s2] ss:$0 sm:$0xff]  ;;  %s1260_s2 = smov [#allocation8]  }
  0x10   :  { %109 = vmatpush.msra.mxu1 %v1302_v4  ;;  %v1317_v10 = vld [vmem:[#allocation6 + $0x20] sm:$0xff]  ;;  %207 = vmatpush.msra.mxu3 %v1298_v3  ;;  %v158_v15 = vld [vmem:[#allocation3 + $0x8] sm:$0xff]  ;;  %v180_v44 = vld [vmem:[#allocation3 + $0x10] sm:$0xff]  ;;  %s1034_s24 = sshll.u32 %s1260_s2, 4  ;;  %s1035_s24 = int_to_ptr.vmem [resolvable:$true] %s1034_s24 }
  0x11   :  { %90 = vmatpush.msra.mxu0 %v1304_v5  ;;  %129 = vmatpush.msra.mxu2 %v1313_v8  ;;  %v1335_v13 = vld [vmem:[#allocation6 + $0x40] sm:$0xff]  ;;  %v255_v62 = vld [vmem:[#allocation3 + $0x18] sm:$0xff] }
  0x12   :  { %110 = vmatpush.msra.mxu1 %v1306_v6  ;;  %208 = vmatpush.msra.mxu3 %v1304_v5  ;;  %v136_v14 = vld [vmem:[#allocation3] sm:$0xff] }
  0x13   :  { %91 = vmatpush.msra.mxu0 %v1315_v9  ;;  %130 = vmatpush.msra.mxu2 %v1326_v12  ;;  %v277_v58 = vld [vmem:[#allocation3 + $0x20] sm:$0xff] }
  0x14   :  { %v1323_v11 = vld [vmem:[#allocation2] sm:$0xff]  ;;  %111 = vmatpush.msra.mxu1 %v1317_v10  ;;  %209 = vmatpush.msra.mxu3 %v1315_v9 }
  0x15   :  { %1050 = vmatmul.msk.f32.vlgmr.msra.gmra.mxu0 %vm51_vm0, %v1323_v11  ;;  %1051 = vmatmul.msk.f32.vlgmr.msra.gmra.mxu1 %vm51_vm0, %v1323_v11 }
  0x16   :  { %226 = vmatpush.msrb.mxu0 %v1296_v2  ;;  %246 = vmatpush.msrb.mxu1 %v1311_v7 }
  0x17   :  { %131 = vmatpush.msra.mxu2 %v1335_v13  ;;  %346 = vmatpush.msrb.mxu3 %v1296_v2 }
  0x18   :  { %227 = vmatpush.msrb.mxu0 %v1302_v4  ;;  %1052 = vmatmul.msk.f32.vlgmr.msra.gmra.mxu2 %vm51_vm0, %v1323_v11 }
  0x19   :  { %247 = vmatpush.msrb.mxu1 %v1313_v8  ;;  %326 = vmatpush.msrb.mxu2 %v1294_v1 }
  0x1a   :  { %228 = vmatpush.msrb.mxu0 %v1306_v6  ;;  %347 = vmatpush.msrb.mxu3 %v1302_v4 }
  0x1b   :  { %248 = vmatpush.msrb.mxu1 %v1326_v12  ;;  %327 = vmatpush.msrb.mxu2 %v1298_v3 }
  0x1c   :  { %229 = vmatpush.msrb.mxu0 %v1317_v10  ;;  %348 = vmatpush.msrb.mxu3 %v1306_v6 }
  0x1d   :  { %249 = vmatpush.msrb.mxu1 %v1335_v13  ;;  %328 = vmatpush.msrb.mxu2 %v1304_v5 }
  0x1e   :  { %366 = vmatpush.msra.mxu0 %v1311_v7  ;;  %349 = vmatpush.msrb.mxu3 %v1317_v10 }
  0x1f   :  { %446 = vmatpush.msra.mxu1 %v1294_v1  ;;  %329 = vmatpush.msrb.mxu2 %v1315_v9 }
  0x20   :  { %367 = vmatpush.msra.mxu0 %v1313_v8 }
  0x21   :  { %466 = vmatpush.msra.mxu2 %v1296_v2  ;;  %447 = vmatpush.msra.mxu1 %v1298_v3 }
  0x22   :  { %368 = vmatpush.msra.mxu0 %v1326_v12 }
  0x23   :  { %467 = vmatpush.msra.mxu2 %v1302_v4  ;;  %448 = vmatpush.msra.mxu1 %v1304_v5 }
  0x24   :  { %369 = vmatpush.msra.mxu0 %v1335_v13 }
  0x25   :  { %468 = vmatpush.msra.mxu2 %v1306_v6  ;;  %449 = vmatpush.msra.mxu1 %v1315_v9 }
  0x27   :  { %469 = vmatpush.msra.mxu2 %v1317_v10 }
  0x92   :  { %v93_v16 = vpop.f32.mrf.mxu0  ;;  %v113_v17 = vpop.f32.mrf.mxu1 }
  0x93   :  { %v137_v18 = vadd.f32 %v136_v14, %v93_v16  ;;  %v159_v19 = vadd.f32 %v158_v15, %v113_v17 }
  0x95   :  { %v1053_v20 = vmul.f32 -1.442695, %v137_v18  ;;  %v1054_v21 = vmul.f32 -1.442695, %v159_v19 }
  0x97   :  { %1097 = vpow2.f32 %v1053_v20 }
  0x98   :  { %1099 = vpow2.f32 %v1054_v21 }
  0x9b   :  { %v133_v33 = vpop.f32.mrf.mxu2 }
  0x9c   :  { %v134_v38 = vadd.f32 %v1373_v30, %v133_v33 }
  0x9d   :  { %v1098_v22 = vpop.eup %1097 }
  0x9e   :  { %v1100_v23 = vpop.eup %1099  ;;  %v141_v24 = vadd.f32 1.0, %v1098_v22 }
  0x9f   :  { %v163_v25 = vadd.f32 1.0, %v1100_v23 }
  0xa0   :  { %1101 = vrcp.f32 %v141_v24  ;;  %v153_v34 = vand.u32 2147483648, %v141_v24  ;;  %v151_v36 = vand.u32 2147483647, %v141_v24  ;;  %vm147_vm2 = vweird.f32 %v141_v24 }
  0xa1   :  { %1103 = vrcp.f32 %v163_v25  ;;  %vm169_vm5 = vweird.f32 %v163_v25  ;;  %v175_v45 = vand.u32 2147483648, %v163_v25  ;;  %v173_v47 = vand.u32 2147483647, %v163_v25 }
  0xa2   :  { %v154_v40 = vor.u32 1.1754944e-38, %v153_v34  ;;  %vm152_vm4 = vcmp.eq.f32.partialorder %v151_v36, 8.507059e+37  ;;  %v299_v36 = vld [vmem:[#allocation3 + $0x28] sm:$0xff] }
  0xa3   :  { %v176_v50 = vor.u32 1.1754944e-38, %v175_v45  ;;  %vm174_vm8 = vcmp.eq.f32.partialorder %v173_v47, 8.507059e+37 }
  0xa6   :  { %v1102_v26 = vpop.eup %1101 }
  0xa7   :  { %v1104_v27 = vpop.eup %1103  ;;  %v143_v28 = vmul.f32 %v1102_v26, %v141_v24  ;;  %vm148_vm1 = vweird.f32 %v1102_v26 }
  0xa8   :  { %v165_v29 = vmul.f32 %v1104_v27, %v163_v25  ;;  %vm149_vm3 = vmor %vm147_vm2, %vm148_vm1  ;;  %vm170_vm6 = vweird.f32 %v1104_v27 }
  0xa9   :  { %v144_v31 = vsub.f32 1.0, %v143_v28  ;;  %vm171_vm7 = vmor %vm169_vm5, %vm170_vm6 }
  0xaa   :  { %v166_v32 = vsub.f32 1.0, %v165_v29 }
  0xab   :  { %v145_v35 = vmul.f32 %v1102_v26, %v144_v31 }
  0xac   :  { %v167_v37 = vmul.f32 %v1104_v27, %v166_v32 }
  0xad   :  { %v146_v39 = vadd.f32 %v1102_v26, %v145_v35 }
  0xae   :  { %v168_v42 = vadd.f32 %v1104_v27, %v167_v37 }
  0xaf   :  { %v150_v41 = vsel %vm149_vm3, %v1102_v26, %v146_v39 }
  0xb0   :  { %v155_v43 = vsel %vm152_vm4, %v154_v40, %v150_v41  ;;  %v172_v49 = vsel %vm171_vm7, %v1104_v27, %v168_v42 }
  0xb1   :  { %v181_v46 = vmul.f32 %v155_v43, %v134_v38  ;;  %v177_v51 = vsel %vm174_vm8, %v176_v50, %v172_v49  ;;  %v375_v50 = vld [vmem:[#allocation3 + $0x30] sm:$0xff] }
  0xb2   :  { %v184_v52 = vsub.f32 1.0, %v177_v51  ;;  %v186_v55 = vmul.f32 %v177_v51, %v1323_v11  ;;  %v397_v51 = vld [vmem:[#allocation3 + $0x38] sm:$0xff] }
  0xb3   :  { %v182_v48 = vadd.f32 %v181_v46, %v180_v44 }
  0xb5   :  { %1105 = vtanh.f32 %v182_v48 }
  0xbb   :  { %v1106_v53 = vpop.eup %1105 }
  0xbc   :  { %v185_v54 = vmul.f32 %v1106_v53, %v184_v52 }
  0xbe   :  { %v187_v56 = vadd.f32 %v186_v55, %v185_v54 }
  0xc0   :  { %188 = vst.msk [vmem:[#allocation2] sm:$0xff] %vm51_vm0, %v187_v56 }
  0xc1   :  { %189 = vst.msk [vmem:[#allocation8] sm:$0xff] %vm51_vm0, %v187_v56 }
  0xc7   :  { %v1379_v57 = vld [vmem:[#allocation2] sm:$0xff] }
  0xc8   :  { %1055 = vmatmul.msk.f32.vlgmr.msra.gmra.mxu3 %vm51_vm0, %v1379_v57  ;;  %1056 = vmatmul.msk.f32.vlgmr.msrb.gmra.mxu0 %vm51_vm0, %v1379_v57 }
  0xc9   :  { %1057 = vmatmul.msk.f32.vlgmr.msrb.gmra.mxu1 %vm51_vm0, %v1379_v57  ;;  %486 = vmatpush.msra.mxu3 %v1311_v7 }
  0xca   :  { %566 = vmatpush.msrb.mxu0 %v1294_v1  ;;  %586 = vmatpush.msrb.mxu1 %v1296_v2 }
  0xcb   :  { %487 = vmatpush.msra.mxu3 %v1313_v8 }
  0xcc   :  { %567 = vmatpush.msrb.mxu0 %v1298_v3  ;;  %587 = vmatpush.msrb.mxu1 %v1302_v4 }
  0xcd   :  { %488 = vmatpush.msra.mxu3 %v1326_v12 }
  0xce   :  { %568 = vmatpush.msrb.mxu0 %v1304_v5  ;;  %588 = vmatpush.msrb.mxu1 %v1306_v6 }
  0xcf   :  { %489 = vmatpush.msra.mxu3 %v1335_v13 }
  0xd0   :  { %569 = vmatpush.msrb.mxu0 %v1315_v9  ;;  %589 = vmatpush.msrb.mxu1 %v1317_v10 }
 0x145   :  { %v231_v59 = vpop.f32.mrf.mxu0 }
 0x146   :  { %v278_v60 = vadd.f32 %v277_v58, %v231_v59  ;;  %v251_v28 = vpop.f32.mrf.mxu1 }
 0x147   :  { %v252_v32 = vadd.f32 %v1373_v30, %v251_v28 }
 0x148   :  { %v1059_v61 = vmul.f32 -1.442695, %v278_v60 }
 0x14a   :  { %1107 = vpow2.f32 %v1059_v61 }
 0x14b   :  { %v211_v63 = vpop.f32.mrf.mxu3 }
 0x14c   :  { %v256_v0 = vadd.f32 %v255_v62, %v211_v63 }
 0x14e   :  { %v1058_v11 = vmul.f32 -1.442695, %v256_v0 }
 0x150   :  { %v1108_v14 = vpop.eup %1107  ;;  %1109 = vpow2.f32 %v1058_v11 }
 0x151   :  { %v282_v15 = vadd.f32 1.0, %v1108_v14 }
 0x153   :  { %1111 = vrcp.f32 %v282_v15  ;;  %v294_v37 = vand.u32 2147483648, %v282_v15  ;;  %vm288_vm14 = vweird.f32 %v282_v15  ;;  %v292_v39 = vand.u32 2147483647, %v282_v15 }
 0x155   :  { %v295_v42 = vor.u32 1.1754944e-38, %v294_v37  ;;  %vm293_vm1 = vcmp.eq.f32.partialorder %v292_v39, 8.507059e+37 }
 0x156   :  { %v1110_v16 = vpop.eup %1109 }
 0x157   :  { %v260_v17 = vadd.f32 1.0, %v1110_v16 }
 0x159   :  { %1113 = vrcp.f32 %v260_v17  ;;  %v1112_v18 = vpop.eup %1111  ;;  %v272_v24 = vand.u32 2147483648, %v260_v17  ;;  %v270_v26 = vand.u32 2147483647, %v260_v17  ;;  %vm266_vm10 = vweird.f32 %v260_v17 }
 0x15a   :  { %v284_v19 = vmul.f32 %v1112_v18, %v282_v15  ;;  %vm289_vm13 = vweird.f32 %v1112_v18 }
 0x15b   :  { %v273_v31 = vor.u32 1.1754944e-38, %v272_v24  ;;  %vm271_vm12 = vcmp.eq.f32.partialorder %v270_v26, 8.507059e+37  ;;  %vm290_vm15 = vmor %vm288_vm14, %vm289_vm13  ;;  %v419_v26 = vld [vmem:[#allocation3 + $0x40] sm:$0xff] }
 0x15c   :  { %v285_v22 = vsub.f32 1.0, %v284_v19 }
 0x15e   :  { %v286_v27 = vmul.f32 %v1112_v18, %v285_v22 }
 0x15f   :  { %v1114_v20 = vpop.eup %1113 }
 0x160   :  { %v262_v21 = vmul.f32 %v1114_v20, %v260_v17  ;;  %vm267_vm9 = vweird.f32 %v1114_v20  ;;  %v287_v34 = vadd.f32 %v1112_v18, %v286_v27 }
 0x161   :  { %vm268_vm11 = vmor %vm266_vm10, %vm267_vm9 }
 0x162   :  { %v263_v23 = vsub.f32 1.0, %v262_v21  ;;  %v291_v41 = vsel %vm290_vm15, %v1112_v18, %v287_v34 }
 0x163   :  { %v296_v43 = vsel %vm293_vm1, %v295_v42, %v291_v41  ;;  %v495_v42 = vld [vmem:[#allocation3 + $0x48] sm:$0xff] }
 0x164   :  { %v264_v25 = vmul.f32 %v1114_v20, %v263_v23  ;;  %v303_v44 = vsub.f32 1.0, %v296_v43  ;;  %v305_v46 = vmul.f32 %v296_v43, %v1379_v57 }
 0x166   :  { %v265_v29 = vadd.f32 %v1114_v20, %v264_v25 }
 0x168   :  { %v269_v33 = vsel %vm268_vm11, %v1114_v20, %v265_v29 }
 0x169   :  { %v274_v35 = vsel %vm271_vm12, %v273_v31, %v269_v33 }
 0x16a   :  { %v300_v38 = vmul.f32 %v274_v35, %v252_v32 }
 0x16c   :  { %v301_v40 = vadd.f32 %v300_v38, %v299_v36 }
 0x16e   :  { %1115 = vtanh.f32 %v301_v40 }
 0x174   :  { %v1116_v45 = vpop.eup %1115 }
 0x175   :  { %v304_v47 = vmul.f32 %v1116_v45, %v303_v44 }
 0x177   :  { %v306_v48 = vadd.f32 %v305_v46, %v304_v47  ;;  %v517_v46 = vld [vmem:[#allocation3 + $0x50] sm:$0xff] }
 0x179   :  { %307 = vst.msk [vmem:[#allocation2] sm:$0xff] %vm51_vm0, %v306_v48 }
 0x17a   :  { %309 = vst.msk [vmem:[#allocation8 + $0x8] sm:$0xff] %vm51_vm0, %v306_v48 }
 0x180   :  { %v1403_v49 = vld [vmem:[#allocation2] sm:$0xff] }
 0x181   :  { %1060 = vmatmul.msk.f32.vlgmr.msrb.gmra.mxu2 %vm51_vm0, %v1403_v49  ;;  %1061 = vmatmul.msk.f32.vlgmr.msrb.gmra.mxu3 %vm51_vm0, %v1403_v49 }
 0x182   :  { %1062 = vmatmul.msk.f32.vlgmr.msra.gmra.mxu0 %vm51_vm0, %v1403_v49  ;;  %606 = vmatpush.msrb.mxu2 %v1311_v7 }
 0x183   :  { %686 = vmatpush.msrb.mxu3 %v1294_v1  ;;  %706 = vmatpush.msra.mxu0 %v1296_v2 }
 0x184   :  { %607 = vmatpush.msrb.mxu2 %v1313_v8 }
 0x185   :  { %687 = vmatpush.msrb.mxu3 %v1298_v3  ;;  %707 = vmatpush.msra.mxu0 %v1302_v4 }
 0x186   :  { %608 = vmatpush.msrb.mxu2 %v1326_v12 }
 0x187   :  { %688 = vmatpush.msrb.mxu3 %v1304_v5  ;;  %708 = vmatpush.msra.mxu0 %v1306_v6 }
 0x188   :  { %609 = vmatpush.msrb.mxu2 %v1335_v13 }
 0x189   :  { %689 = vmatpush.msrb.mxu3 %v1315_v9  ;;  %709 = vmatpush.msra.mxu0 %v1317_v10 }
 0x1ff   :  { %v371_v19 = vpop.f32.mrf.mxu0 }
 0x200   :  { %v372_v23 = vadd.f32 %v1373_v30, %v371_v19 }
 0x204   :  { %v331_v52 = vpop.f32.mrf.mxu2  ;;  %v351_v53 = vpop.f32.mrf.mxu3 }
 0x205   :  { %v376_v54 = vadd.f32 %v375_v50, %v331_v52  ;;  %v398_v55 = vadd.f32 %v397_v51, %v351_v53 }
 0x207   :  { %v1063_v56 = vmul.f32 -1.442695, %v376_v54  ;;  %v1064_v57 = vmul.f32 -1.442695, %v398_v55 }
 0x209   :  { %1117 = vpow2.f32 %v1063_v56 }
 0x20a   :  { %1119 = vpow2.f32 %v1064_v57 }
 0x20f   :  { %v1118_v58 = vpop.eup %1117 }
 0x210   :  { %v1120_v59 = vpop.eup %1119  ;;  %v380_v60 = vadd.f32 1.0, %v1118_v58 }
 0x211   :  { %v402_v61 = vadd.f32 1.0, %v1120_v59 }
 0x212   :  { %1121 = vrcp.f32 %v380_v60  ;;  %v392_v15 = vand.u32 2147483648, %v380_v60  ;;  %v390_v18 = vand.u32 2147483647, %v380_v60  ;;  %vm386_vm3 = vweird.f32 %v380_v60 }
 0x213   :  { %1123 = vrcp.f32 %v402_v61  ;;  %v414_v29 = vand.u32 2147483648, %v402_v61  ;;  %vm408_vm7 = vweird.f32 %v402_v61  ;;  %v412_v31 = vand.u32 2147483647, %v402_v61 }
 0x214   :  { %v393_v22 = vor.u32 1.1754944e-38, %v392_v15  ;;  %vm391_vm5 = vcmp.eq.f32.partialorder %v390_v18, 8.507059e+37 }
 0x215   :  { %v415_v34 = vor.u32 1.1754944e-38, %v414_v29  ;;  %vm413_vm9 = vcmp.eq.f32.partialorder %v412_v31, 8.507059e+37 }
 0x218   :  { %v1122_v62 = vpop.eup %1121 }
 0x219   :  { %v1124_v63 = vpop.eup %1123  ;;  %v382_v0 = vmul.f32 %v1122_v62, %v380_v60  ;;  %vm387_vm2 = vweird.f32 %v1122_v62 }
 0x21a   :  { %v404_v11 = vmul.f32 %v1124_v63, %v402_v61  ;;  %vm388_vm4 = vmor %vm386_vm3, %vm387_vm2  ;;  %vm409_vm6 = vweird.f32 %v1124_v63 }
 0x21b   :  { %v383_v14 = vsub.f32 1.0, %v382_v0  ;;  %vm410_vm8 = vmor %vm408_vm7, %vm409_vm6 }
 0x21c   :  { %v405_v16 = vsub.f32 1.0, %v404_v11 }
 0x21d   :  { %v384_v17 = vmul.f32 %v1122_v62, %v383_v14 }
 0x21e   :  { %v406_v20 = vmul.f32 %v1124_v63, %v405_v16 }
 0x21f   :  { %v385_v21 = vadd.f32 %v1122_v62, %v384_v17  ;;  %v539_v17 = vld [vmem:[#allocation3 + $0x58] sm:$0xff] }
 0x220   :  { %v407_v27 = vadd.f32 %v1124_v63, %v406_v20 }
 0x221   :  { %v389_v24 = vsel %vm388_vm4, %v1122_v62, %v385_v21 }
 0x222   :  { %v394_v25 = vsel %vm391_vm5, %v393_v22, %v389_v24  ;;  %v411_v33 = vsel %vm410_vm8, %v1124_v63, %v407_v27 }
 0x223   :  { %v420_v28 = vmul.f32 %v394_v25, %v372_v23  ;;  %v416_v35 = vsel %vm413_vm9, %v415_v34, %v411_v33 }
 0x224   :  { %v423_v36 = vsub.f32 1.0, %v416_v35  ;;  %v425_v39 = vmul.f32 %v416_v35, %v1403_v49 }
 0x225   :  { %v421_v32 = vadd.f32 %v420_v28, %v419_v26 }
 0x227   :  { %1125 = vtanh.f32 %v421_v32 }
 0x22d   :  { %v1126_v37 = vpop.eup %1125 }
 0x22e   :  { %v424_v38 = vmul.f32 %v1126_v37, %v423_v36 }
 0x230   :  { %v426_v40 = vadd.f32 %v425_v39, %v424_v38 }
 0x232   :  { %427 = vst.msk [vmem:[#allocation2] sm:$0xff] %vm51_vm0, %v426_v40 }
 0x233   :  { %429 = vst.msk [vmem:[#allocation8 + $0x10] sm:$0xff] %vm51_vm0, %v426_v40 }
 0x239   :  { %v1427_v41 = vld [vmem:[#allocation2] sm:$0xff] }
 0x23a   :  { %1065 = vmatmul.msk.f32.vlgmr.msra.gmra.mxu1 %vm51_vm0, %v1427_v41  ;;  %1066 = vmatmul.msk.f32.vlgmr.msra.gmra.mxu2 %vm51_vm0, %v1427_v41 }
 0x23b   :  { %1067 = vmatmul.msk.f32.vlgmr.msra.gmra.mxu3 %vm51_vm0, %v1427_v41  ;;  %726 = vmatpush.msra.mxu1 %v1311_v7 }
 0x23c   :  { %806 = vmatpush.msra.mxu2 %v1294_v1  ;;  %826 = vmatpush.msra.mxu3 %v1296_v2 }
 0x23d   :  { %727 = vmatpush.msra.mxu1 %v1313_v8 }
 0x23e   :  { %807 = vmatpush.msra.mxu2 %v1298_v3  ;;  %827 = vmatpush.msra.mxu3 %v1302_v4 }
 0x23f   :  { %728 = vmatpush.msra.mxu1 %v1326_v12 }
 0x240   :  { %808 = vmatpush.msra.mxu2 %v1304_v5  ;;  %828 = vmatpush.msra.mxu3 %v1306_v6 }
 0x241   :  { %729 = vmatpush.msra.mxu1 %v1335_v13 }
 0x242   :  { %809 = vmatpush.msra.mxu2 %v1315_v9  ;;  %829 = vmatpush.msra.mxu3 %v1317_v10 }
 0x2b7   :  { %v451_v43 = vpop.f32.mrf.mxu1 }
 0x2b8   :  { %v496_v44 = vadd.f32 %v495_v42, %v451_v43 }
 0x2ba   :  { %v1068_v45 = vmul.f32 -1.442695, %v496_v44 }
 0x2bc   :  { %1127 = vpow2.f32 %v1068_v45 }
 0x2bd   :  { %v471_v47 = vpop.f32.mrf.mxu2 }
 0x2be   :  { %v518_v48 = vadd.f32 %v517_v46, %v471_v47  ;;  %v491_v61 = vpop.f32.mrf.mxu3 }
 0x2bf   :  { %v492_v14 = vadd.f32 %v1373_v30, %v491_v61 }
 0x2c0   :  { %v1069_v49 = vmul.f32 -1.442695, %v518_v48 }
 0x2c2   :  { %v1128_v50 = vpop.eup %1127  ;;  %1129 = vpow2.f32 %v1069_v49 }
 0x2c3   :  { %v500_v51 = vadd.f32 1.0, %v1128_v50 }
 0x2c5   :  { %1131 = vrcp.f32 %v500_v51  ;;  %v512_v57 = vand.u32 2147483648, %v500_v51  ;;  %v510_v59 = vand.u32 2147483647, %v500_v51  ;;  %vm506_vm11 = vweird.f32 %v500_v51 }
 0x2c7   :  { %v513_v0 = vor.u32 1.1754944e-38, %v512_v57  ;;  %vm511_vm13 = vcmp.eq.f32.partialorder %v510_v59, 8.507059e+37 }
 0x2c8   :  { %v1130_v52 = vpop.eup %1129 }
 0x2c9   :  { %v522_v53 = vadd.f32 1.0, %v1130_v52 }
 0x2cb   :  { %v1132_v54 = vpop.eup %1131  ;;  %1133 = vrcp.f32 %v522_v53  ;;  %v534_v19 = vand.u32 2147483648, %v522_v53  ;;  %v532_v21 = vand.u32 2147483647, %v522_v53  ;;  %vm528_vm15 = vweird.f32 %v522_v53 }
 0x2cc   :  { %v502_v55 = vmul.f32 %v1132_v54, %v500_v51  ;;  %vm507_vm10 = vweird.f32 %v1132_v54 }
 0x2cd   :  { %vm508_vm12 = vmor %vm506_vm11, %vm507_vm10  ;;  %v535_v24 = vor.u32 1.1754944e-38, %v534_v19  ;;  %vm533_vm2 = vcmp.eq.f32.partialorder %v532_v21, 8.507059e+37  ;;  %v735_v21 = vld [vmem:[#allocation3 + $0x78] sm:$0xff] }
 0x2ce   :  { %v503_v56 = vsub.f32 1.0, %v502_v55  ;;  %v659_v55 = vld [vmem:[#allocation3 + $0x70] sm:$0xff] }
 0x2d0   :  { %v504_v58 = vmul.f32 %v1132_v54, %v503_v56 }
 0x2d1   :  { %v1134_v60 = vpop.eup %1133 }
 0x2d2   :  { %v524_v62 = vmul.f32 %v1134_v60, %v522_v53  ;;  %v505_v63 = vadd.f32 %v1132_v54, %v504_v58  ;;  %vm529_vm14 = vweird.f32 %v1134_v60 }
 0x2d3   :  { %vm530_vm1 = vmor %vm528_vm15, %vm529_vm14 }
 0x2d4   :  { %v525_v11 = vsub.f32 1.0, %v524_v62  ;;  %v509_v15 = vsel %vm508_vm12, %v1132_v54, %v505_v63 }
 0x2d5   :  { %v514_v16 = vsel %vm511_vm13, %v513_v0, %v509_v15 }
 0x2d6   :  { %v526_v18 = vmul.f32 %v1134_v60, %v525_v11  ;;  %v540_v20 = vmul.f32 %v514_v16, %v492_v14 }
 0x2d8   :  { %v527_v22 = vadd.f32 %v1134_v60, %v526_v18  ;;  %v541_v23 = vadd.f32 %v540_v20, %v539_v17  ;;  %v757_v17 = vld [vmem:[#allocation3 + $0x80] sm:$0xff] }
 0x2da   :  { %v531_v25 = vsel %vm530_vm1, %v1134_v60, %v527_v22  ;;  %1135 = vtanh.f32 %v541_v23 }
 0x2db   :  { %v536_v26 = vsel %vm533_vm2, %v535_v24, %v531_v25 }
 0x2dc   :  { %v543_v27 = vsub.f32 1.0, %v536_v26  ;;  %v545_v31 = vmul.f32 %v536_v26, %v1427_v41 }
 0x2e0   :  { %v1136_v28 = vpop.eup %1135 }
 0x2e1   :  { %v544_v29 = vmul.f32 %v1136_v28, %v543_v27 }
 0x2e3   :  { %v546_v32 = vadd.f32 %v545_v31, %v544_v29 }
 0x2e5   :  { %547 = vst.msk [vmem:[#allocation2] sm:$0xff] %vm51_vm0, %v546_v32 }
 0x2e6   :  { %549 = vst.msk [vmem:[#allocation8 + $0x18] sm:$0xff] %vm51_vm0, %v546_v32 }
 0x2ec   :  { %v1451_v33 = vld [vmem:[#allocation2] sm:$0xff] }
 0x2ed   :  { %1070 = vmatmul.msk.f32.vlgmr.msrb.gmra.mxu0 %vm51_vm0, %v1451_v33  ;;  %1071 = vmatmul.msk.f32.vlgmr.msrb.gmra.mxu1 %vm51_vm0, %v1451_v33 }
 0x2ee   :  { %1072 = vmatmul.msk.f32.vlgmr.msrb.gmra.mxu2 %vm51_vm0, %v1451_v33  ;;  %846 = vmatpush.msrb.mxu0 %v1311_v7 }
 0x2ef   :  { %926 = vmatpush.msrb.mxu1 %v1294_v1  ;;  %946 = vmatpush.msrb.mxu2 %v1296_v2  ;;  %v615_v1 = vld [vmem:[#allocation3 + $0x60] sm:$0xff]  ;;  %v637_v2 = vld [vmem:[#allocation3 + $0x68] sm:$0xff] }
 0x2f0   :  { %847 = vmatpush.msrb.mxu0 %v1313_v8 }
 0x2f1   :  { %927 = vmatpush.msrb.mxu1 %v1298_v3  ;;  %947 = vmatpush.msrb.mxu2 %v1302_v4 }
 0x2f2   :  { %848 = vmatpush.msrb.mxu0 %v1326_v12 }
 0x2f3   :  { %928 = vmatpush.msrb.mxu1 %v1304_v5  ;;  %948 = vmatpush.msrb.mxu2 %v1306_v6 }
 0x2f4   :  { %849 = vmatpush.msrb.mxu0 %v1335_v13 }
 0x2f5   :  { %929 = vmatpush.msrb.mxu1 %v1315_v9  ;;  %949 = vmatpush.msrb.mxu2 %v1317_v10 }
 0x36a   :  { %v571_v34 = vpop.f32.mrf.mxu0  ;;  %v591_v35 = vpop.f32.mrf.mxu1 }
 0x36b   :  { %v616_v36 = vadd.f32 %v615_v1, %v571_v34  ;;  %v638_v3 = vadd.f32 %v637_v2, %v591_v35 }
 0x36d   :  { %v1073_v37 = vmul.f32 -1.442695, %v616_v36  ;;  %v1074_v4 = vmul.f32 -1.442695, %v638_v3 }
 0x36f   :  { %1137 = vpow2.f32 %v1073_v37 }
 0x370   :  { %1139 = vpow2.f32 %v1074_v4 }
 0x371   :  { %v611_v48 = vpop.f32.mrf.mxu2 }
 0x372   :  { %v612_v51 = vadd.f32 %v1373_v30, %v611_v48 }
 0x375   :  { %v1138_v38 = vpop.eup %1137 }
 0x376   :  { %v1140_v5 = vpop.eup %1139  ;;  %v620_v39 = vadd.f32 1.0, %v1138_v38 }
 0x377   :  { %v642_v6 = vadd.f32 1.0, %v1140_v5  ;;  %v779_v5 = vld [vmem:[#allocation3 + $0x88] sm:$0xff] }
 0x378   :  { %1141 = vrcp.f32 %v620_v39  ;;  %v632_v44 = vand.u32 2147483648, %v620_v39  ;;  %v630_v46 = vand.u32 2147483647, %v620_v39  ;;  %vm626_vm4 = vweird.f32 %v620_v39 }
 0x379   :  { %1143 = vrcp.f32 %v642_v6  ;;  %v654_v56 = vand.u32 2147483648, %v642_v6  ;;  %vm648_vm8 = vweird.f32 %v642_v6  ;;  %v652_v58 = vand.u32 2147483647, %v642_v6 }
 0x37a   :  { %v633_v50 = vor.u32 1.1754944e-38, %v632_v44  ;;  %vm631_vm6 = vcmp.eq.f32.partialorder %v630_v46, 8.507059e+37 }
 0x37b   :  { %v655_v61 = vor.u32 1.1754944e-38, %v654_v56  ;;  %vm653_vm10 = vcmp.eq.f32.partialorder %v652_v58, 8.507059e+37 }
 0x37e   :  { %v1142_v40 = vpop.eup %1141 }
 0x37f   :  { %v1144_v9 = vpop.eup %1143  ;;  %v622_v41 = vmul.f32 %v1142_v40, %v620_v39  ;;  %vm627_vm3 = vweird.f32 %v1142_v40 }
 0x380   :  { %v644_v10 = vmul.f32 %v1144_v9, %v642_v6  ;;  %vm628_vm5 = vmor %vm626_vm4, %vm627_vm3  ;;  %vm649_vm7 = vweird.f32 %v1144_v9 }
 0x381   :  { %v623_v42 = vsub.f32 1.0, %v622_v41  ;;  %vm650_vm9 = vmor %vm648_vm8, %vm649_vm7 }
 0x382   :  { %v645_v43 = vsub.f32 1.0, %v644_v10 }
 0x383   :  { %v624_v45 = vmul.f32 %v1142_v40, %v623_v42 }
 0x384   :  { %v646_v47 = vmul.f32 %v1144_v9, %v645_v43 }
 0x385   :  { %v625_v49 = vadd.f32 %v1142_v40, %v624_v45 }
 0x386   :  { %v647_v53 = vadd.f32 %v1144_v9, %v646_v47 }
 0x387   :  { %v629_v52 = vsel %vm628_vm5, %v1142_v40, %v625_v49  ;;  %v855_v49 = vld [vmem:[#allocation3 + $0x90] sm:$0xff] }
 0x388   :  { %v634_v54 = vsel %vm631_vm6, %v633_v50, %v629_v52  ;;  %v651_v60 = vsel %vm650_vm9, %v1144_v9, %v647_v53  ;;  %v877_v50 = vld [vmem:[#allocation3 + $0x98] sm:$0xff] }
 0x389   :  { %v660_v57 = vmul.f32 %v634_v54, %v612_v51  ;;  %v656_v62 = vsel %vm653_vm10, %v655_v61, %v651_v60 }
 0x38a   :  { %v663_v63 = vsub.f32 1.0, %v656_v62  ;;  %v665_v14 = vmul.f32 %v656_v62, %v1451_v33 }
 0x38b   :  { %v661_v59 = vadd.f32 %v660_v57, %v659_v55 }
 0x38d   :  { %1145 = vtanh.f32 %v661_v59 }
 0x393   :  { %v1146_v0 = vpop.eup %1145 }
 0x394   :  { %v664_v11 = vmul.f32 %v1146_v0, %v663_v63 }
 0x396   :  { %v666_v15 = vadd.f32 %v665_v14, %v664_v11 }
 0x398   :  { %667 = vst.msk [vmem:[#allocation2] sm:$0xff] %vm51_vm0, %v666_v15 }
 0x399   :  { %669 = vst.msk [vmem:[#allocation8 + $0x20] sm:$0xff] %vm51_vm0, %v666_v15 }
 0x39f   :  { %v670_v16 = vld [vmem:[#allocation2] sm:$0xff] }
 0x3a0   :  { %1075 = vmatmul.msk.f32.vlgmr.msrb.gmra.mxu3 %vm51_vm0, %v670_v16  ;;  %1076 = vmatmul.msk.f32.vlgmr.msra.gmra.mxu0 %vm51_vm0, %v670_v16 }
 0x3a1   :  { %1077 = vmatmul.msk.f32.vlgmr.msra.gmra.mxu1 %vm51_vm0, %v670_v16  ;;  %966 = vmatpush.msrb.mxu3 %v1311_v7 }
 0x3a3   :  { %967 = vmatpush.msrb.mxu3 %v1313_v8 }
 0x3a5   :  { %968 = vmatpush.msrb.mxu3 %v1326_v12 }
 0x3a7   :  { %969 = vmatpush.msrb.mxu3 %v1335_v13 }
 0x41d   :  { %v711_v18 = vpop.f32.mrf.mxu0 }
 0x41e   :  { %v758_v19 = vadd.f32 %v757_v17, %v711_v18  ;;  %v731_v34 = vpop.f32.mrf.mxu1 }
 0x41f   :  { %v732_v3 = vadd.f32 %v1373_v30, %v731_v34 }
 0x420   :  { %v1079_v20 = vmul.f32 -1.442695, %v758_v19 }
 0x422   :  { %1147 = vpow2.f32 %v1079_v20 }
 0x423   :  { %v691_v22 = vpop.f32.mrf.mxu3 }
 0x424   :  { %v736_v23 = vadd.f32 %v735_v21, %v691_v22 }
 0x426   :  { %v1078_v24 = vmul.f32 -1.442695, %v736_v23 }
 0x428   :  { %v1148_v25 = vpop.eup %1147  ;;  %1149 = vpow2.f32 %v1078_v24 }
 0x429   :  { %v762_v26 = vadd.f32 1.0, %v1148_v25  ;;  %v899_v25 = vld [vmem:[#allocation3 + $0xa0] sm:$0xff] }
 0x42b   :  { %1151 = vrcp.f32 %v762_v26  ;;  %v774_v39 = vand.u32 2147483648, %v762_v26  ;;  %vm768_vm1 = vweird.f32 %v762_v26  ;;  %v772_v40 = vand.u32 2147483647, %v762_v26 }
 0x42d   :  { %v775_v10 = vor.u32 1.1754944e-38, %v774_v39  ;;  %vm773_vm3 = vcmp.eq.f32.partialorder %v772_v40, 8.507059e+37 }
 0x42e   :  { %v1150_v7 = vpop.eup %1149 }
 0x42f   :  { %v740_v27 = vadd.f32 1.0, %v1150_v7 }
 0x431   :  { %1153 = vrcp.f32 %v740_v27  ;;  %v1152_v8 = vpop.eup %1151  ;;  %v752_v32 = vand.u32 2147483648, %v740_v27  ;;  %v750_v1 = vand.u32 2147483647, %v740_v27  ;;  %vm746_vm12 = vweird.f32 %v740_v27 }
 0x432   :  { %v764_v12 = vmul.f32 %v1152_v8, %v762_v26  ;;  %vm769_vm15 = vweird.f32 %v1152_v8 }
 0x433   :  { %v753_v36 = vor.u32 1.1754944e-38, %v752_v32  ;;  %vm751_vm14 = vcmp.eq.f32.partialorder %v750_v1, 8.507059e+37  ;;  %vm770_vm2 = vmor %vm768_vm1, %vm769_vm15 }
 0x434   :  { %v765_v29 = vsub.f32 1.0, %v764_v12 }
 0x436   :  { %v766_v2 = vmul.f32 %v1152_v8, %v765_v29 }
 0x437   :  { %v1154_v28 = vpop.eup %1153 }
 0x438   :  { %v742_v13 = vmul.f32 %v1154_v28, %v740_v27  ;;  %vm747_vm11 = vweird.f32 %v1154_v28  ;;  %v767_v4 = vadd.f32 %v1152_v8, %v766_v2 }
 0x439   :  { %vm748_vm13 = vmor %vm746_vm12, %vm747_vm11 }
 0x43a   :  { %v743_v31 = vsub.f32 1.0, %v742_v13  ;;  %v771_v41 = vsel %vm770_vm2, %v1152_v8, %v767_v4  ;;  %v997_v4 = vld [vmem:[#allocation3 + $0xb0] sm:$0xff] }
 0x43b   :  { %v776_v42 = vsel %vm773_vm3, %v775_v10, %v771_v41 }
 0x43c   :  { %v744_v33 = vmul.f32 %v1154_v28, %v743_v31  ;;  %v783_v43 = vsub.f32 1.0, %v776_v42  ;;  %v785_v45 = vmul.f32 %v776_v42, %v670_v16 }
 0x43e   :  { %v745_v35 = vadd.f32 %v1154_v28, %v744_v33 }
 0x440   :  { %v749_v37 = vsel %vm748_vm13, %v1154_v28, %v745_v35  ;;  %v975_v35 = vld [vmem:[#allocation3 + $0xa8] sm:$0xff] }
 0x441   :  { %v754_v38 = vsel %vm751_vm14, %v753_v36, %v749_v37 }
 0x442   :  { %v780_v6 = vmul.f32 %v754_v38, %v732_v3 }
 0x444   :  { %v781_v9 = vadd.f32 %v780_v6, %v779_v5 }
 0x446   :  { %1155 = vtanh.f32 %v781_v9 }
 0x44c   :  { %v1156_v44 = vpop.eup %1155 }
 0x44d   :  { %v784_v46 = vmul.f32 %v1156_v44, %v783_v43 }
 0x44f   :  { %v786_v47 = vadd.f32 %v785_v45, %v784_v46 }
 0x451   :  { %787 = vst.msk [vmem:[#allocation2] sm:$0xff] %vm51_vm0, %v786_v47 }
 0x452   :  { %789 = vst.msk [vmem:[#allocation8 + $0x28] sm:$0xff] %vm51_vm0, %v786_v47 }
 0x458   :  { %v790_v48 = vld [vmem:[#allocation2] sm:$0xff] }
 0x459   :  { %1080 = vmatmul.msk.f32.vlgmr.msra.gmra.mxu2 %vm51_vm0, %v790_v48  ;;  %1081 = vmatmul.msk.f32.vlgmr.msra.gmra.mxu3 %vm51_vm0, %v790_v48 }
 0x45a   :  { %1082 = vmatmul.msk.f32.vlgmr.msrb.gmra.mxu0 %vm51_vm0, %v790_v48 }
 0x4d7   :  { %v851_v18 = vpop.f32.mrf.mxu0 }
 0x4d8   :  { %v852_v22 = vadd.f32 %v1373_v30, %v851_v18 }
 0x4dc   :  { %v811_v51 = vpop.f32.mrf.mxu2  ;;  %v831_v52 = vpop.f32.mrf.mxu3 }
 0x4dd   :  { %v856_v53 = vadd.f32 %v855_v49, %v811_v51  ;;  %v878_v54 = vadd.f32 %v877_v50, %v831_v52 }
 0x4df   :  { %v1083_v55 = vmul.f32 -1.442695, %v856_v53  ;;  %v1084_v56 = vmul.f32 -1.442695, %v878_v54 }
 0x4e1   :  { %1157 = vpow2.f32 %v1083_v55 }
 0x4e2   :  { %1159 = vpow2.f32 %v1084_v56  ;;  %v1019_v56 = vld [vmem:[#allocation3 + $0xb8] sm:$0xff] }
 0x4e7   :  { %v1158_v57 = vpop.eup %1157 }
 0x4e8   :  { %v1160_v58 = vpop.eup %1159  ;;  %v860_v59 = vadd.f32 1.0, %v1158_v57 }
 0x4e9   :  { %v882_v60 = vadd.f32 1.0, %v1160_v58 }
 0x4ea   :  { %1161 = vrcp.f32 %v860_v59  ;;  %v872_v14 = vand.u32 2147483648, %v860_v59  ;;  %v870_v17 = vand.u32 2147483647, %v860_v59  ;;  %vm866_vm5 = vweird.f32 %v860_v59 }
 0x4eb   :  { %1163 = vrcp.f32 %v882_v60  ;;  %v894_v27 = vand.u32 2147483648, %v882_v60  ;;  %vm888_vm9 = vweird.f32 %v882_v60  ;;  %v892_v8 = vand.u32 2147483647, %v882_v60 }
 0x4ec   :  { %v873_v21 = vor.u32 1.1754944e-38, %v872_v14  ;;  %vm871_vm7 = vcmp.eq.f32.partialorder %v870_v17, 8.507059e+37 }
 0x4ed   :  { %v895_v13 = vor.u32 1.1754944e-38, %v894_v27  ;;  %vm893_vm11 = vcmp.eq.f32.partialorder %v892_v8, 8.507059e+37 }
 0x4f0   :  { %v1162_v61 = vpop.eup %1161 }
 0x4f1   :  { %v1164_v62 = vpop.eup %1163  ;;  %v862_v63 = vmul.f32 %v1162_v61, %v860_v59  ;;  %vm867_vm4 = vweird.f32 %v1162_v61 }
 0x4f2   :  { %v884_v0 = vmul.f32 %v1164_v62, %v882_v60  ;;  %vm868_vm6 = vmor %vm866_vm5, %vm867_vm4  ;;  %vm889_vm8 = vweird.f32 %v1164_v62 }
 0x4f3   :  { %v863_v11 = vsub.f32 1.0, %v862_v63  ;;  %vm890_vm10 = vmor %vm888_vm9, %vm889_vm8 }
 0x4f4   :  { %v885_v15 = vsub.f32 1.0, %v884_v0 }
 0x4f5   :  { %v864_v16 = vmul.f32 %v1162_v61, %v863_v11 }
 0x4f6   :  { %v886_v19 = vmul.f32 %v1164_v62, %v885_v15 }
 0x4f7   :  { %v865_v20 = vadd.f32 %v1162_v61, %v864_v16 }
 0x4f8   :  { %v887_v26 = vadd.f32 %v1164_v62, %v886_v19 }
 0x4f9   :  { %v869_v23 = vsel %vm868_vm6, %v1162_v61, %v865_v20 }
 0x4fa   :  { %v874_v24 = vsel %vm871_vm7, %v873_v21, %v869_v23  ;;  %v891_v28 = vsel %vm890_vm10, %v1164_v62, %v887_v26 }
 0x4fb   :  { %v900_v7 = vmul.f32 %v874_v24, %v852_v22  ;;  %v896_v29 = vsel %vm893_vm11, %v895_v13, %v891_v28 }
 0x4fc   :  { %v903_v31 = vsub.f32 1.0, %v896_v29  ;;  %v905_v1 = vmul.f32 %v896_v29, %v790_v48 }
 0x4fd   :  { %v901_v12 = vadd.f32 %v900_v7, %v899_v25 }
 0x4ff   :  { %1165 = vtanh.f32 %v901_v12 }
 0x505   :  { %v1166_v32 = vpop.eup %1165 }
 0x506   :  { %v904_v33 = vmul.f32 %v1166_v32, %v903_v31 }
 0x508   :  { %v906_v2 = vadd.f32 %v905_v1, %v904_v33 }
 0x50a   :  { %907 = vst.msk [vmem:[#allocation2] sm:$0xff] %vm51_vm0, %v906_v2 }
 0x50b   :  { %909 = vst.msk [vmem:[#allocation8 + $0x30] sm:$0xff] %vm51_vm0, %v906_v2 }
 0x511   :  { %v910_v34 = vld [vmem:[#allocation2] sm:$0xff] }
 0x512   :  { %1085 = vmatmul.msk.f32.vlgmr.msrb.gmra.mxu1 %vm51_vm0, %v910_v34  ;;  %1086 = vmatmul.msk.f32.vlgmr.msrb.gmra.mxu2 %vm51_vm0, %v910_v34 }
 0x513   :  { %1087 = vmatmul.msk.f32.vlgmr.msrb.gmra.mxu3 %vm51_vm0, %v910_v34 }
 0x58f   :  { %v931_v36 = vpop.f32.mrf.mxu1 }
 0x590   :  { %v976_v3 = vadd.f32 %v975_v35, %v931_v36 }
 0x592   :  { %v1088_v37 = vmul.f32 -1.442695, %v976_v3 }
 0x594   :  { %1167 = vpow2.f32 %v1088_v37 }
 0x595   :  { %v951_v38 = vpop.f32.mrf.mxu2 }
 0x596   :  { %v998_v5 = vadd.f32 %v997_v4, %v951_v38  ;;  %v971_v48 = vpop.f32.mrf.mxu3 }
 0x597   :  { %v972_v53 = vadd.f32 %v1373_v30, %v971_v48 }
 0x598   :  { %v1089_v39 = vmul.f32 -1.442695, %v998_v5 }
 0x59a   :  { %v1168_v6 = vpop.eup %1167  ;;  %1169 = vpow2.f32 %v1089_v39 }
 0x59b   :  { %v980_v40 = vadd.f32 1.0, %v1168_v6 }
 0x59d   :  { %1171 = vrcp.f32 %v980_v40  ;;  %v992_v44 = vand.u32 2147483648, %v980_v40  ;;  %v990_v46 = vand.u32 2147483647, %v980_v40  ;;  %vm986_vm13 = vweird.f32 %v980_v40 }
 0x59f   :  { %v993_v51 = vor.u32 1.1754944e-38, %v992_v44  ;;  %vm991_vm15 = vcmp.eq.f32.partialorder %v990_v46, 8.507059e+37 }
 0x5a0   :  { %v1170_v9 = vpop.eup %1169 }
 0x5a1   :  { %v1002_v41 = vadd.f32 1.0, %v1170_v9 }
 0x5a3   :  { %v1172_v10 = vpop.eup %1171  ;;  %1173 = vrcp.f32 %v1002_v41  ;;  %v1014_v58 = vand.u32 2147483648, %v1002_v41  ;;  %v1012_v60 = vand.u32 2147483647, %v1002_v41  ;;  %vm1008_vm2 = vweird.f32 %v1002_v41 }
 0x5a4   :  { %v982_v42 = vmul.f32 %v1172_v10, %v980_v40  ;;  %vm987_vm12 = vweird.f32 %v1172_v10 }
 0x5a5   :  { %vm988_vm14 = vmor %vm986_vm13, %vm987_vm12  ;;  %v1015_v63 = vor.u32 1.1754944e-38, %v1014_v58  ;;  %vm1013_vm4 = vcmp.eq.f32.partialorder %v1012_v60, 8.507059e+37 }
 0x5a6   :  { %v983_v43 = vsub.f32 1.0, %v982_v42 }
 0x5a8   :  { %v984_v45 = vmul.f32 %v1172_v10, %v983_v43 }
 0x5a9   :  { %v1174_v47 = vpop.eup %1173 }
 0x5aa   :  { %v1004_v49 = vmul.f32 %v1174_v47, %v1002_v41  ;;  %v985_v50 = vadd.f32 %v1172_v10, %v984_v45  ;;  %vm1009_vm1 = vweird.f32 %v1174_v47 }
 0x5ab   :  { %vm1010_vm3 = vmor %vm1008_vm2, %vm1009_vm1 }
 0x5ac   :  { %v1005_v52 = vsub.f32 1.0, %v1004_v49  ;;  %v989_v54 = vsel %vm988_vm14, %v1172_v10, %v985_v50 }
 0x5ad   :  { %v994_v55 = vsel %vm991_vm15, %v993_v51, %v989_v54 }
 0x5ae   :  { %v1006_v57 = vmul.f32 %v1174_v47, %v1005_v52  ;;  %v1020_v59 = vmul.f32 %v994_v55, %v972_v53 }
 0x5b0   :  { %v1007_v61 = vadd.f32 %v1174_v47, %v1006_v57  ;;  %v1021_v62 = vadd.f32 %v1020_v59, %v1019_v56 }
 0x5b2   :  { %v1011_v0 = vsel %vm1010_vm3, %v1174_v47, %v1007_v61  ;;  %1175 = vtanh.f32 %v1021_v62 }
 0x5b3   :  { %v1016_v11 = vsel %vm1013_vm4, %v1015_v63, %v1011_v0 }
 0x5b4   :  { %v1023_v14 = vsub.f32 1.0, %v1016_v11  ;;  %v1025_v16 = vmul.f32 %v1016_v11, %v910_v34 }
 0x5b8   :  { %v1176_v30 = vpop.eup %1175 }
 0x5b9   :  { %v1024_v15 = vmul.f32 %v1176_v30, %v1023_v14 }
 0x5bb   :  { %v1026_v17 = vadd.f32 %v1025_v16, %v1024_v15 }
 0x5bd   :  { %1027 = vst.msk [vmem:[#allocation2] sm:$0xff] %vm51_vm0, %v1026_v17 }
 0x5be   :  { %1029 = vst.msk [vmem:[#allocation8 + $0x38] sm:$0xff] %vm51_vm0, %v1026_v17 }
 0x5bf   :  { %1042 = dma.vmem_to_hbm [thread:$0]  %s1035_s24, 1024, %s1037_s27, [#allocation5], %s1256_s20, %s1256_s20, %s1257_s21  }
 0x5c0   :  { %1253 = dma.done.wait [#allocation5], 1024  }
 0x5c1   :  { %1254 = vsyncadd [#allocation5], 4294966272 }
 0x5c2   :  { %1047 = vsyncpa [#allocation4], 1 }
 0x5c3   :  { %1048 = vsyncpa [#allocation7], 1 }
 0x5c4   :  { %1049 = vsyncpa [#allocation5], 1 }

</bundles_post_ra>
